<compile_context>
chip_gen: v6e
topology: v6e:2x2x1
jax: 0.10.0
libtpu: 0.0.40
codegen_flags: <defaults>
</compile_context>

<pallas_src>
import functools

import jax
import jax.numpy as jnp
from jax.experimental import pallas as pl
from jax.experimental.pallas import tpu as pltpu

EXPANSION = 4


def _round_up(x, m):
    return -(-x // m) * m


def _pick_tn(n):
    for t in (512, 256, 128):
        if n % t == 0:
            return t
    return n


def _pick_batch_block(n, per_img_m, per_img_bytes, target_m=128,
                      max_bytes=4 << 20):
    """Largest divisor of n whose input slab fits `max_bytes`, stopping once
    the per-step matmul M reaches `target_m`."""
    best = 1
    for nb in range(1, n + 1):
        if n % nb:
            continue
        if nb > 1 and nb * per_img_bytes > max_bytes:
            break
        best = nb
        if nb * per_img_m >= target_m:
            break
    return best


# ----------------- fused matmul + BN (+ residual, + relu) --------------------
def _make_mm_kernel(has_residual, apply_relu):
    def kernel(*refs):
        if has_residual:
            a_ref, b_ref, s_ref, c_ref, r_ref, o_ref, acc_ref = refs
        else:
            a_ref, b_ref, s_ref, c_ref, o_ref, acc_ref = refs
        k = pl.program_id(2)

        @pl.when(k == 0)
        def _():
            acc_ref[...] = jnp.zeros_like(acc_ref)

        acc_ref[...] += jnp.dot(a_ref[...], b_ref[...],
                                preferred_element_type=jnp.float32)

        @pl.when(k == pl.num_programs(2) - 1)
        def _():
            out = acc_ref[...] * s_ref[...] + c_ref[...]
            if has_residual:
                out = out + r_ref[...].astype(jnp.float32)
            if apply_relu:
                out = jnp.maximum(out, 0.0)
            o_ref[...] = out.astype(o_ref.dtype)

    return kernel


def matmul_bn(a, b, scale, bias, residual=None, relu=True,
              out_dtype=jnp.bfloat16):
    """maybe_relu((a @ b) * scale + bias [+ residual]), f32 accumulation."""
    M, K = a.shape
    _, N = b.shape
    tn = _pick_tn(N)
    tm = min(512, _round_up(M, 8))
    tk = min(512, _round_up(K, 128))
    Mp = _round_up(M, tm)
    Kp = _round_up(K, tk)

    a16 = a.astype(jnp.bfloat16)
    b16 = b.astype(jnp.bfloat16)
    if (Mp, Kp) != (M, K):
        a16 = jnp.pad(a16, ((0, Mp - M), (0, Kp - K)))
    if Kp != K:
        b16 = jnp.pad(b16, ((0, Kp - K), (0, 0)))
    s2 = scale.reshape(1, N).astype(jnp.float32)
    c2 = bias.reshape(1, N).astype(jnp.float32)

    args = [a16, b16, s2, c2]
    in_specs = [
        pl.BlockSpec((tm, tk), lambda i, j, k: (i, k)),
        pl.BlockSpec((tk, tn), lambda i, j, k: (k, j)),
        pl.BlockSpec((1, tn), lambda i, j, k: (0, j)),
        pl.BlockSpec((1, tn), lambda i, j, k: (0, j)),
    ]
    has_res = residual is not None
    if has_res:
        r = residual                      # keep stored dtype (no bf16 re-round)
        if Mp != M:
            r = jnp.pad(r, ((0, Mp - M), (0, 0)))
        args.append(r)
        in_specs.append(pl.BlockSpec((tm, tn), lambda i, j, k: (i, j)))

    out = pl.pallas_call(
        _make_mm_kernel(has_res, relu),
        out_shape=jax.ShapeDtypeStruct((Mp, N), out_dtype),
        grid_spec=pltpu.PrefetchScalarGridSpec(
            num_scalar_prefetch=0,
            grid=(Mp // tm, N // tn, Kp // tk),
            in_specs=in_specs,
            out_specs=pl.BlockSpec((tm, tn), lambda i, j, k: (i, j)),
            scratch_shapes=[pltpu.VMEM((tm, tn), jnp.float32)]),
        compiler_params=pltpu.CompilerParams(
            dimension_semantics=("parallel", "parallel", "arbitrary")),
    )(*args)
    return out if Mp == M else out[:M]


# ------------------------------ 1x1 conv (stride 1) --------------------------
def conv1x1_bn(x, w, scale, bias, relu=True, out_dtype=jnp.bfloat16):
    Nb, H, W, Cin = x.shape
    Cout = w.shape[-1]
    y = matmul_bn(x.reshape(Nb * H * W, Cin), w.reshape(Cin, Cout),
                  scale, bias, relu=relu, out_dtype=out_dtype)
    return y.reshape(Nb, H, W, Cout)


# -------------------- 1x1 conv with spatial stride (shortcut) ----------------
def _conv1s_kernel(x_ref, w_ref, s_ref, c_ref, o_ref, *, nb, hs, ws, cin, relu):
    a = x_ref[:, :, 0, :, :cin]                       # H-phase 0, W-phase 0
    a = a.reshape(nb * hs * ws, cin)
    y = jnp.dot(a, w_ref[...], preferred_element_type=jnp.float32)
    y = y * s_ref[...] + c_ref[...]
    if relu:
        y = jnp.maximum(y, 0.0)
    o_ref[...] = y.astype(o_ref.dtype)


def conv1x1_strided_bn(x, w, scale, bias, stride, relu=False,
                       out_dtype=jnp.bfloat16):
    """1x1 conv with spatial stride, folded BN.  Returns flat (N*Hs*Ws, Cout).

    The stride-s subsample is folded into the pallas_call: the free reshape
    (N,H,W,C)->(N,H/s,s,W/s,s*C) lets the BlockSpec pick row-phase 0 and the
    kernel slice column-phase 0 lanes — no XLA gather copy."""
    Nb, H, W, Cin = x.shape
    Cout = w.shape[-1]
    s = stride
    if s == 1:
        return matmul_bn(x.reshape(Nb * H * W, Cin), w.reshape(Cin, Cout),
                         scale, bias, relu=relu, out_dtype=out_dtype)
    if H % s or W % s:
        # TODO(synk): ragged spatial dims fall back to an XLA strided slice.
        xs = x[:, ::s, ::s, :]
        n2, hs, ws, _ = xs.shape
        return matmul_bn(xs.reshape(n2 * hs * ws, Cin), w.reshape(Cin, Cout),
                         scale, bias, relu=relu, out_dtype=out_dtype)

    Hs, Ws = H // s, W // s
    x5 = x.reshape(Nb, Hs, s, Ws, s * Cin).astype(jnp.bfloat16)   # free reshape
    nb = _pick_batch_block(Nb, Hs * Ws, Hs * Ws * s * Cin * 2)
    tn = min(_pick_tn(Cout), 256)
    w2 = w.reshape(Cin, Cout).astype(jnp.bfloat16)
    s2 = scale.reshape(1, Cout).astype(jnp.float32)
    c2 = bias.reshape(1, Cout).astype(jnp.float32)

    kernel = functools.partial(_conv1s_kernel, nb=nb, hs=Hs, ws=Ws, cin=Cin,
                               relu=relu)
    out = pl.pallas_call(
        kernel,
        out_shape=jax.ShapeDtypeStruct((Nb * Hs * Ws, Cout), out_dtype),
        grid_spec=pltpu.PrefetchScalarGridSpec(
            num_scalar_prefetch=0,
            grid=(Nb // nb, Cout // tn),
            in_specs=[
                pl.BlockSpec((nb, Hs, 1, Ws, s * Cin),
                             lambda b, j: (b, 0, 0, 0, 0)),
                pl.BlockSpec((Cin, tn), lambda b, j: (0, j)),
                pl.BlockSpec((1, tn), lambda b, j: (0, j)),
                pl.BlockSpec((1, tn), lambda b, j: (0, j)),
            ],
            out_specs=pl.BlockSpec((nb * Hs * Ws, tn), lambda b, j: (b, j))),
        compiler_params=pltpu.CompilerParams(
            dimension_semantics=("parallel", "parallel")),
    )(x5, w2, s2, c2)
    return out


# ------------------- 3x3 conv, padding=1, no materialized im2col -------------
def _conv3_kernel(x_ref, w_ref, s_ref, c_ref, o_ref, *, stride, nb, ho, wo,
                  cin, relu):
    s = stride
    m = nb * ho * wo
    acc = None
    for dy in range(3):                      # 9 taps, unrolled, in-register acc
        oy, py = dy // s, dy % s
        for dx in range(3):
            ox, px = dx // s, dx % s
            a = x_ref[:, oy:oy + ho, py, ox:ox + wo, px * cin:(px + 1) * cin]
            a = a.reshape(m, cin)                          # (nb*Ho*Wo, Cin)
            wk = w_ref[dy, dx * cin:(dx + 1) * cin, :]     # weight K-slice
            d = jnp.dot(a, wk, preferred_element_type=jnp.float32)
            acc = d if acc is None else acc + d
    y = acc * s_ref[...] + c_ref[...]
    if relu:
        y = jnp.maximum(y, 0.0)
    o_ref[...] = y.reshape(o_ref.shape).astype(o_ref.dtype)


def conv3x3_bn(x, w, scale, bias, stride=1, relu=True,
               out_dtype=jnp.bfloat16):
    """3x3 conv, padding=1, folded BN.  x: (N,H,W,Cin); w: (3,3,Cin,Cout).

    The padded activation is reshaped (for free) into a phase-packed layout
    (N, Hq, s, Wq, s*Cin): packed row hq / phase ph is padded row hq*s+ph,
    same for width.  Every tap is then a unit-stride slice inside the kernel;
    one grid step computes the whole spatial output of `nb` images."""
    Nb, H, W, Cin = x.shape
    Cout = w.shape[-1]
    s = stride
    Ho = (H - 1) // s + 1
    Wo = (W - 1) // s + 1
    Hp = _round_up(max(H + 2, (Ho - 1) * s + 3), s)
    Wq = Wo + 2 // s
    Wt = s * Wq
    # TODO(synk): jnp.pad still costs one HBM round-trip of this activation;
    # fusing the halo into the kernel would remove it at large feature maps.
    xp = jnp.pad(x.astype(jnp.bfloat16),
                 ((0, 0), (1, Hp - H - 1), (1, Wt - W - 1), (0, 0)))
    Hq = Hp // s
    x5 = xp.reshape(Nb, Hq, s, Wq, s * Cin)                 # free reshape
    w3 = w.reshape(3, 3 * Cin, Cout).astype(jnp.bfloat16)   # (dy, dx*Cin+c, o)
    s2 = scale.reshape(1, Cout).astype(jnp.float32)
    c2 = bias.reshape(1, Cout).astype(jnp.float32)

    tn = min(_pick_tn(Cout), 256)
    nb = _pick_batch_block(Nb, Ho * Wo, Hq * s * Wq * s * Cin * 2)

    kernel = functools.partial(_conv3_kernel, stride=s, nb=nb, ho=Ho, wo=Wo,
                               cin=Cin, relu=relu)
    out = pl.pallas_call(
        kernel,
        out_shape=jax.ShapeDtypeStruct((Nb, Ho * Wo, Cout), out_dtype),
        grid_spec=pltpu.PrefetchScalarGridSpec(
            num_scalar_prefetch=0,
            grid=(Nb // nb, Cout // tn),
            in_specs=[
                pl.BlockSpec((nb, Hq, s, Wq, s * Cin),
                             lambda b, j: (b, 0, 0, 0, 0)),
                pl.BlockSpec((3, 3 * Cin, tn), lambda b, j: (0, 0, j)),
                pl.BlockSpec((1, tn), lambda b, j: (0, j)),
                pl.BlockSpec((1, tn), lambda b, j: (0, j)),
            ],
            out_specs=pl.BlockSpec((nb, Ho * Wo, tn), lambda b, j: (b, 0, j))),
        compiler_params=pltpu.CompilerParams(
            dimension_semantics=("parallel", "parallel")),
    )(x5, w3, s2, c2)
    return out.reshape(Nb, Ho, Wo, Cout)


# --------------------------------- BottleNeck --------------------------------
def bottleneck_forward(x, p, stride):
    """x: (N,H,W,in_planes) NHWC bf16 -> (N,Ho,Wo,EXPANSION*planes) f32."""
    Nb, H, W, Cin = x.shape
    planes = p["w1"].shape[-1]

    out = conv1x1_bn(x, p["w1"], p["bn1"][0], p["bn1"][1], relu=True,
                     out_dtype=jnp.bfloat16)
    out = conv3x3_bn(out, p["w2"], p["bn2"][0], p["bn2"][1], stride=stride,
                     relu=True, out_dtype=jnp.bfloat16)
    _, Ho, Wo, _ = out.shape

    if "wsc" in p:
        sc = conv1x1_strided_bn(x, p["wsc"], p["bnsc"][0], p["bnsc"][1],
                                stride=stride, relu=False,
                                out_dtype=jnp.bfloat16)
    else:
        sc = x.reshape(Nb * H * W, Cin)       # identity shortcut

    # out = relu(bn3(conv3(out)) + shortcut): residual add + relu fused.
    y = matmul_bn(out.reshape(Nb * Ho * Wo, planes),
                  p["w3"].reshape(planes, EXPANSION * planes),
                  p["bn3"][0], p["bn3"][1],
                  residual=sc, relu=True, out_dtype=jnp.float32)
    return y.reshape(Nb, Ho, Wo, EXPANSION * planes)


@functools.partial(jax.jit, static_argnames=("stride",))
def bottleneck_apply(params, x_nchw, stride):
    x = jnp.transpose(x_nchw, (0, 2, 3, 1)).astype(jnp.bfloat16)  # NCHW->NHWC
    y = bottleneck_forward(x, params, stride)
    return jnp.transpose(y, (0, 3, 1, 2))                         # ->NCHW


# ------------------------------ param init -----------------------------------
def _he_conv(key, kh, kw, cin, cout):
    fan_in = kh * kw * cin
    return (jax.random.normal(key, (kh, kw, cin, cout), jnp.float32)
            * jnp.sqrt(2.0 / fan_in))


def _bn_fold(key, c, eps=1e-5):
    k1, k2, k3, k4 = jax.random.split(key, 4)
    gamma = 1.0 + 0.1 * jax.random.normal(k1, (c,), jnp.float32)
    beta = 0.1 * jax.random.normal(k2, (c,), jnp.float32)
    rmean = 0.1 * jax.random.normal(k3, (c,), jnp.float32)
    rvar = 1.0 + 0.1 * jax.random.uniform(k4, (c,), jnp.float32)
    scale = gamma / jnp.sqrt(rvar + eps)
    bias = beta - rmean * scale
    return scale, bias


def init_bottleneck(key, in_planes, planes, stride):
    keys = jax.random.split(key, 8)
    p = {
        "w1": _he_conv(keys[0], 1, 1, in_planes, planes),
        "bn1": _bn_fold(keys[1], planes),
        "w2": _he_conv(keys[2], 3, 3, planes, planes),
        "bn2": _bn_fold(keys[3], planes),
        "w3": _he_conv(keys[4], 1, 1, planes, EXPANSION * planes),
        "bn3": _bn_fold(keys[5], EXPANSION * planes),
    }
    if stride != 1 or in_planes != EXPANSION * planes:
        p["wsc"] = _he_conv(keys[6], 1, 1, in_planes, EXPANSION * planes)
        p["bnsc"] = _bn_fold(keys[7], EXPANSION * planes)
    return p


# -------------------------- pure-JAX reference (f32) --------------------------
def _reference_forward(params, x_nchw, stride):
    x = jnp.transpose(x_nchw, (0, 2, 3, 1))

    def conv(inp, w, s, pad):
        return jax.lax.conv_general_dilated(
            inp, w, (s, s), pad,
            dimension_numbers=("NHWC", "HWIO", "NHWC"),
            precision=jax.lax.Precision.HIGHEST)

    def bn(inp, sb):
        return inp * sb[0] + sb[1]

    out = jax.nn.relu(bn(conv(x, params["w1"], 1, [(0, 0), (0, 0)]),
                         params["bn1"]))
    out = jax.nn.relu(bn(conv(out, params["w2"], stride, [(1, 1), (1, 1)]),
                         params["bn2"]))
    out = bn(conv(out, params["w3"], 1, [(0, 0), (0, 0)]), params["bn3"])
    sc = x
    if "wsc" in params:
        sc = bn(conv(x, params["wsc"], stride, [(0, 0), (0, 0)]),
                params["bnsc"])
    out = jax.nn.relu(out + sc)
    return jnp.transpose(out, (0, 3, 1, 2))


# ---------------------------------- main --------------------------------------
if __name__ == "__main__":
    key = jax.random.PRNGKey(0)
    pkey, xkey = jax.random.split(key)

    # Lane-dense channel counts (all K/N multiples of 128 -> zero pad copies):
    IN_PLANES, PLANES, STRIDE = 512, 128, 2
    BATCH, H, W = 2, 16, 16

    params = init_bottleneck(pkey, IN_PLANES, PLANES, STRIDE)
    x = jax.random.normal(xkey, (BATCH, IN_PLANES, H, W), jnp.float32)

    y = jax.block_until_ready(bottleneck_apply(params, x, stride=STRIDE))
    assert y.shape == (BATCH, EXPANSION * PLANES, H // STRIDE, W // STRIDE)
    assert bool(jnp.all(jnp.isfinite(y)))

    # Correctness check vs. f32 XLA reference (bf16 operands => loose tol).
    ref = jax.block_until_ready(_reference_forward(params, x, STRIDE))
    err = float(jnp.max(jnp.abs(y - ref)))
    scale = float(jnp.max(jnp.abs(ref))) + 1e-6
    assert err <= 0.08 * scale + 0.05, (err, scale)

    print("KERNEL_OK")
</pallas_src>

<mosaic_0001>
module attributes {stable_mosaic.version = 11 : i64} {
  func.func @_conv1s_kernel(%arg0: i32, %arg1: i32, %arg2: memref<2x8x1x8x1024xbf16, #tpu.memory_space<vmem>>, %arg3: memref<512x256xbf16, #tpu.memory_space<vmem>>, %arg4: memref<1x256xf32, #tpu.memory_space<vmem>>, %arg5: memref<1x256xf32, #tpu.memory_space<vmem>>, %arg6: memref<128x256xbf16, #tpu.memory_space<vmem>>) attributes {dimension_semantics = [#tpu.dimension_semantics<parallel>, #tpu.dimension_semantics<parallel>], iteration_bounds = array<i64: 1, 2>, scalar_prefetch = 0 : i64, scratch_operands = 0 : i64, tpu.core_type = #tpu.core_type<tc>, window_params = [{transform_indices = @transform_0, window_bounds = array<i64: 2, 8, 1, 8, 1024>}, {transform_indices = @transform_1, window_bounds = array<i64: 512, 256>}, {transform_indices = @transform_2, window_bounds = array<i64: 1, 256>}, {transform_indices = @transform_3, window_bounds = array<i64: 1, 256>}, {transform_indices = @transform_4, window_bounds = array<i64: 128, 256>}]} {
    %c0 = arith.constant 0 : index
    %c0_0 = arith.constant 0 : index
    %c0_1 = arith.constant 0 : index
    %c0_2 = arith.constant 0 : index
    %c0_3 = arith.constant 0 : index
    %0 = vector.load %arg2[%c0, %c0_0, %c0_1, %c0_2, %c0_3] : memref<2x8x1x8x1024xbf16, #tpu.memory_space<vmem>>, vector<2x8x1x8x512xbf16>
    %1 = vector.shape_cast %0 : vector<2x8x1x8x512xbf16> to vector<2x8x8x512xbf16>
    %2 = vector.shape_cast %1 : vector<2x8x8x512xbf16> to vector<128x512xbf16>
    %c0_4 = arith.constant 0 : index
    %c0_5 = arith.constant 0 : index
    %3 = vector.load %arg3[%c0_4, %c0_5] : memref<512x256xbf16, #tpu.memory_space<vmem>>, vector<512x256xbf16>
    %cst = arith.constant dense<0.000000e+00> : vector<128x256xf32>
    %4 = tpu.matmul %2, %3, %cst {dimension_numbers = #tpu.dot_dimension_numbers<[1], [0], [0], [1], [0, 0, 1, 1], [], []>} : vector<128x512xbf16>, vector<512x256xbf16>, vector<128x256xf32> -> vector<128x256xf32>
    %c0_6 = arith.constant 0 : index
    %c0_7 = arith.constant 0 : index
    %5 = vector.load %arg4[%c0_6, %c0_7] : memref<1x256xf32, #tpu.memory_space<vmem>>, vector<1x256xf32>
    %6 = vector.broadcast %5 : vector<1x256xf32> to vector<128x256xf32>
    %7 = arith.mulf %4, %6 : vector<128x256xf32>
    %c0_8 = arith.constant 0 : index
    %c0_9 = arith.constant 0 : index
    %8 = vector.load %arg5[%c0_8, %c0_9] : memref<1x256xf32, #tpu.memory_space<vmem>>, vector<1x256xf32>
    %9 = vector.broadcast %8 : vector<1x256xf32> to vector<128x256xf32>
    %10 = arith.addf %7, %9 : vector<128x256xf32>
    %11 = arith.truncf %10 : vector<128x256xf32> to vector<128x256xbf16>
    %c0_10 = arith.constant 0 : index
    %c0_11 = arith.constant 0 : index
    %12 = vector.load %arg6[%c0_10, %c0_11] : memref<128x256xbf16, #tpu.memory_space<vmem>>, vector<128x256xbf16>
    tpu.vector_store %arg6[%c0_10, %c0_11], %11 {strides = array<i32>} : memref<128x256xbf16, #tpu.memory_space<vmem>>, vector<128x256xbf16>,
    return
  }
  func.func @transform_0(%arg0: i32, %arg1: i32) -> (i32, i32, i32, i32, i32) {
    %c0_i32 = arith.constant 0 : i32
    %c0_i32_0 = arith.constant 0 : i32
    %c0_i32_1 = arith.constant 0 : i32
    %c0_i32_2 = arith.constant 0 : i32
    %c0_i32_3 = arith.constant 0 : i32
    return %arg0, %c0_i32, %c0_i32_0, %c0_i32_1, %c0_i32_2 : i32, i32, i32, i32, i32
  }
  func.func @transform_1(%arg0: i32, %arg1: i32) -> (i32, i32) {
    %c0_i32 = arith.constant 0 : i32
    %c0_i32_0 = arith.constant 0 : i32
    return %c0_i32, %arg1 : i32, i32
  }
  func.func @transform_2(%arg0: i32, %arg1: i32) -> (i32, i32) {
    %c0_i32 = arith.constant 0 : i32
    %c0_i32_0 = arith.constant 0 : i32
    return %c0_i32, %arg1 : i32, i32
  }
  func.func @transform_3(%arg0: i32, %arg1: i32) -> (i32, i32) {
    %c0_i32 = arith.constant 0 : i32
    %c0_i32_0 = arith.constant 0 : i32
    return %c0_i32, %arg1 : i32, i32
  }
  func.func @transform_4(%arg0: i32, %arg1: i32) -> (i32, i32) {
    %c0_i32 = arith.constant 0 : i32
    return %arg0, %arg1 : i32, i32
  }
}

module attributes {stable_mosaic.version = 11 : i64} {
  func.func @kernel(%arg0: i32, %arg1: i32, %arg2: i32, %arg3: memref<512x512xbf16, #tpu.memory_space<vmem>>, %arg4: memref<512x128xbf16, #tpu.memory_space<vmem>>, %arg5: memref<1x128xf32, #tpu.memory_space<vmem>>, %arg6: memref<1x128xf32, #tpu.memory_space<vmem>>, %arg7: memref<512x128xbf16, #tpu.memory_space<vmem>>, %arg8: memref<512x128xf32, #tpu.memory_space<vmem>>) attributes {dimension_semantics = [#tpu.dimension_semantics<parallel>, #tpu.dimension_semantics<parallel>, #tpu.dimension_semantics<arbitrary>], iteration_bounds = array<i64: 1, 1, 1>, scalar_prefetch = 0 : i64, scratch_operands = 1 : i64, tpu.core_type = #tpu.core_type<tc>, window_params = [{transform_indices = @transform_0, window_bounds = array<i64: 512, 512>}, {transform_indices = @transform_1, window_bounds = array<i64: 512, 128>}, {transform_indices = @transform_2, window_bounds = array<i64: 1, 128>}, {transform_indices = @transform_3, window_bounds = array<i64: 1, 128>}, {transform_indices = @transform_4, window_bounds = array<i64: 512, 128>}]} {
    %c0_i32 = arith.constant 0 : i32
    %0 = arith.cmpi eq, %arg2, %c0_i32 : i32
    %1 = arith.extui %0 : i1 to i32
    %c0_i32_0 = arith.constant 0 : i32
    %2 = arith.cmpi ne, %1, %c0_i32_0 : i32
    scf.if %2 {
      %cst_10 = arith.constant 0.000000e+00 : f32
      %12 = vector.broadcast %cst_10 : f32 to vector<512x128xf32>
      %c0_11 = arith.constant 0 : index
      %c0_12 = arith.constant 0 : index
      %13 = vector.load %arg8[%c0_11, %c0_12] : memref<512x128xf32, #tpu.memory_space<vmem>>, vector<512x128xf32>
      tpu.vector_store %arg8[%c0_11, %c0_12], %12 {strides = array<i32>} : memref<512x128xf32, #tpu.memory_space<vmem>>, vector<512x128xf32>,
    } else {
    }
    %c0 = arith.constant 0 : index
    %c0_1 = arith.constant 0 : index
    %3 = vector.load %arg8[%c0, %c0_1] : memref<512x128xf32, #tpu.memory_space<vmem>>, vector<512x128xf32>
    %c0_2 = arith.constant 0 : index
    %c0_3 = arith.constant 0 : index
    %4 = vector.load %arg3[%c0_2, %c0_3] : memref<512x512xbf16, #tpu.memory_space<vmem>>, vector<512x512xbf16>
    %c0_4 = arith.constant 0 : index
    %c0_5 = arith.constant 0 : index
    %5 = vector.load %arg4[%c0_4, %c0_5] : memref<512x128xbf16, #tpu.memory_space<vmem>>, vector<512x128xbf16>
    %cst = arith.constant dense<0.000000e+00> : vector<512x128xf32>
    %6 = tpu.matmul %4, %5, %cst {dimension_numbers = #tpu.dot_dimension_numbers<[1], [0], [0], [1], [0, 0, 1, 1], [], []>} : vector<512x512xbf16>, vector<512x128xbf16>, vector<512x128xf32> -> vector<512x128xf32>
    %7 = arith.addf %3, %6 : vector<512x128xf32>
    %c0_6 = arith.constant 0 : index
    %c0_7 = arith.constant 0 : index
    %8 = vector.load %arg8[%c0_6, %c0_7] : memref<512x128xf32, #tpu.memory_space<vmem>>, vector<512x128xf32>
    tpu.vector_store %arg8[%c0_6, %c0_7], %7 {strides = array<i32>} : memref<512x128xf32, #tpu.memory_space<vmem>>, vector<512x128xf32>,
    %c0_i32_8 = arith.constant 0 : i32
    %9 = arith.cmpi eq, %arg2, %c0_i32_8 : i32
    %10 = arith.extui %9 : i1 to i32
    %c0_i32_9 = arith.constant 0 : i32
    %11 = arith.cmpi ne, %10, %c0_i32_9 : i32
    scf.if %11 {
      %c0_10 = arith.constant 0 : index
      %c0_11 = arith.constant 0 : index
      %12 = vector.load %arg8[%c0_10, %c0_11] : memref<512x128xf32, #tpu.memory_space<vmem>>, vector<512x128xf32>
      %c0_12 = arith.constant 0 : index
      %c0_13 = arith.constant 0 : index
      %13 = vector.load %arg5[%c0_12, %c0_13] : memref<1x128xf32, #tpu.memory_space<vmem>>, vector<1x128xf32>
      %14 = vector.broadcast %13 : vector<1x128xf32> to vector<512x128xf32>
      %15 = arith.mulf %12, %14 : vector<512x128xf32>
      %c0_14 = arith.constant 0 : index
      %c0_15 = arith.constant 0 : index
      %16 = vector.load %arg6[%c0_14, %c0_15] : memref<1x128xf32, #tpu.memory_space<vmem>>, vector<1x128xf32>
      %17 = vector.broadcast %16 : vector<1x128xf32> to vector<512x128xf32>
      %18 = arith.addf %15, %17 : vector<512x128xf32>
      %cst_16 = arith.constant 0.000000e+00 : f32
      %19 = vector.broadcast %cst_16 : f32 to vector<512x128xf32>
      %20 = arith.maximumf %18, %19 : vector<512x128xf32>
      %21 = arith.truncf %20 : vector<512x128xf32> to vector<512x128xbf16>
      %c0_17 = arith.constant 0 : index
      %c0_18 = arith.constant 0 : index
      %22 = vector.load %arg7[%c0_17, %c0_18] : memref<512x128xbf16, #tpu.memory_space<vmem>>, vector<512x128xbf16>
      tpu.vector_store %arg7[%c0_17, %c0_18], %21 {strides = array<i32>} : memref<512x128xbf16, #tpu.memory_space<vmem>>, vector<512x128xbf16>,
    } else {
    }
    return
  }
  func.func @transform_0(%arg0: i32, %arg1: i32, %arg2: i32) -> (i32, i32) {
    %c0_i32 = arith.constant 0 : i32
    return %arg0, %arg2 : i32, i32
  }
  func.func @transform_1(%arg0: i32, %arg1: i32, %arg2: i32) -> (i32, i32) {
    %c0_i32 = arith.constant 0 : i32
    return %arg2, %arg1 : i32, i32
  }
  func.func @transform_2(%arg0: i32, %arg1: i32, %arg2: i32) -> (i32, i32) {
    %c0_i32 = arith.constant 0 : i32
    %c0_i32_0 = arith.constant 0 : i32
    return %c0_i32, %arg1 : i32, i32
  }
  func.func @transform_3(%arg0: i32, %arg1: i32, %arg2: i32) -> (i32, i32) {
    %c0_i32 = arith.constant 0 : i32
    %c0_i32_0 = arith.constant 0 : i32
    return %c0_i32, %arg1 : i32, i32
  }
  func.func @transform_4(%arg0: i32, %arg1: i32, %arg2: i32) -> (i32, i32) {
    %c0_i32 = arith.constant 0 : i32
    return %arg0, %arg1 : i32, i32
  }
}

module attributes {stable_mosaic.version = 11 : i64} {
  func.func @_conv3_kernel(%arg0: i32, %arg1: i32, %arg2: memref<2x9x2x9x256xbf16, #tpu.memory_space<vmem>>, %arg3: memref<3x384x128xbf16, #tpu.memory_space<vmem>>, %arg4: memref<1x128xf32, #tpu.memory_space<vmem>>, %arg5: memref<1x128xf32, #tpu.memory_space<vmem>>, %arg6: memref<2x64x128xbf16, #tpu.memory_space<vmem>>) attributes {dimension_semantics = [#tpu.dimension_semantics<parallel>, #tpu.dimension_semantics<parallel>], iteration_bounds = array<i64: 1, 1>, scalar_prefetch = 0 : i64, scratch_operands = 0 : i64, tpu.core_type = #tpu.core_type<tc>, window_params = [{transform_indices = @transform_0, window_bounds = array<i64: 2, 9, 2, 9, 256>}, {transform_indices = @transform_1, window_bounds = array<i64: 3, 384, 128>}, {transform_indices = @transform_2, window_bounds = array<i64: 1, 128>}, {transform_indices = @transform_3, window_bounds = array<i64: 1, 128>}, {transform_indices = @transform_4, window_bounds = array<i64: 2, 64, 128>}]} {
    %c0 = arith.constant 0 : index
    %c0_0 = arith.constant 0 : index
    %c0_1 = arith.constant 0 : index
    %c0_2 = arith.constant 0 : index
    %c0_3 = arith.constant 0 : index
    %0 = vector.load %arg2[%c0, %c0_0, %c0_1, %c0_2, %c0_3] : memref<2x9x2x9x256xbf16, #tpu.memory_space<vmem>>, vector<2x8x1x8x128xbf16>
    %1 = vector.shape_cast %0 : vector<2x8x1x8x128xbf16> to vector<2x8x8x128xbf16>
    %2 = vector.shape_cast %1 : vector<2x8x8x128xbf16> to vector<128x128xbf16>
    %c0_4 = arith.constant 0 : index
    %c0_5 = arith.constant 0 : index
    %c0_6 = arith.constant 0 : index
    %3 = vector.load %arg3[%c0_4, %c0_5, %c0_6] : memref<3x384x128xbf16, #tpu.memory_space<vmem>>, vector<1x128x128xbf16>
    %4 = vector.shape_cast %3 : vector<1x128x128xbf16> to vector<128x128xbf16>
    %cst = arith.constant dense<0.000000e+00> : vector<128x128xf32>
    %5 = tpu.matmul %2, %4, %cst {dimension_numbers = #tpu.dot_dimension_numbers<[1], [0], [0], [1], [0, 0, 1, 1], [], []>} : vector<128x128xbf16>, vector<128x128xbf16>, vector<128x128xf32> -> vector<128x128xf32>
    %c0_7 = arith.constant 0 : index
    %c0_8 = arith.constant 0 : index
    %c0_9 = arith.constant 0 : index
    %c0_10 = arith.constant 0 : index
    %c128 = arith.constant 128 : index
    %6 = vector.load %arg2[%c0_7, %c0_8, %c0_9, %c0_10, %c128] : memref<2x9x2x9x256xbf16, #tpu.memory_space<vmem>>, vector<2x8x1x8x128xbf16>
    %7 = vector.shape_cast %6 : vector<2x8x1x8x128xbf16> to vector<2x8x8x128xbf16>
    %8 = vector.shape_cast %7 : vector<2x8x8x128xbf16> to vector<128x128xbf16>
    %c0_11 = arith.constant 0 : index
    %c128_12 = arith.constant 128 : index
    %c0_13 = arith.constant 0 : index
    %9 = vector.load %arg3[%c0_11, %c128_12, %c0_13] : memref<3x384x128xbf16, #tpu.memory_space<vmem>>, vector<1x128x128xbf16>
    %10 = vector.shape_cast %9 : vector<1x128x128xbf16> to vector<128x128xbf16>
    %cst_14 = arith.constant dense<0.000000e+00> : vector<128x128xf32>
    %11 = tpu.matmul %8, %10, %cst_14 {dimension_numbers = #tpu.dot_dimension_numbers<[1], [0], [0], [1], [0, 0, 1, 1], [], []>} : vector<128x128xbf16>, vector<128x128xbf16>, vector<128x128xf32> -> vector<128x128xf32>
    %12 = arith.addf %5, %11 : vector<128x128xf32>
    %c0_15 = arith.constant 0 : index
    %c0_16 = arith.constant 0 : index
    %c0_17 = arith.constant 0 : index
    %c1 = arith.constant 1 : index
    %c0_18 = arith.constant 0 : index
    %13 = vector.load %arg2[%c0_15, %c0_16, %c0_17, %c1, %c0_18] : memref<2x9x2x9x256xbf16, #tpu.memory_space<vmem>>, vector<2x8x1x8x128xbf16>
    %14 = vector.shape_cast %13 : vector<2x8x1x8x128xbf16> to vector<2x8x8x128xbf16>
    %15 = vector.shape_cast %14 : vector<2x8x8x128xbf16> to vector<128x128xbf16>
    %c0_19 = arith.constant 0 : index
    %c256 = arith.constant 256 : index
    %c0_20 = arith.constant 0 : index
    %16 = vector.load %arg3[%c0_19, %c256, %c0_20] : memref<3x384x128xbf16, #tpu.memory_space<vmem>>, vector<1x128x128xbf16>
    %17 = vector.shape_cast %16 : vector<1x128x128xbf16> to vector<128x128xbf16>
    %cst_21 = arith.constant dense<0.000000e+00> : vector<128x128xf32>
    %18 = tpu.matmul %15, %17, %cst_21 {dimension_numbers = #tpu.dot_dimension_numbers<[1], [0], [0], [1], [0, 0, 1, 1], [], []>} : vector<128x128xbf16>, vector<128x128xbf16>, vector<128x128xf32> -> vector<128x128xf32>
    %19 = arith.addf %12, %18 : vector<128x128xf32>
    %c0_22 = arith.constant 0 : index
    %c0_23 = arith.constant 0 : index
    %c1_24 = arith.constant 1 : index
    %c0_25 = arith.constant 0 : index
    %c0_26 = arith.constant 0 : index
    %20 = vector.load %arg2[%c0_22, %c0_23, %c1_24, %c0_25, %c0_26] : memref<2x9x2x9x256xbf16, #tpu.memory_space<vmem>>, vector<2x8x1x8x128xbf16>
    %21 = vector.shape_cast %20 : vector<2x8x1x8x128xbf16> to vector<2x8x8x128xbf16>
    %22 = vector.shape_cast %21 : vector<2x8x8x128xbf16> to vector<128x128xbf16>
    %c1_27 = arith.constant 1 : index
    %c0_28 = arith.constant 0 : index
    %c0_29 = arith.constant 0 : index
    %23 = vector.load %arg3[%c1_27, %c0_28, %c0_29] : memref<3x384x128xbf16, #tpu.memory_space<vmem>>, vector<1x128x128xbf16>
    %24 = vector.shape_cast %23 : vector<1x128x128xbf16> to vector<128x128xbf16>
    %cst_30 = arith.constant dense<0.000000e+00> : vector<128x128xf32>
    %25 = tpu.matmul %22, %24, %cst_30 {dimension_numbers = #tpu.dot_dimension_numbers<[1], [0], [0], [1], [0, 0, 1, 1], [], []>} : vector<128x128xbf16>, vector<128x128xbf16>, vector<128x128xf32> -> vector<128x128xf32>
    %26 = arith.addf %19, %25 : vector<128x128xf32>
    %c0_31 = arith.constant 0 : index
    %c0_32 = arith.constant 0 : index
    %c1_33 = arith.constant 1 : index
    %c0_34 = arith.constant 0 : index
    %c128_35 = arith.constant 128 : index
    %27 = vector.load %arg2[%c0_31, %c0_32, %c1_33, %c0_34, %c128_35] : memref<2x9x2x9x256xbf16, #tpu.memory_space<vmem>>, vector<2x8x1x8x128xbf16>
    %28 = vector.shape_cast %27 : vector<2x8x1x8x128xbf16> to vector<2x8x8x128xbf16>
    %29 = vector.shape_cast %28 : vector<2x8x8x128xbf16> to vector<128x128xbf16>
    %c1_36 = arith.constant 1 : index
    %c128_37 = arith.constant 128 : index
    %c0_38 = arith.constant 0 : index
    %30 = vector.load %arg3[%c1_36, %c128_37, %c0_38] : memref<3x384x128xbf16, #tpu.memory_space<vmem>>, vector<1x128x128xbf16>
    %31 = vector.shape_cast %30 : vector<1x128x128xbf16> to vector<128x128xbf16>
    %cst_39 = arith.constant dense<0.000000e+00> : vector<128x128xf32>
    %32 = tpu.matmul %29, %31, %cst_39 {dimension_numbers = #tpu.dot_dimension_numbers<[1], [0], [0], [1], [0, 0, 1, 1], [], []>} : vector<128x128xbf16>, vector<128x128xbf16>, vector<128x128xf32> -> vector<128x128xf32>
    %33 = arith.addf %26, %32 : vector<128x128xf32>
    %c0_40 = arith.constant 0 : index
    %c0_41 = arith.constant 0 : index
    %c1_42 = arith.constant 1 : index
    %c1_43 = arith.constant 1 : index
    %c0_44 = arith.constant 0 : index
    %34 = vector.load %arg2[%c0_40, %c0_41, %c1_42, %c1_43, %c0_44] : memref<2x9x2x9x256xbf16, #tpu.memory_space<vmem>>, vector<2x8x1x8x128xbf16>
    %35 = vector.shape_cast %34 : vector<2x8x1x8x128xbf16> to vector<2x8x8x128xbf16>
    %36 = vector.shape_cast %35 : vector<2x8x8x128xbf16> to vector<128x128xbf16>
    %c1_45 = arith.constant 1 : index
    %c256_46 = arith.constant 256 : index
    %c0_47 = arith.constant 0 : index
    %37 = vector.load %arg3[%c1_45, %c256_46, %c0_47] : memref<3x384x128xbf16, #tpu.memory_space<vmem>>, vector<1x128x128xbf16>
    %38 = vector.shape_cast %37 : vector<1x128x128xbf16> to vector<128x128xbf16>
    %cst_48 = arith.constant dense<0.000000e+00> : vector<128x128xf32>
    %39 = tpu.matmul %36, %38, %cst_48 {dimension_numbers = #tpu.dot_dimension_numbers<[1], [0], [0], [1], [0, 0, 1, 1], [], []>} : vector<128x128xbf16>, vector<128x128xbf16>, vector<128x128xf32> -> vector<128x128xf32>
    %40 = arith.addf %33, %39 : vector<128x128xf32>
    %c0_49 = arith.constant 0 : index
    %c1_50 = arith.constant 1 : index
    %c0_51 = arith.constant 0 : index
    %c0_52 = arith.constant 0 : index
    %c0_53 = arith.constant 0 : index
    %41 = vector.load %arg2[%c0_49, %c1_50, %c0_51, %c0_52, %c0_53] : memref<2x9x2x9x256xbf16, #tpu.memory_space<vmem>>, vector<2x8x1x8x128xbf16>
    %42 = vector.shape_cast %41 : vector<2x8x1x8x128xbf16> to vector<2x8x8x128xbf16>
    %43 = vector.shape_cast %42 : vector<2x8x8x128xbf16> to vector<128x128xbf16>
    %c2 = arith.constant 2 : index
    %c0_54 = arith.constant 0 : index
    %c0_55 = arith.constant 0 : index
    %44 = vector.load %arg3[%c2, %c0_54, %c0_55] : memref<3x384x128xbf16, #tpu.memory_space<vmem>>, vector<1x128x128xbf16>
    %45 = vector.shape_cast %44 : vector<1x128x128xbf16> to vector<128x128xbf16>
    %cst_56 = arith.constant dense<0.000000e+00> : vector<128x128xf32>
    %46 = tpu.matmul %43, %45, %cst_56 {dimension_numbers = #tpu.dot_dimension_numbers<[1], [0], [0], [1], [0, 0, 1, 1], [], []>} : vector<128x128xbf16>, vector<128x128xbf16>, vector<128x128xf32> -> vector<128x128xf32>
    %47 = arith.addf %40, %46 : vector<128x128xf32>
    %c0_57 = arith.constant 0 : index
    %c1_58 = arith.constant 1 : index
    %c0_59 = arith.constant 0 : index
    %c0_60 = arith.constant 0 : index
    %c128_61 = arith.constant 128 : index
    %48 = vector.load %arg2[%c0_57, %c1_58, %c0_59, %c0_60, %c128_61] : memref<2x9x2x9x256xbf16, #tpu.memory_space<vmem>>, vector<2x8x1x8x128xbf16>
    %49 = vector.shape_cast %48 : vector<2x8x1x8x128xbf16> to vector<2x8x8x128xbf16>
    %50 = vector.shape_cast %49 : vector<2x8x8x128xbf16> to vector<128x128xbf16>
    %c2_62 = arith.constant 2 : index
    %c128_63 = arith.constant 128 : index
    %c0_64 = arith.constant 0 : index
    %51 = vector.load %arg3[%c2_62, %c128_63, %c0_64] : memref<3x384x128xbf16, #tpu.memory_space<vmem>>, vector<1x128x128xbf16>
    %52 = vector.shape_cast %51 : vector<1x128x128xbf16> to vector<128x128xbf16>
    %cst_65 = arith.constant dense<0.000000e+00> : vector<128x128xf32>
    %53 = tpu.matmul %50, %52, %cst_65 {dimension_numbers = #tpu.dot_dimension_numbers<[1], [0], [0], [1], [0, 0, 1, 1], [], []>} : vector<128x128xbf16>, vector<128x128xbf16>, vector<128x128xf32> -> vector<128x128xf32>
    %54 = arith.addf %47, %53 : vector<128x128xf32>
    %c0_66 = arith.constant 0 : index
    %c1_67 = arith.constant 1 : index
    %c0_68 = arith.constant 0 : index
    %c1_69 = arith.constant 1 : index
    %c0_70 = arith.constant 0 : index
    %55 = vector.load %arg2[%c0_66, %c1_67, %c0_68, %c1_69, %c0_70] : memref<2x9x2x9x256xbf16, #tpu.memory_space<vmem>>, vector<2x8x1x8x128xbf16>
    %56 = vector.shape_cast %55 : vector<2x8x1x8x128xbf16> to vector<2x8x8x128xbf16>
    %57 = vector.shape_cast %56 : vector<2x8x8x128xbf16> to vector<128x128xbf16>
    %c2_71 = arith.constant 2 : index
    %c256_72 = arith.constant 256 : index
    %c0_73 = arith.constant 0 : index
    %58 = vector.load %arg3[%c2_71, %c256_72, %c0_73] : memref<3x384x128xbf16, #tpu.memory_space<vmem>>, vector<1x128x128xbf16>
    %59 = vector.shape_cast %58 : vector<1x128x128xbf16> to vector<128x128xbf16>
    %cst_74 = arith.constant dense<0.000000e+00> : vector<128x128xf32>
    %60 = tpu.matmul %57, %59, %cst_74 {dimension_numbers = #tpu.dot_dimension_numbers<[1], [0], [0], [1], [0, 0, 1, 1], [], []>} : vector<128x128xbf16>, vector<128x128xbf16>, vector<128x128xf32> -> vector<128x128xf32>
    %61 = arith.addf %54, %60 : vector<128x128xf32>
    %c0_75 = arith.constant 0 : index
    %c0_76 = arith.constant 0 : index
    %62 = vector.load %arg4[%c0_75, %c0_76] : memref<1x128xf32, #tpu.memory_space<vmem>>, vector<1x128xf32>
    %63 = vector.broadcast %62 : vector<1x128xf32> to vector<128x128xf32>
    %64 = arith.mulf %61, %63 : vector<128x128xf32>
    %c0_77 = arith.constant 0 : index
    %c0_78 = arith.constant 0 : index
    %65 = vector.load %arg5[%c0_77, %c0_78] : memref<1x128xf32, #tpu.memory_space<vmem>>, vector<1x128xf32>
    %66 = vector.broadcast %65 : vector<1x128xf32> to vector<128x128xf32>
    %67 = arith.addf %64, %66 : vector<128x128xf32>
    %cst_79 = arith.constant 0.000000e+00 : f32
    %68 = vector.broadcast %cst_79 : f32 to vector<128x128xf32>
    %69 = arith.maximumf %67, %68 : vector<128x128xf32>
    %70 = vector.shape_cast %69 : vector<128x128xf32> to vector<2x64x128xf32>
    %71 = arith.truncf %70 : vector<2x64x128xf32> to vector<2x64x128xbf16>
    %c0_80 = arith.constant 0 : index
    %c0_81 = arith.constant 0 : index
    %c0_82 = arith.constant 0 : index
    %72 = vector.load %arg6[%c0_80, %c0_81, %c0_82] : memref<2x64x128xbf16, #tpu.memory_space<vmem>>, vector<2x64x128xbf16>
    tpu.vector_store %arg6[%c0_80, %c0_81, %c0_82], %71 {strides = array<i32>} : memref<2x64x128xbf16, #tpu.memory_space<vmem>>, vector<2x64x128xbf16>,
    return
  }
  func.func @transform_0(%arg0: i32, %arg1: i32) -> (i32, i32, i32, i32, i32) {
    %c0_i32 = arith.constant 0 : i32
    %c0_i32_0 = arith.constant 0 : i32
    %c0_i32_1 = arith.constant 0 : i32
    %c0_i32_2 = arith.constant 0 : i32
    %c0_i32_3 = arith.constant 0 : i32
    return %arg0, %c0_i32, %c0_i32_0, %c0_i32_1, %c0_i32_2 : i32, i32, i32, i32, i32
  }
  func.func @transform_1(%arg0: i32, %arg1: i32) -> (i32, i32, i32) {
    %c0_i32 = arith.constant 0 : i32
    %c0_i32_0 = arith.constant 0 : i32
    %c0_i32_1 = arith.constant 0 : i32
    return %c0_i32, %c0_i32_0, %arg1 : i32, i32, i32
  }
  func.func @transform_2(%arg0: i32, %arg1: i32) -> (i32, i32) {
    %c0_i32 = arith.constant 0 : i32
    %c0_i32_0 = arith.constant 0 : i32
    return %c0_i32, %arg1 : i32, i32
  }
  func.func @transform_3(%arg0: i32, %arg1: i32) -> (i32, i32) {
    %c0_i32 = arith.constant 0 : i32
    %c0_i32_0 = arith.constant 0 : i32
    return %c0_i32, %arg1 : i32, i32
  }
  func.func @transform_4(%arg0: i32, %arg1: i32) -> (i32, i32, i32) {
    %c0_i32 = arith.constant 0 : i32
    %c0_i32_0 = arith.constant 0 : i32
    return %arg0, %c0_i32, %arg1 : i32, i32, i32
  }
}

module attributes {stable_mosaic.version = 11 : i64} {
  func.func @kernel(%arg0: i32, %arg1: i32, %arg2: i32, %arg3: memref<128x128xbf16, #tpu.memory_space<vmem>>, %arg4: memref<128x512xbf16, #tpu.memory_space<vmem>>, %arg5: memref<1x512xf32, #tpu.memory_space<vmem>>, %arg6: memref<1x512xf32, #tpu.memory_space<vmem>>, %arg7: memref<128x512xbf16, #tpu.memory_space<vmem>>, %arg8: memref<128x512xf32, #tpu.memory_space<vmem>>, %arg9: memref<128x512xf32, #tpu.memory_space<vmem>>) attributes {dimension_semantics = [#tpu.dimension_semantics<parallel>, #tpu.dimension_semantics<parallel>, #tpu.dimension_semantics<arbitrary>], iteration_bounds = array<i64: 1, 1, 1>, scalar_prefetch = 0 : i64, scratch_operands = 1 : i64, tpu.core_type = #tpu.core_type<tc>, window_params = [{transform_indices = @transform_0, window_bounds = array<i64: 128, 128>}, {transform_indices = @transform_1, window_bounds = array<i64: 128, 512>}, {transform_indices = @transform_2, window_bounds = array<i64: 1, 512>}, {transform_indices = @transform_3, window_bounds = array<i64: 1, 512>}, {transform_indices = @transform_4, window_bounds = array<i64: 128, 512>}, {transform_indices = @transform_5, window_bounds = array<i64: 128, 512>}]} {
    %c0_i32 = arith.constant 0 : i32
    %0 = arith.cmpi eq, %arg2, %c0_i32 : i32
    %1 = arith.extui %0 : i1 to i32
    %c0_i32_0 = arith.constant 0 : i32
    %2 = arith.cmpi ne, %1, %c0_i32_0 : i32
    scf.if %2 {
      %cst_10 = arith.constant 0.000000e+00 : f32
      %12 = vector.broadcast %cst_10 : f32 to vector<128x512xf32>
      %c0_11 = arith.constant 0 : index
      %c0_12 = arith.constant 0 : index
      %13 = vector.load %arg9[%c0_11, %c0_12] : memref<128x512xf32, #tpu.memory_space<vmem>>, vector<128x512xf32>
      tpu.vector_store %arg9[%c0_11, %c0_12], %12 {strides = array<i32>} : memref<128x512xf32, #tpu.memory_space<vmem>>, vector<128x512xf32>,
    } else {
    }
    %c0 = arith.constant 0 : index
    %c0_1 = arith.constant 0 : index
    %3 = vector.load %arg9[%c0, %c0_1] : memref<128x512xf32, #tpu.memory_space<vmem>>, vector<128x512xf32>
    %c0_2 = arith.constant 0 : index
    %c0_3 = arith.constant 0 : index
    %4 = vector.load %arg3[%c0_2, %c0_3] : memref<128x128xbf16, #tpu.memory_space<vmem>>, vector<128x128xbf16>
    %c0_4 = arith.constant 0 : index
    %c0_5 = arith.constant 0 : index
    %5 = vector.load %arg4[%c0_4, %c0_5] : memref<128x512xbf16, #tpu.memory_space<vmem>>, vector<128x512xbf16>
    %cst = arith.constant dense<0.000000e+00> : vector<128x512xf32>
    %6 = tpu.matmul %4, %5, %cst {dimension_numbers = #tpu.dot_dimension_numbers<[1], [0], [0], [1], [0, 0, 1, 1], [], []>} : vector<128x128xbf16>, vector<128x512xbf16>, vector<128x512xf32> -> vector<128x512xf32>
    %7 = arith.addf %3, %6 : vector<128x512xf32>
    %c0_6 = arith.constant 0 : index
    %c0_7 = arith.constant 0 : index
    %8 = vector.load %arg9[%c0_6, %c0_7] : memref<128x512xf32, #tpu.memory_space<vmem>>, vector<128x512xf32>
    tpu.vector_store %arg9[%c0_6, %c0_7], %7 {strides = array<i32>} : memref<128x512xf32, #tpu.memory_space<vmem>>, vector<128x512xf32>,
    %c0_i32_8 = arith.constant 0 : i32
    %9 = arith.cmpi eq, %arg2, %c0_i32_8 : i32
    %10 = arith.extui %9 : i1 to i32
    %c0_i32_9 = arith.constant 0 : i32
    %11 = arith.cmpi ne, %10, %c0_i32_9 : i32
    scf.if %11 {
      %c0_10 = arith.constant 0 : index
      %c0_11 = arith.constant 0 : index
      %12 = vector.load %arg9[%c0_10, %c0_11] : memref<128x512xf32, #tpu.memory_space<vmem>>, vector<128x512xf32>
      %c0_12 = arith.constant 0 : index
      %c0_13 = arith.constant 0 : index
      %13 = vector.load %arg5[%c0_12, %c0_13] : memref<1x512xf32, #tpu.memory_space<vmem>>, vector<1x512xf32>
      %14 = vector.broadcast %13 : vector<1x512xf32> to vector<128x512xf32>
      %15 = arith.mulf %12, %14 : vector<128x512xf32>
      %c0_14 = arith.constant 0 : index
      %c0_15 = arith.constant 0 : index
      %16 = vector.load %arg6[%c0_14, %c0_15] : memref<1x512xf32, #tpu.memory_space<vmem>>, vector<1x512xf32>
      %17 = vector.broadcast %16 : vector<1x512xf32> to vector<128x512xf32>
      %18 = arith.addf %15, %17 : vector<128x512xf32>
      %c0_16 = arith.constant 0 : index
      %c0_17 = arith.constant 0 : index
      %19 = vector.load %arg7[%c0_16, %c0_17] : memref<128x512xbf16, #tpu.memory_space<vmem>>, vector<128x512xbf16>
      %20 = arith.extf %19 : vector<128x512xbf16> to vector<128x512xf32>
      %21 = arith.addf %18, %20 : vector<128x512xf32>
      %cst_18 = arith.constant 0.000000e+00 : f32
      %22 = vector.broadcast %cst_18 : f32 to vector<128x512xf32>
      %23 = arith.maximumf %21, %22 : vector<128x512xf32>
      %c0_19 = arith.constant 0 : index
      %c0_20 = arith.constant 0 : index
      %24 = vector.load %arg8[%c0_19, %c0_20] : memref<128x512xf32, #tpu.memory_space<vmem>>, vector<128x512xf32>
      tpu.vector_store %arg8[%c0_19, %c0_20], %23 {strides = array<i32>} : memref<128x512xf32, #tpu.memory_space<vmem>>, vector<128x512xf32>,
    } else {
    }
    return
  }
  func.func @transform_0(%arg0: i32, %arg1: i32, %arg2: i32) -> (i32, i32) {
    %c0_i32 = arith.constant 0 : i32
    return %arg0, %arg2 : i32, i32
  }
  func.func @transform_1(%arg0: i32, %arg1: i32, %arg2: i32) -> (i32, i32) {
    %c0_i32 = arith.constant 0 : i32
    return %arg2, %arg1 : i32, i32
  }
  func.func @transform_2(%arg0: i32, %arg1: i32, %arg2: i32) -> (i32, i32) {
    %c0_i32 = arith.constant 0 : i32
    %c0_i32_0 = arith.constant 0 : i32
    return %c0_i32, %arg1 : i32, i32
  }
  func.func @transform_3(%arg0: i32, %arg1: i32, %arg2: i32) -> (i32, i32) {
    %c0_i32 = arith.constant 0 : i32
    %c0_i32_0 = arith.constant 0 : i32
    return %c0_i32, %arg1 : i32, i32
  }
  func.func @transform_4(%arg0: i32, %arg1: i32, %arg2: i32) -> (i32, i32) {
    %c0_i32 = arith.constant 0 : i32
    return %arg0, %arg1 : i32, i32
  }
  func.func @transform_5(%arg0: i32, %arg1: i32, %arg2: i32) -> (i32, i32) {
    %c0_i32 = arith.constant 0 : i32
    return %arg0, %arg1 : i32, i32
  }
}

</mosaic_0001>

<bundles_post_ra>
// kernel: bottleneck_apply.6
= control target key start
LH: loop header
LB: loop body
LE: loop exit
PB: predicated region body
PF: predicated region fallthrough
CT: control target
= control target key end

     0   :  { %s2276_s15 = smov 0   ;;  %s2278_s16 = smov 0   ;;  %s2784_s0 = inlined_call_operand.vmem [shape: bf16[2,8,2,8,1024], index: 0, kind: input, shape index: {}]   ;;  %s2785_s1 = inlined_call_operand.vmem [shape: bf16[512,512], index: 1, kind: input, shape index: {}]   ;;  %s2786_s2 = inlined_call_operand.vmem [shape: f32[1,512], index: 2, kind: input, shape index: {}]   ;;  %s2787_s3 = inlined_call_operand.vmem [shape: f32[1,512], index: 3, kind: input, shape index: {}]   ;;  %s2788_s4 = inlined_call_operand.vmem [shape: bf16[128,512], index: 4, kind: output, shape index: {}]  }
   0x1   :  { %s2280_s17 = smov 0   ;;  %s2282_s18 = smov 0  }
   0x2   :  { %s2284_s19 = smov 0  }
   0x3 LB: > { %s1900_s20 = sadd.s32 4294967295, %s2249_s19   ;;  %s23_s21 = sadd.s32 1, %s2245_s18  ;;  %s2249_s19 = sphi %s2284_s19, %s14_s19   ;;  %s2245_s18 = sphi %s2282_s18, %s2795_s18   ;;  %s2241_s17 = sphi %s2280_s17, %s2794_s17   ;;  %s2237_s16 = sphi %s2278_s16, %s2793_s16   ;;  %s2233_s15 = sphi %s2276_s15, %s2792_s15  }
   0x4   : > { %p24_p0 = scmp.ge.s32.totalorder %s23_s21, 2  ;;  %s59_s22 = sadd.s32 1, %s2237_s16 }
   0x5   : > { %p66_p1 = scmp.ne.s32.totalorder %s2237_s16, %s2233_s15  ;;  %p67_p2 = scmp.eq.s32.totalorder %s2249_s19, 0 }
   0x6   : > { %s2797_s21 = smov (%p24_p0, %s23_s21), 0  ;;  %p150_p4 = scmp.eq.s32.totalorder %s1900_s20, 1 }
   0x7   : > { %p2309_p3 = por %p67_p2, %p66_p1  ;;  %s56_s24 = ssub.s32 %s2245_s18, %s2797_s21 }
   0x8   : > { %p1902_p5 = scmp.ge.s32.totalorder %s2249_s19, 1  ;;  %p57_p6 = scmp.eq.s32.totalorder %s56_s24, 0 }
   0x9   : > { %p2316_p7 = por %p150_p4, %p66_p1  ;;  %p163_p8 = scmp.lt.s32.totalorder %s2249_s19, 3 }
   0xa   : > { %s2322_s26 = scalar_select %p57_p6, %s2237_s16, %s59_s22  }
   0xb   : > { %p2324_p9 = pnand %p1902_p5, %p163_p8 }
   0xc   : > { %p1903_p10 = scmp.ne.s32.totalorder (!%p2324_p9), %s1900_s20, 0 }
   0xd   : > { %167 = sbr.rel (%p2324_p9) target bundleno = 40 (0x28), region = 12 }
  0x12   : > { %171 = sbr.rel (%p1903_p10) target bundleno = 40 (0x28), region = 16 }
  0x17   : > { %v188_v0 = vld [vmem:[%s2784_s0] sm:$0xff]  ;;  %v190_v1 = vld [vmem:[%s2784_s0 + $0x8] sm:$0xff] }
  0x18   : > { %189 = vst [vmem:[#allocation2 + $0xb0] sm:$0xff] %v188_v0  ;;  %191 = vst [vmem:[#allocation2 + $0x1b0] sm:$0xff] %v190_v1  ;;  %v196_v2 = vld [vmem:[%s2784_s0 + $0x40] sm:$0xff]  ;;  %v198_v3 = vld [vmem:[%s2784_s0 + $0x48] sm:$0xff] }
  0x19   : > { %197 = vst [vmem:[#allocation2 + $0x50] sm:$0xff] %v196_v2  ;;  %199 = vst [vmem:[#allocation2 + $0x168] sm:$0xff] %v198_v3  ;;  %v204_v4 = vld [vmem:[%s2784_s0 + $0x80] sm:$0xff]  ;;  %v206_v5 = vld [vmem:[%s2784_s0 + $0x88] sm:$0xff] }
  0x1a   : > { %205 = vst [vmem:[#allocation2 + $0x180] sm:$0xff] %v204_v4  ;;  %207 = vst [vmem:[#allocation2 + $0x110] sm:$0xff] %v206_v5  ;;  %v212_v6 = vld [vmem:[%s2784_s0 + $0xc0] sm:$0xff]  ;;  %v214_v7 = vld [vmem:[%s2784_s0 + $0xc8] sm:$0xff] }
  0x1b   : > { %213 = vst [vmem:[#allocation2 + $0x120] sm:$0xff] %v212_v6  ;;  %215 = vst [vmem:[#allocation2 + $0x150] sm:$0xff] %v214_v7  ;;  %v220_v8 = vld [vmem:[%s2784_s0 + $0x100] sm:$0xff]  ;;  %v222_v9 = vld [vmem:[%s2784_s0 + $0x108] sm:$0xff] }
  0x1c   : > { %221 = vst [vmem:[#allocation2 + $0xe0] sm:$0xff] %v220_v8  ;;  %223 = vst [vmem:[#allocation2 + $0x188] sm:$0xff] %v222_v9  ;;  %v228_v10 = vld [vmem:[%s2784_s0 + $0x140] sm:$0xff]  ;;  %v230_v11 = vld [vmem:[%s2784_s0 + $0x148] sm:$0xff] }
  0x1d   : > { %229 = vst [vmem:[#allocation2 + $0x80] sm:$0xff] %v228_v10  ;;  %231 = vst [vmem:[#allocation2 + $0x1a8] sm:$0xff] %v230_v11  ;;  %v236_v12 = vld [vmem:[%s2784_s0 + $0x180] sm:$0xff]  ;;  %v238_v13 = vld [vmem:[%s2784_s0 + $0x188] sm:$0xff] }
  0x1e   : > { %237 = vst [vmem:[#allocation2 + $0x1e8] sm:$0xff] %v236_v12  ;;  %239 = vst [vmem:[#allocation2 + $0xf8] sm:$0xff] %v238_v13  ;;  %v244_v14 = vld [vmem:[%s2784_s0 + $0x1c0] sm:$0xff]  ;;  %v246_v15 = vld [vmem:[%s2784_s0 + $0x1c8] sm:$0xff] }
  0x1f   : > { %245 = vst [vmem:[#allocation2 + $0x1e0] sm:$0xff] %v244_v14  ;;  %247 = vst [vmem:[#allocation2] sm:$0xff] %v246_v15  ;;  %v252_v16 = vld [vmem:[%s2784_s0 + $0x200] sm:$0xff]  ;;  %v254_v17 = vld [vmem:[%s2784_s0 + $0x208] sm:$0xff] }
  0x20   : > { %253 = vst [vmem:[#allocation2 + $0x148] sm:$0xff] %v252_v16  ;;  %255 = vst [vmem:[#allocation2 + $0x1d0] sm:$0xff] %v254_v17  ;;  %v260_v18 = vld [vmem:[%s2784_s0 + $0x240] sm:$0xff]  ;;  %v262_v19 = vld [vmem:[%s2784_s0 + $0x248] sm:$0xff] }
  0x21   : > { %261 = vst [vmem:[#allocation2 + $0x40] sm:$0xff] %v260_v18  ;;  %263 = vst [vmem:[#allocation2 + $0x1f8] sm:$0xff] %v262_v19  ;;  %v268_v20 = vld [vmem:[%s2784_s0 + $0x280] sm:$0xff]  ;;  %v270_v21 = vld [vmem:[%s2784_s0 + $0x288] sm:$0xff] }
  0x22   : > { %269 = vst [vmem:[#allocation2 + $0x1a0] sm:$0xff] %v268_v20  ;;  %271 = vst [vmem:[#allocation2 + $0x1f0] sm:$0xff] %v270_v21  ;;  %v276_v22 = vld [vmem:[%s2784_s0 + $0x2c0] sm:$0xff]  ;;  %v278_v23 = vld [vmem:[%s2784_s0 + $0x2c8] sm:$0xff] }
  0x23   : > { %277 = vst [vmem:[#allocation2 + $0x70] sm:$0xff] %v276_v22  ;;  %279 = vst [vmem:[#allocation2 + $0x90] sm:$0xff] %v278_v23  ;;  %v284_v24 = vld [vmem:[%s2784_s0 + $0x300] sm:$0xff]  ;;  %v286_v25 = vld [vmem:[%s2784_s0 + $0x308] sm:$0xff] }
  0x24   : > { %285 = vst [vmem:[#allocation2 + $0xb8] sm:$0xff] %v284_v24  ;;  %287 = vst [vmem:[#allocation2 + $0x88] sm:$0xff] %v286_v25  ;;  %v292_v26 = vld [vmem:[%s2784_s0 + $0x340] sm:$0xff]  ;;  %v294_v27 = vld [vmem:[%s2784_s0 + $0x348] sm:$0xff] }
  0x25   : > { %293 = vst [vmem:[#allocation2 + $0x170] sm:$0xff] %v292_v26  ;;  %295 = vst [vmem:[#allocation2 + $0x178] sm:$0xff] %v294_v27  ;;  %v300_v28 = vld [vmem:[%s2784_s0 + $0x380] sm:$0xff]  ;;  %v302_v29 = vld [vmem:[%s2784_s0 + $0x388] sm:$0xff] }
  0x26   : > { %301 = vst [vmem:[#allocation2 + $0x198] sm:$0xff] %v300_v28  ;;  %303 = vst [vmem:[#allocation2 + $0x38] sm:$0xff] %v302_v29  ;;  %v308_v30 = vld [vmem:[%s2784_s0 + $0x3c0] sm:$0xff]  ;;  %v310_v31 = vld [vmem:[%s2784_s0 + $0x3c8] sm:$0xff] }
  0x27   : > { %309 = vst [vmem:[#allocation2 + $0x158] sm:$0xff] %v308_v30  ;;  %311 = vst [vmem:[#allocation2 + $0x10] sm:$0xff] %v310_v31 }
  0x28 PF: > { %p1904_p11 = scmp.ge.s32.totalorder %s2249_s19, 2 }
  0x2a   : > { %322 = sbr.rel (%p1904_p11) target bundleno = 83 (0x53), region = 39 }
  0x2f   : > { %325 = sbr.rel (!%p2309_p3) target bundleno = 83 (0x53), region = 43  ;;  %s327_s28 = sand.u32 (%p2309_p3), 1, %s2237_s16  }
  0x30   : > { %s2030_s29 = sshll.u32 (%p2309_p3), %s2245_s18, 3  ;;  %s1905_s30 = sshll.u32 (%p2309_p3), %s327_s28, 9 }
  0x31   : > { %s2434_s7 = scalar_lea.vmem (%p2309_p3), %s2785_s1, %s2030_s29  ;;  %s2439_s23 = scalar_lea.vmem (%p2309_p3), [#allocation3], %s1905_s30 }
  0x32   : > { %v487_v32 = vld [vmem:[%s2434_s7] sm:$0xff] (%p2309_p3)  ;;  %v489_v33 = vld [vmem:[%s2434_s7 + $0x10] sm:$0xff] (%p2309_p3) }
  0x33   : > { %v491_v34 = vld [vmem:[%s2434_s7 + $0x20] sm:$0xff] (%p2309_p3)  ;;  %488 = vst [vmem:[%s2439_s23] sm:$0xff] (%p2309_p3), %v487_v32  ;;  %490 = vst [vmem:[%s2439_s23 + $0x8] sm:$0xff] (%p2309_p3), %v489_v33  ;;  %v493_v35 = vld [vmem:[%s2434_s7 + $0x30] sm:$0xff] (%p2309_p3) }
  0x34   : > { %492 = vst [vmem:[%s2439_s23 + $0x10] sm:$0xff] %v491_v34  ;;  %v495_v36 = vld [vmem:[%s2434_s7 + $0x40] sm:$0xff]  ;;  %v497_v37 = vld [vmem:[%s2434_s7 + $0x50] sm:$0xff]  ;;  %494 = vst [vmem:[%s2439_s23 + $0x18] sm:$0xff] %v493_v35 }
  0x35   : > { %496 = vst [vmem:[%s2439_s23 + $0x20] sm:$0xff] %v495_v36  ;;  %498 = vst [vmem:[%s2439_s23 + $0x28] sm:$0xff] %v497_v37  ;;  %v499_v38 = vld [vmem:[%s2434_s7 + $0x60] sm:$0xff]  ;;  %v501_v39 = vld [vmem:[%s2434_s7 + $0x70] sm:$0xff] }
  0x36   : > { %v503_v40 = vld [vmem:[%s2434_s7 + $0x80] sm:$0xff]  ;;  %500 = vst [vmem:[%s2439_s23 + $0x30] sm:$0xff] %v499_v38  ;;  %502 = vst [vmem:[%s2439_s23 + $0x38] sm:$0xff] %v501_v39  ;;  %v505_v41 = vld [vmem:[%s2434_s7 + $0x90] sm:$0xff] }
  0x37   : > { %504 = vst [vmem:[%s2439_s23 + $0x40] sm:$0xff] %v503_v40  ;;  %v507_v42 = vld [vmem:[%s2434_s7 + $0xa0] sm:$0xff]  ;;  %v509_v43 = vld [vmem:[%s2434_s7 + $0xb0] sm:$0xff]  ;;  %506 = vst [vmem:[%s2439_s23 + $0x48] sm:$0xff] %v505_v41 }
  0x38   : > { %508 = vst [vmem:[%s2439_s23 + $0x50] sm:$0xff] %v507_v42  ;;  %510 = vst [vmem:[%s2439_s23 + $0x58] sm:$0xff] %v509_v43  ;;  %v511_v44 = vld [vmem:[%s2434_s7 + $0xc0] sm:$0xff]  ;;  %v513_v45 = vld [vmem:[%s2434_s7 + $0xd0] sm:$0xff] }
  0x39   : > { %v515_v46 = vld [vmem:[%s2434_s7 + $0xe0] sm:$0xff]  ;;  %512 = vst [vmem:[%s2439_s23 + $0x60] sm:$0xff] %v511_v44  ;;  %514 = vst [vmem:[%s2439_s23 + $0x68] sm:$0xff] %v513_v45  ;;  %v517_v47 = vld [vmem:[%s2434_s7 + $0xf0] sm:$0xff] }
  0x3a   : > { %516 = vst [vmem:[%s2439_s23 + $0x70] sm:$0xff] %v515_v46  ;;  %v519_v48 = vld [vmem:[%s2434_s7 + $0x100] sm:$0xff]  ;;  %v521_v49 = vld [vmem:[%s2434_s7 + $0x110] sm:$0xff]  ;;  %518 = vst [vmem:[%s2439_s23 + $0x78] sm:$0xff] %v517_v47 }
  0x3b   : > { %520 = vst [vmem:[%s2439_s23 + $0x80] sm:$0xff] %v519_v48  ;;  %522 = vst [vmem:[%s2439_s23 + $0x88] sm:$0xff] %v521_v49  ;;  %v523_v50 = vld [vmem:[%s2434_s7 + $0x120] sm:$0xff]  ;;  %v525_v51 = vld [vmem:[%s2434_s7 + $0x130] sm:$0xff] }
  0x3c   : > { %v527_v52 = vld [vmem:[%s2434_s7 + $0x140] sm:$0xff]  ;;  %524 = vst [vmem:[%s2439_s23 + $0x90] sm:$0xff] %v523_v50  ;;  %526 = vst [vmem:[%s2439_s23 + $0x98] sm:$0xff] %v525_v51  ;;  %v529_v53 = vld [vmem:[%s2434_s7 + $0x150] sm:$0xff] }
  0x3d   : > { %528 = vst [vmem:[%s2439_s23 + $0xa0] sm:$0xff] %v527_v52  ;;  %v531_v54 = vld [vmem:[%s2434_s7 + $0x160] sm:$0xff]  ;;  %v533_v55 = vld [vmem:[%s2434_s7 + $0x170] sm:$0xff]  ;;  %530 = vst [vmem:[%s2439_s23 + $0xa8] sm:$0xff] %v529_v53 }
  0x3e   : > { %532 = vst [vmem:[%s2439_s23 + $0xb0] sm:$0xff] %v531_v54  ;;  %534 = vst [vmem:[%s2439_s23 + $0xb8] sm:$0xff] %v533_v55  ;;  %v535_v56 = vld [vmem:[%s2434_s7 + $0x180] sm:$0xff]  ;;  %v537_v57 = vld [vmem:[%s2434_s7 + $0x190] sm:$0xff] }
  0x3f   : > { %v539_v58 = vld [vmem:[%s2434_s7 + $0x1a0] sm:$0xff]  ;;  %536 = vst [vmem:[%s2439_s23 + $0xc0] sm:$0xff] %v535_v56  ;;  %538 = vst [vmem:[%s2439_s23 + $0xc8] sm:$0xff] %v537_v57  ;;  %v541_v59 = vld [vmem:[%s2434_s7 + $0x1b0] sm:$0xff] }
  0x40   : > { %540 = vst [vmem:[%s2439_s23 + $0xd0] sm:$0xff] %v539_v58  ;;  %v543_v60 = vld [vmem:[%s2434_s7 + $0x1c0] sm:$0xff]  ;;  %v545_v61 = vld [vmem:[%s2434_s7 + $0x1d0] sm:$0xff]  ;;  %542 = vst [vmem:[%s2439_s23 + $0xd8] sm:$0xff] %v541_v59 }
  0x41   : > { %544 = vst [vmem:[%s2439_s23 + $0xe0] sm:$0xff] %v543_v60  ;;  %546 = vst [vmem:[%s2439_s23 + $0xe8] sm:$0xff] %v545_v61  ;;  %v547_v62 = vld [vmem:[%s2434_s7 + $0x1e0] sm:$0xff]  ;;  %v549_v63 = vld [vmem:[%s2434_s7 + $0x1f0] sm:$0xff] }
  0x42   : > { %v551_v0 = vld [vmem:[%s2434_s7 + $0x200] sm:$0xff]  ;;  %548 = vst [vmem:[%s2439_s23 + $0xf0] sm:$0xff] %v547_v62  ;;  %550 = vst [vmem:[%s2439_s23 + $0xf8] sm:$0xff] %v549_v63  ;;  %v553_v1 = vld [vmem:[%s2434_s7 + $0x210] sm:$0xff] }
  0x43   : > { %552 = vst [vmem:[%s2439_s23 + $0x100] sm:$0xff] %v551_v0  ;;  %v555_v2 = vld [vmem:[%s2434_s7 + $0x220] sm:$0xff]  ;;  %v557_v3 = vld [vmem:[%s2434_s7 + $0x230] sm:$0xff]  ;;  %554 = vst [vmem:[%s2439_s23 + $0x108] sm:$0xff] %v553_v1 }
  0x44   : > { %556 = vst [vmem:[%s2439_s23 + $0x110] sm:$0xff] %v555_v2  ;;  %558 = vst [vmem:[%s2439_s23 + $0x118] sm:$0xff] %v557_v3  ;;  %v559_v4 = vld [vmem:[%s2434_s7 + $0x240] sm:$0xff]  ;;  %v561_v5 = vld [vmem:[%s2434_s7 + $0x250] sm:$0xff] }
  0x45   : > { %v563_v6 = vld [vmem:[%s2434_s7 + $0x260] sm:$0xff]  ;;  %560 = vst [vmem:[%s2439_s23 + $0x120] sm:$0xff] %v559_v4  ;;  %562 = vst [vmem:[%s2439_s23 + $0x128] sm:$0xff] %v561_v5  ;;  %v565_v7 = vld [vmem:[%s2434_s7 + $0x270] sm:$0xff] }
  0x46   : > { %564 = vst [vmem:[%s2439_s23 + $0x130] sm:$0xff] %v563_v6  ;;  %v567_v8 = vld [vmem:[%s2434_s7 + $0x280] sm:$0xff]  ;;  %v569_v9 = vld [vmem:[%s2434_s7 + $0x290] sm:$0xff]  ;;  %566 = vst [vmem:[%s2439_s23 + $0x138] sm:$0xff] %v565_v7 }
  0x47   : > { %568 = vst [vmem:[%s2439_s23 + $0x140] sm:$0xff] %v567_v8  ;;  %570 = vst [vmem:[%s2439_s23 + $0x148] sm:$0xff] %v569_v9  ;;  %v571_v10 = vld [vmem:[%s2434_s7 + $0x2a0] sm:$0xff]  ;;  %v573_v11 = vld [vmem:[%s2434_s7 + $0x2b0] sm:$0xff] }
  0x48   : > { %v575_v12 = vld [vmem:[%s2434_s7 + $0x2c0] sm:$0xff]  ;;  %572 = vst [vmem:[%s2439_s23 + $0x150] sm:$0xff] %v571_v10  ;;  %574 = vst [vmem:[%s2439_s23 + $0x158] sm:$0xff] %v573_v11  ;;  %v577_v13 = vld [vmem:[%s2434_s7 + $0x2d0] sm:$0xff] }
  0x49   : > { %576 = vst [vmem:[%s2439_s23 + $0x160] sm:$0xff] %v575_v12  ;;  %v579_v14 = vld [vmem:[%s2434_s7 + $0x2e0] sm:$0xff]  ;;  %v581_v15 = vld [vmem:[%s2434_s7 + $0x2f0] sm:$0xff]  ;;  %578 = vst [vmem:[%s2439_s23 + $0x168] sm:$0xff] %v577_v13 }
  0x4a   : > { %580 = vst [vmem:[%s2439_s23 + $0x170] sm:$0xff] %v579_v14  ;;  %582 = vst [vmem:[%s2439_s23 + $0x178] sm:$0xff] %v581_v15  ;;  %v583_v16 = vld [vmem:[%s2434_s7 + $0x300] sm:$0xff]  ;;  %v585_v17 = vld [vmem:[%s2434_s7 + $0x310] sm:$0xff] }
  0x4b   : > { %v587_v18 = vld [vmem:[%s2434_s7 + $0x320] sm:$0xff]  ;;  %584 = vst [vmem:[%s2439_s23 + $0x180] sm:$0xff] %v583_v16  ;;  %586 = vst [vmem:[%s2439_s23 + $0x188] sm:$0xff] %v585_v17  ;;  %v589_v19 = vld [vmem:[%s2434_s7 + $0x330] sm:$0xff] }
  0x4c   : > { %588 = vst [vmem:[%s2439_s23 + $0x190] sm:$0xff] %v587_v18  ;;  %v591_v20 = vld [vmem:[%s2434_s7 + $0x340] sm:$0xff]  ;;  %v593_v21 = vld [vmem:[%s2434_s7 + $0x350] sm:$0xff]  ;;  %590 = vst [vmem:[%s2439_s23 + $0x198] sm:$0xff] %v589_v19 }
  0x4d   : > { %592 = vst [vmem:[%s2439_s23 + $0x1a0] sm:$0xff] %v591_v20  ;;  %594 = vst [vmem:[%s2439_s23 + $0x1a8] sm:$0xff] %v593_v21  ;;  %v595_v22 = vld [vmem:[%s2434_s7 + $0x360] sm:$0xff]  ;;  %v597_v23 = vld [vmem:[%s2434_s7 + $0x370] sm:$0xff] }
  0x4e   : > { %v599_v24 = vld [vmem:[%s2434_s7 + $0x380] sm:$0xff]  ;;  %596 = vst [vmem:[%s2439_s23 + $0x1b0] sm:$0xff] %v595_v22  ;;  %598 = vst [vmem:[%s2439_s23 + $0x1b8] sm:$0xff] %v597_v23  ;;  %v601_v25 = vld [vmem:[%s2434_s7 + $0x390] sm:$0xff] }
  0x4f   : > { %600 = vst [vmem:[%s2439_s23 + $0x1c0] sm:$0xff] %v599_v24  ;;  %v603_v26 = vld [vmem:[%s2434_s7 + $0x3a0] sm:$0xff]  ;;  %v605_v27 = vld [vmem:[%s2434_s7 + $0x3b0] sm:$0xff]  ;;  %602 = vst [vmem:[%s2439_s23 + $0x1c8] sm:$0xff] %v601_v25 }
  0x50   : > { %604 = vst [vmem:[%s2439_s23 + $0x1d0] sm:$0xff] %v603_v26  ;;  %606 = vst [vmem:[%s2439_s23 + $0x1d8] sm:$0xff] %v605_v27  ;;  %v607_v28 = vld [vmem:[%s2434_s7 + $0x3c0] sm:$0xff]  ;;  %v609_v29 = vld [vmem:[%s2434_s7 + $0x3d0] sm:$0xff] }
  0x51   : > { %v611_v30 = vld [vmem:[%s2434_s7 + $0x3e0] sm:$0xff]  ;;  %608 = vst [vmem:[%s2439_s23 + $0x1e0] sm:$0xff] %v607_v28  ;;  %610 = vst [vmem:[%s2439_s23 + $0x1e8] sm:$0xff] %v609_v29  ;;  %v613_v31 = vld [vmem:[%s2434_s7 + $0x3f0] sm:$0xff] }
  0x52   : > { %612 = vst [vmem:[%s2439_s23 + $0x1f0] sm:$0xff] %v611_v30  ;;  %614 = vst [vmem:[%s2439_s23 + $0x1f8] sm:$0xff] %v613_v31 }
  0x53 PF: > { %639 = sbr.rel (%p2324_p9) target bundleno = 429 (0x1ad), region = 89  ;;  %s645_s8 = sand.u32 (!%p2324_p9), 1, %s2233_s15  }
  0x54   : > { %s1909_s9 = sshll.u32 (!%p2324_p9), %s645_s8, 9  ;;  %s1911_s27 = sshll.u32 (!%p2324_p9), %s2241_s17, 1 }
  0x55   : > { %s2579_s10 = scalar_lea.vmem (!%p2324_p9), [#allocation3], %s1909_s9  ;;  %p680_p12 = scmp.lt.s32.totalorder (!%p2324_p9), %s1911_s27, 3 }
  0x56   : > { %s1910_s24 = sshll.u32 (!%p2324_p9), %s645_s8, 7 }
  0x57   : > { %s2671_s15 = scalar_lea.vmem (!%p2324_p9), [#allocation4], %s1910_s24 }
  0x58   : > { %v2569_v32 = vld [vmem:[#allocation2 + $0xb0] sm:$0xff]  ;;  %s2799_s27 = smov (!%p680_p12, %s1911_s27), 3  ;;  %s2047_s28 = sshll.u32 (%p2316_p7), %s2241_s17, 3 }
  0x59   : > { %v2571_v33 = vld [vmem:[#allocation2 + $0x50] sm:$0xff]  ;;  %v2094_v41 = vld [vmem:[%s2579_s10 + $0x64] ss:$8 sps:$4 sm:$0xff]   ;;  %v2098_v43 = vld [vmem:[%s2579_s10 + $0x60] ss:$8 sps:$4 sm:$0xff]   ;;  %s682_s13 = scalar_lea.vmem %s2786_s2, %s2799_s27  ;;  %s687_s22 = scalar_lea.vmem %s2787_s3, %s2799_s27 }
  0x5a   : > { %v1913_v34 = vcombine.low %v2569_v32, %v2571_v33  ;;  %v1914_v35 = vcombine.high %v2569_v32, %v2571_v33  ;;  %v2186_v36 = vld [vmem:[#allocation2 + $0x1b4] ss:$-72 sps:$4 sm:$0xff]   ;;  %v2092_v39 = vld [vmem:[%s2579_s10 + $0x70] ss:$8 sps:$4 sm:$0xff]   ;;  %v2099_v44 = vld [vmem:[%s2579_s10 + $0x160] ss:$8 sps:$4 sm:$0xff]   ;;  %s1705_s5 = scalar_lea.vmem (%p2316_p7), %s2788_s4, %s2047_s28 }
  0x5b   : > { %v2088_v37 = vld [vmem:[%s2579_s10 + $0x74] ss:$8 sps:$4 sm:$0xff]   ;;  %1412 = vmatprep.mubr.bf16.mxu1 %v2186_v36  ;;  %v2093_v40 = vld [vmem:[%s2579_s10 + $0x170] ss:$8 sps:$4 sm:$0xff]   ;;  %v2096_v42 = vld [vmem:[%s2579_s10 + $0x164] ss:$8 sps:$4 sm:$0xff]  }
  0x5c   : > { %1299 = vmatprep.mubr.bf16.mxu0 %v1914_v35  ;;  %v2090_v38 = vld [vmem:[%s2579_s10 + $0x174] ss:$8 sps:$4 sm:$0xff]   ;;  %1267 = vmatprep.subr.bf16.mxu0 %v2088_v37  ;;  %v2104_v47 = vld [vmem:[%s2579_s10 + $0x50] ss:$8 sps:$4 sm:$0xff]   ;;  %v2106_v49 = vld [vmem:[%s2579_s10 + $0x44] ss:$8 sps:$4 sm:$0xff]  }
  0x5d   : > { %1380 = vmatprep.subr.bf16.mxu1 %v2090_v38  ;;  %1268 = vmatpush1.bf16.msra.mxu0 %v2092_v39  ;;  %v2100_v45 = vld [vmem:[%s2579_s10 + $0x54] ss:$8 sps:$4 sm:$0xff]   ;;  %v2105_v48 = vld [vmem:[%s2579_s10 + $0x150] ss:$8 sps:$4 sm:$0xff]   ;;  %v2108_v50 = vld [vmem:[%s2579_s10 + $0x144] ss:$8 sps:$4 sm:$0xff]  }
  0x5e   : > { %1381 = vmatpush1.bf16.msra.mxu1 %v2093_v40  ;;  %1269 = vmatprep.subr.bf16.mxu0 %v2094_v41  ;;  %v2102_v46 = vld [vmem:[%s2579_s10 + $0x154] ss:$8 sps:$4 sm:$0xff]   ;;  %v2110_v51 = vld [vmem:[%s2579_s10 + $0x40] ss:$8 sps:$4 sm:$0xff]   ;;  %v2116_v55 = vld [vmem:[%s2579_s10 + $0x30] ss:$8 sps:$4 sm:$0xff]  }
  0x5f   : > { %1382 = vmatprep.subr.bf16.mxu1 %v2096_v42  ;;  %v2111_v52 = vld [vmem:[%s2579_s10 + $0x140] ss:$8 sps:$4 sm:$0xff]   ;;  %v2112_v53 = vld [vmem:[%s2579_s10 + $0x34] ss:$8 sps:$4 sm:$0xff]   ;;  %v2117_v56 = vld [vmem:[%s2579_s10 + $0x130] ss:$8 sps:$4 sm:$0xff]  }
  0x60   : > { %v2114_v54 = vld [vmem:[%s2579_s10 + $0x134] ss:$8 sps:$4 sm:$0xff]   ;;  %v2118_v57 = vld [vmem:[%s2579_s10 + $0x24] ss:$8 sps:$4 sm:$0xff]   ;;  %v2122_v59 = vld [vmem:[%s2579_s10 + $0x20] ss:$8 sps:$4 sm:$0xff]  }
  0x61   : > { %1270 = vmatpush1.bf16.msra.mxu0 %v2098_v43  ;;  %v2120_v58 = vld [vmem:[%s2579_s10 + $0x124] ss:$8 sps:$4 sm:$0xff]   ;;  %v2123_v60 = vld [vmem:[%s2579_s10 + $0x120] ss:$8 sps:$4 sm:$0xff]   ;;  %v2124_v61 = vld [vmem:[%s2579_s10 + $0x14] ss:$8 sps:$4 sm:$0xff]  }
  0x62   : > { %1383 = vmatpush1.bf16.msra.mxu1 %v2099_v44  ;;  %1271 = vmatprep.subr.bf16.mxu0 %v2100_v45  ;;  %v2126_v62 = vld [vmem:[%s2579_s10 + $0x114] ss:$8 sps:$4 sm:$0xff]   ;;  %v2128_v63 = vld [vmem:[%s2579_s10 + $0x10] ss:$8 sps:$4 sm:$0xff]   ;;  %v2130_v1 = vld [vmem:[%s2579_s10 + $0x4] ss:$8 sps:$4 sm:$0xff]  }
  0x63   : > { %1384 = vmatprep.subr.bf16.mxu1 %v2102_v46  ;;  %v2129_v0 = vld [vmem:[%s2579_s10 + $0x110] ss:$8 sps:$4 sm:$0xff]   ;;  %v2132_v2 = vld [vmem:[%s2579_s10 + $0x104] ss:$8 sps:$4 sm:$0xff]   ;;  %v2134_v3 = vld [vmem:[%s2579_s10] ss:$8 sps:$4 sm:$0xff]  }
  0x64   : > { %v2135_v4 = vld [vmem:[%s2579_s10 + $0x100] ss:$8 sps:$4 sm:$0xff]   ;;  %v2136_v5 = vld [vmem:[%s2579_s10 + $0xf4] ss:$8 sps:$4 sm:$0xff]   ;;  %v2140_v7 = vld [vmem:[%s2579_s10 + $0xf0] ss:$8 sps:$4 sm:$0xff]  }
  0x65   : > { %1272 = vmatpush1.bf16.msra.mxu0 %v2104_v47  ;;  %v2138_v6 = vld [vmem:[%s2579_s10 + $0x1f4] ss:$8 sps:$4 sm:$0xff]   ;;  %v2141_v8 = vld [vmem:[%s2579_s10 + $0x1f0] ss:$8 sps:$4 sm:$0xff]   ;;  %v2142_v9 = vld [vmem:[%s2579_s10 + $0xe4] ss:$8 sps:$4 sm:$0xff]  }
  0x66   : > { %1385 = vmatpush1.bf16.msra.mxu1 %v2105_v48  ;;  %1273 = vmatprep.subr.bf16.mxu0 %v2106_v49  ;;  %v2144_v10 = vld [vmem:[%s2579_s10 + $0x1e4] ss:$8 sps:$4 sm:$0xff]   ;;  %v2146_v11 = vld [vmem:[%s2579_s10 + $0xe0] ss:$8 sps:$4 sm:$0xff]   ;;  %v2148_v13 = vld [vmem:[%s2579_s10 + $0xd4] ss:$8 sps:$4 sm:$0xff]  }
  0x67   : > { %1386 = vmatprep.subr.bf16.mxu1 %v2108_v50  ;;  %v2147_v12 = vld [vmem:[%s2579_s10 + $0x1e0] ss:$8 sps:$4 sm:$0xff]   ;;  %v2150_v14 = vld [vmem:[%s2579_s10 + $0x1d4] ss:$8 sps:$4 sm:$0xff]   ;;  %v2152_v15 = vld [vmem:[%s2579_s10 + $0xd0] ss:$8 sps:$4 sm:$0xff]  }
  0x68   : > { %v2153_v16 = vld [vmem:[%s2579_s10 + $0x1d0] ss:$8 sps:$4 sm:$0xff]   ;;  %v2154_v17 = vld [vmem:[%s2579_s10 + $0xc4] ss:$8 sps:$4 sm:$0xff]   ;;  %v2158_v19 = vld [vmem:[%s2579_s10 + $0xc0] ss:$8 sps:$4 sm:$0xff]  }
  0x69   : > { %1274 = vmatpush1.bf16.msra.mxu0 %v2110_v51  ;;  %v2156_v18 = vld [vmem:[%s2579_s10 + $0x1c4] ss:$8 sps:$4 sm:$0xff]   ;;  %v2159_v20 = vld [vmem:[%s2579_s10 + $0x1c0] ss:$8 sps:$4 sm:$0xff]   ;;  %v2160_v21 = vld [vmem:[%s2579_s10 + $0xb4] ss:$8 sps:$4 sm:$0xff]  }
  0x6a   : > { %1387 = vmatpush1.bf16.msra.mxu1 %v2111_v52  ;;  %1275 = vmatprep.subr.bf16.mxu0 %v2112_v53  ;;  %v2162_v22 = vld [vmem:[%s2579_s10 + $0x1b4] ss:$8 sps:$4 sm:$0xff]   ;;  %v2164_v23 = vld [vmem:[%s2579_s10 + $0xb0] ss:$8 sps:$4 sm:$0xff]   ;;  %v2166_v25 = vld [vmem:[%s2579_s10 + $0xa4] ss:$8 sps:$4 sm:$0xff]  }
  0x6b   : > { %1388 = vmatprep.subr.bf16.mxu1 %v2114_v54  ;;  %v2165_v24 = vld [vmem:[%s2579_s10 + $0x1b0] ss:$8 sps:$4 sm:$0xff]   ;;  %v2168_v26 = vld [vmem:[%s2579_s10 + $0x1a4] ss:$8 sps:$4 sm:$0xff]   ;;  %v2170_v27 = vld [vmem:[%s2579_s10 + $0xa0] ss:$8 sps:$4 sm:$0xff]  }
  0x6c   : > { %v2171_v28 = vld [vmem:[%s2579_s10 + $0x1a0] ss:$8 sps:$4 sm:$0xff]   ;;  %v2172_v29 = vld [vmem:[%s2579_s10 + $0x94] ss:$8 sps:$4 sm:$0xff]   ;;  %v2176_v31 = vld [vmem:[%s2579_s10 + $0x90] ss:$8 sps:$4 sm:$0xff]  }
  0x6d   : > { %1276 = vmatpush1.bf16.msra.mxu0 %v2116_v55  ;;  %v2174_v30 = vld [vmem:[%s2579_s10 + $0x194] ss:$8 sps:$4 sm:$0xff]   ;;  %v2177_v35 = vld [vmem:[%s2579_s10 + $0x190] ss:$8 sps:$4 sm:$0xff]   ;;  %v2178_v36 = vld [vmem:[%s2579_s10 + $0x84] ss:$8 sps:$4 sm:$0xff]  }
  0x6e   : > { %1389 = vmatpush1.bf16.msra.mxu1 %v2117_v56  ;;  %1277 = vmatprep.subr.bf16.mxu0 %v2118_v57  ;;  %v2180_v37 = vld [vmem:[%s2579_s10 + $0x184] ss:$8 sps:$4 sm:$0xff]   ;;  %v2182_v38 = vld [vmem:[%s2579_s10 + $0x80] ss:$8 sps:$4 sm:$0xff]   ;;  %v696_v42 = vld [vmem:[#allocation2 + $0x110] sm:$0xff] }
  0x6f   : > { %1390 = vmatprep.subr.bf16.mxu1 %v2120_v58  ;;  %v2183_v39 = vld [vmem:[%s2579_s10 + $0x180] ss:$8 sps:$4 sm:$0xff]   ;;  %v698_v43 = vld [vmem:[#allocation2 + $0x150] sm:$0xff]  ;;  %v2187_v57 = vld [vmem:[#allocation2 + $0x1ec] ss:$-8 sps:$4 sm:$0xff]  }
  0x70   : > { %v695_v40 = vld [vmem:[#allocation2 + $0x180] sm:$0xff]  ;;  %v2184_v44 = vld [vmem:[#allocation2 + $0x1b0] ss:$-72 sps:$4 sm:$0xff]   ;;  %v1920_v46 = vcombine.high %v696_v42, %v698_v43  ;;  %v1919_v52 = vcombine.low %v696_v42, %v698_v43 }
  0x71   : > { %1278 = vmatpush1.bf16.msra.mxu0 %v2122_v59  ;;  %v697_v41 = vld [vmem:[#allocation2 + $0x120] sm:$0xff]  ;;  %v700_v49 = vld [vmem:[#allocation2 + $0x188] sm:$0xff]  ;;  %v2195_v59 = vld [vmem:[#allocation2 + $0x1d4] ss:$40 sps:$4 sm:$0xff]  }
  0x72   : > { %1391 = vmatpush1.bf16.msra.mxu1 %v2123_v60  ;;  %1279 = vmatprep.subr.bf16.mxu0 %v2124_v61  ;;  %v1918_v45 = vcombine.high %v695_v40, %v697_v41  ;;  %v699_v47 = vld [vmem:[#allocation2 + $0xe0] sm:$0xff]  ;;  %v702_v50 = vld [vmem:[#allocation2 + $0x1a8] sm:$0xff]  ;;  %v1917_v51 = vcombine.low %v695_v40, %v697_v41  ;;  %v712_v60 = vld [vmem:[#allocation2 + $0x1f0] sm:$0xff] }
  0x73   : > { %1392 = vmatprep.subr.bf16.mxu1 %v2126_v62  ;;  %v701_v48 = vld [vmem:[#allocation2 + $0x80] sm:$0xff]  ;;  %v1924_v54 = vcombine.high %v700_v49, %v702_v50  ;;  %v1923_v56 = vcombine.low %v700_v49, %v702_v50  ;;  %v714_v61 = vld [vmem:[#allocation2 + $0x90] sm:$0xff] }
  0x74   : > { %v1922_v53 = vcombine.high %v699_v47, %v701_v48  ;;  %v1921_v55 = vcombine.low %v699_v47, %v701_v48  ;;  %v2189_v32 = vld [vmem:[#allocation2 + $0xfc] ss:$-248 sps:$4 sm:$0xff]   ;;  %v2191_v33 = vld [vmem:[#allocation2 + $0x1e8] ss:$-8 sps:$4 sm:$0xff]  }
  0x75   : > { %1280 = vmatpush1.bf16.msra.mxu0 %v2128_v63  ;;  %v2193_v58 = vld [vmem:[#allocation2 + $0x14c] ss:$-264 sps:$4 sm:$0xff]   ;;  %v2197_v62 = vld [vmem:[#allocation2 + $0x148] ss:$-264 sps:$4 sm:$0xff]   ;;  %v2198_v63 = vld [vmem:[#allocation2 + $0x1d0] ss:$40 sps:$4 sm:$0xff]  }
  0x76   : > { %1393 = vmatpush1.bf16.msra.mxu1 %v2129_v0  ;;  %1281 = vmatprep.subr.bf16.mxu0 %v2130_v1  ;;  %v2199_v0 = vld [vmem:[#allocation2 + $0x1a4] ss:$-304 sps:$4 sm:$0xff]   ;;  %v1936_v1 = vcombine.high %v712_v60, %v714_v61 }
  0x77   : > { %1394 = vmatprep.subr.bf16.mxu1 %v2132_v2  ;;  %v2201_v2 = vld [vmem:[#allocation2 + $0x1a0] ss:$-304 sps:$4 sm:$0xff]  }
  0x79   : > { %1282 = vmatpush1.bf16.msra.mxu0 %v2134_v3  ;;  %v1935_v3 = vcombine.low %v712_v60, %v714_v61 }
  0x7a   : > { %1395 = vmatpush1.bf16.msra.mxu1 %v2135_v4  ;;  %1283 = vmatprep.subr.bf16.mxu0 %v2136_v5  ;;  %v2202_v4 = vld [vmem:[#allocation2 + $0xbc] ss:$184 sps:$4 sm:$0xff]  }
  0x7b   : > { %1396 = vmatprep.subr.bf16.mxu1 %v2138_v6  ;;  %v2204_v5 = vld [vmem:[#allocation2 + $0x8c] ss:$240 sps:$4 sm:$0xff]  }
  0x7c   : > { %v719_v6 = vld [vmem:[#allocation2 + $0x198] sm:$0xff] }
  0x7d   : > { %1284 = vmatpush2.bf16.msra.mxu0 %v2140_v7  ;;  %v721_v7 = vld [vmem:[#allocation2 + $0x158] sm:$0xff] }
  0x7e   : > { %1397 = vmatpush2.bf16.msra.mxu1 %v2141_v8  ;;  %1285 = vmatprep.subr.bf16.mxu0 %v2142_v9  ;;  %v2206_v8 = vld [vmem:[#allocation2 + $0xb8] ss:$184 sps:$4 sm:$0xff]  }
  0x7f   : > { %1398 = vmatprep.subr.bf16.mxu1 %v2144_v10  ;;  %v2207_v9 = vld [vmem:[#allocation2 + $0x88] ss:$240 sps:$4 sm:$0xff]   ;;  %v1942_v10 = vcombine.high %v719_v6, %v721_v7 }
  0x81   : > { %1286 = vmatpush2.bf16.msra.mxu0 %v2146_v11  ;;  %v2208_v11 = vld [vmem:[#allocation2 + $0x3c] ss:$-40 sps:$4 sm:$0xff]  }
  0x82   : > { %1399 = vmatpush2.bf16.msra.mxu1 %v2147_v12  ;;  %1287 = vmatprep.subr.bf16.mxu0 %v2148_v13  ;;  %v1941_v12 = vcombine.low %v719_v6, %v721_v7  ;;  %v2210_v13 = vld [vmem:[#allocation2 + $0x38] ss:$-40 sps:$4 sm:$0xff]  }
  0x83   : > { %1400 = vmatprep.subr.bf16.mxu1 %v2150_v14  ;;  %v1495_v14 = vlaneseq }
  0x85   : > { %1288 = vmatpush2.bf16.msra.mxu0 %v2152_v15  ;;  %v1496_v15 = vshrl.u32 %v1495_v14, 7 }
  0x86   : > { %1401 = vmatpush2.bf16.msra.mxu1 %v2153_v16  ;;  %1289 = vmatprep.subr.bf16.mxu0 %v2154_v17  ;;  %v1493_v17 = vld [vmem:[%s682_s13] sm:$0x3] }
  0x87   : > { %1402 = vmatprep.subr.bf16.mxu1 %v2156_v18  ;;  %v1497_v16 = vsub.s32 0, %v1496_v15  ;;  %v1501_v18 = vsub.s32 1, %v1496_v15 }
  0x89   : > { %1290 = vmatpush2.bf16.msra.mxu0 %v2158_v19  ;;  %v2655_v19 = vrot.slane %v1493_v17, %v1497_v16 }
  0x8a   : > { %1403 = vmatpush2.bf16.msra.mxu1 %v2159_v20  ;;  %1291 = vmatprep.subr.bf16.mxu0 %v2160_v21 }
  0x8b   : > { %1404 = vmatprep.subr.bf16.mxu1 %v2162_v22  ;;  %v1537_v22 = vld [vmem:[%s687_s22] sm:$0x3] }
  0x8d   : > { %1292 = vmatpush2.bf16.msra.mxu0 %v2164_v23 }
  0x8e   : > { %1405 = vmatpush2.bf16.msra.mxu1 %v2165_v24  ;;  %1293 = vmatprep.subr.bf16.mxu0 %v2166_v25  ;;  %v2657_v24 = vrot.slane %v1493_v17, %v1501_v18 }
  0x8f   : > { %1406 = vmatprep.subr.bf16.mxu1 %v2168_v26 }
  0x91   : > { %1294 = vmatpush2.bf16.msra.mxu0 %v2170_v27 }
  0x92   : > { %1407 = vmatpush2.bf16.msra.mxu1 %v2171_v28  ;;  %1295 = vmatprep.subr.bf16.mxu0 %v2172_v29  ;;  %v2660_v28 = vrot.slane %v1537_v22, %v1497_v16 }
  0x93   : > { %1408 = vmatprep.subr.bf16.mxu1 %v2174_v30  ;;  %v2662_v30 = vrot.slane %v1537_v22, %v1501_v18 }
  0x95   : > { %1296 = vmatpush2.bf16.msra.mxu0 %v2176_v31 }
  0x96   : > { %1409 = vmatpush2.bf16.msra.mxu1 %v2177_v35  ;;  %1297 = vmatprep.subr.bf16.mxu0 %v2178_v36 }
  0x97   : > { %1410 = vmatprep.subr.bf16.mxu1 %v2180_v37 }
  0x99   : > { %1298 = vmatpush2.bf16.msra.mxu0 %v2182_v38 }
  0x9a   : > { %1411 = vmatpush2.bf16.msra.mxu1 %v2183_v39 }
  0x9c   : > { %1300 = vmatmul.mubr.bf16.vlgmr.msra.gmra.mxu0 %v1913_v34  ;;  %v2192_v34 = vld [vmem:[#allocation2 + $0xf8] ss:$-248 sps:$4 sm:$0xff]  }
  0x9d   : > { %1413 = vmatmul.mubr.bf16.vlgmr.msra.gmra.mxu1 %v2184_v44  ;;  %1309 = vmatprep.mubr.bf16.mxu0 %v1918_v45 }
  0x9e   : > { %1422 = vmatprep.mubr.bf16.mxu1 %v1920_v46 }
  0xa4   : > { %1310 = vmatmul.mubr.bf16.gmra.mxu0 %v1917_v51 }
  0xa5   : > { %1423 = vmatmul.mubr.bf16.gmra.mxu1 %v1919_v52  ;;  %1319 = vmatprep.mubr.bf16.mxu0 %v1922_v53 }
  0xa6   : > { %1432 = vmatprep.mubr.bf16.mxu1 %v1924_v54 }
  0xac   : > { %1320 = vmatmul.mubr.bf16.gmra.mxu0 %v1921_v55 }
  0xad   : > { %1433 = vmatmul.mubr.bf16.gmra.mxu1 %v1923_v56  ;;  %1329 = vmatprep.mubr.bf16.mxu0 %v2187_v57 }
  0xae   : > { %1442 = vmatprep.mubr.bf16.mxu1 %v2189_v32 }
  0xb4   : > { %1330 = vmatmul.mubr.bf16.gmra.mxu0 %v2191_v33 }
  0xb5   : > { %1443 = vmatmul.mubr.bf16.gmra.mxu1 %v2192_v34  ;;  %1339 = vmatprep.mubr.bf16.mxu0 %v2193_v58 }
  0xb6   : > { %1452 = vmatprep.mubr.bf16.mxu1 %v2195_v59 }
  0xbc   : > { %1340 = vmatmul.mubr.bf16.gmra.mxu0 %v2197_v62 }
  0xbd   : > { %1453 = vmatmul.mubr.bf16.gmra.mxu1 %v2198_v63  ;;  %1349 = vmatprep.mubr.bf16.mxu0 %v2199_v0 }
  0xbe   : > { %1462 = vmatprep.mubr.bf16.mxu1 %v1936_v1 }
  0xc4   : > { %1350 = vmatmul.mubr.bf16.gmra.mxu0 %v2201_v2 }
  0xc5   : > { %1463 = vmatmul.mubr.bf16.gmra.mxu1 %v1935_v3  ;;  %1359 = vmatprep.mubr.bf16.mxu0 %v2202_v4 }
  0xc6   : > { %1472 = vmatprep.mubr.bf16.mxu1 %v2204_v5 }
  0xcc   : > { %1360 = vmatmul.mubr.bf16.gmra.mxu0 %v2206_v8 }
  0xcd   : > { %1473 = vmatmul.mubr.bf16.gmra.mxu1 %v2207_v9  ;;  %1369 = vmatprep.mubr.bf16.mxu0 %v1942_v10 }
  0xce   : > { %1482 = vmatprep.mubr.bf16.mxu1 %v2208_v11 }
  0xd4   : > { %1370 = vmatmul.mubr.bf16.gmra.mxu0 %v1941_v12 }
  0xd5   : > { %1483 = vmatmul.mubr.bf16.gmra.mxu1 %v2210_v13 }
 0x15c   : > { %v1301_v20 = vpop.f32.mrf.mxu0 }
 0x15d   : > { %v1414_v21 = vpop.f32.mrf.mxu1 }
 0x15e   : > { %v1415_v23 = vadd.f32 %v1414_v21, %v1301_v20  ;;  %v1303_v25 = vpop.f32.mrf.mxu0 }
 0x15f   : > { %v1416_v26 = vpop.f32.mrf.mxu1 }
 0x160   : > { %v1505_v27 = vmul.f32 %v2655_v19, %v1415_v23  ;;  %v1417_v29 = vadd.f32 %v1416_v26, %v1303_v25  ;;  %v1305_v31 = vpop.f32.mrf.mxu0 }
 0x161   : > { %v1418_v35 = vpop.f32.mrf.mxu1 }
 0x162   : > { %v1506_v36 = vmul.f32 %v2657_v24, %v1417_v29  ;;  %v1419_v37 = vadd.f32 %v1418_v35, %v1305_v31  ;;  %v1307_v38 = vpop.f32.mrf.mxu0  ;;  %v1549_v40 = vadd.f32 %v2660_v28, %v1505_v27 }
 0x163   : > { %v1420_v39 = vpop.f32.mrf.mxu1 }
 0x164   : > { %v1550_v41 = vadd.f32 %v2662_v30, %v1506_v36  ;;  %v1507_v42 = vmul.f32 %v2655_v19, %v1419_v37  ;;  %v1421_v43 = vadd.f32 %v1420_v39, %v1307_v38  ;;  %v1311_v44 = vpop.f32.mrf.mxu0 }
 0x165   : > { %v1424_v45 = vpop.f32.mrf.mxu1 }
 0x166   : > { %v2031_v46 = vpack.c.bf16 %v1550_v41, %v1549_v40  ;;  %v1508_v47 = vmul.f32 %v2657_v24, %v1421_v43  ;;  %v1425_v48 = vadd.f32 %v1424_v45, %v1311_v44  ;;  %v1313_v49 = vpop.f32.mrf.mxu0  ;;  %v1551_v51 = vadd.f32 %v2660_v28, %v1507_v42 }
 0x167   : > { %v1426_v50 = vpop.f32.mrf.mxu1 }
 0x168   : > { %1677 = vst [vmem:[%s2671_s15] sm:$0xff] %v2031_v46  ;;  %v1552_v52 = vadd.f32 %v2662_v30, %v1508_v47  ;;  %v1509_v53 = vmul.f32 %v2655_v19, %v1425_v48  ;;  %v1427_v54 = vadd.f32 %v1426_v50, %v1313_v49  ;;  %v1315_v55 = vpop.f32.mrf.mxu0 }
 0x169   : > { %v1428_v56 = vpop.f32.mrf.mxu1 }
 0x16a   : > { %v2032_v57 = vpack.c.bf16 %v1552_v52, %v1551_v51  ;;  %v1510_v32 = vmul.f32 %v2657_v24, %v1427_v54  ;;  %v1429_v33 = vadd.f32 %v1428_v56, %v1315_v55  ;;  %v1317_v34 = vpop.f32.mrf.mxu0  ;;  %v1553_v59 = vadd.f32 %v2660_v28, %v1509_v53 }
 0x16b   : > { %v1430_v58 = vpop.f32.mrf.mxu1 }
 0x16c   : > { %1678 = vst [vmem:[%s2671_s15 + $0x8] sm:$0xff] %v2032_v57  ;;  %v1554_v60 = vadd.f32 %v2662_v30, %v1510_v32  ;;  %v1511_v61 = vmul.f32 %v2655_v19, %v1429_v33  ;;  %v1431_v62 = vadd.f32 %v1430_v58, %v1317_v34  ;;  %v1321_v63 = vpop.f32.mrf.mxu0 }
 0x16d   : > { %v1434_v0 = vpop.f32.mrf.mxu1 }
 0x16e   : > { %v2033_v1 = vpack.c.bf16 %v1554_v60, %v1553_v59  ;;  %v1512_v2 = vmul.f32 %v2657_v24, %v1431_v62  ;;  %v1435_v3 = vadd.f32 %v1434_v0, %v1321_v63  ;;  %v1323_v4 = vpop.f32.mrf.mxu0  ;;  %v1555_v6 = vadd.f32 %v2660_v28, %v1511_v61 }
 0x16f   : > { %v1436_v5 = vpop.f32.mrf.mxu1 }
 0x170   : > { %1679 = vst [vmem:[%s2671_s15 + $0x10] sm:$0xff] %v2033_v1  ;;  %v1556_v7 = vadd.f32 %v2662_v30, %v1512_v2  ;;  %v1513_v8 = vmul.f32 %v2655_v19, %v1435_v3  ;;  %v1437_v9 = vadd.f32 %v1436_v5, %v1323_v4  ;;  %v1325_v10 = vpop.f32.mrf.mxu0 }
 0x171   : > { %v1438_v11 = vpop.f32.mrf.mxu1 }
 0x172   : > { %v2034_v12 = vpack.c.bf16 %v1556_v7, %v1555_v6  ;;  %v1514_v13 = vmul.f32 %v2657_v24, %v1437_v9  ;;  %v1439_v14 = vadd.f32 %v1438_v11, %v1325_v10  ;;  %v1327_v15 = vpop.f32.mrf.mxu0  ;;  %v1557_v17 = vadd.f32 %v2660_v28, %v1513_v8 }
 0x173   : > { %v1440_v16 = vpop.f32.mrf.mxu1 }
 0x174   : > { %1680 = vst [vmem:[%s2671_s15 + $0x18] sm:$0xff] %v2034_v12  ;;  %v1558_v18 = vadd.f32 %v2662_v30, %v1514_v13  ;;  %v1515_v20 = vmul.f32 %v2655_v19, %v1439_v14  ;;  %v1441_v21 = vadd.f32 %v1440_v16, %v1327_v15  ;;  %v1331_v22 = vpop.f32.mrf.mxu0 }
 0x175   : > { %v1444_v23 = vpop.f32.mrf.mxu1 }
 0x176   : > { %v2035_v25 = vpack.c.bf16 %v1558_v18, %v1557_v17  ;;  %v1516_v26 = vmul.f32 %v2657_v24, %v1441_v21  ;;  %v1445_v27 = vadd.f32 %v1444_v23, %v1331_v22  ;;  %v1333_v29 = vpop.f32.mrf.mxu0  ;;  %v1559_v35 = vadd.f32 %v2660_v28, %v1515_v20 }
 0x177   : > { %v1446_v31 = vpop.f32.mrf.mxu1 }
 0x178   : > { %1681 = vst [vmem:[%s2671_s15 + $0x20] sm:$0xff] %v2035_v25  ;;  %v1560_v36 = vadd.f32 %v2662_v30, %v1516_v26  ;;  %v1517_v37 = vmul.f32 %v2655_v19, %v1445_v27  ;;  %v1447_v38 = vadd.f32 %v1446_v31, %v1333_v29  ;;  %v1335_v39 = vpop.f32.mrf.mxu0 }
 0x179   : > { %v1448_v40 = vpop.f32.mrf.mxu1 }
 0x17a   : > { %v2036_v41 = vpack.c.bf16 %v1560_v36, %v1559_v35  ;;  %v1518_v42 = vmul.f32 %v2657_v24, %v1447_v38  ;;  %v1449_v43 = vadd.f32 %v1448_v40, %v1335_v39  ;;  %v1337_v44 = vpop.f32.mrf.mxu0  ;;  %v1561_v46 = vadd.f32 %v2660_v28, %v1517_v37 }
 0x17b   : > { %v1450_v45 = vpop.f32.mrf.mxu1 }
 0x17c   : > { %1682 = vst [vmem:[%s2671_s15 + $0x28] sm:$0xff] %v2036_v41  ;;  %v1562_v47 = vadd.f32 %v2662_v30, %v1518_v42  ;;  %v1519_v48 = vmul.f32 %v2655_v19, %v1449_v43  ;;  %v1451_v49 = vadd.f32 %v1450_v45, %v1337_v44  ;;  %v1341_v50 = vpop.f32.mrf.mxu0 }
 0x17d   : > { %v1454_v51 = vpop.f32.mrf.mxu1 }
 0x17e   : > { %v2037_v52 = vpack.c.bf16 %v1562_v47, %v1561_v46  ;;  %v1520_v53 = vmul.f32 %v2657_v24, %v1451_v49  ;;  %v1455_v54 = vadd.f32 %v1454_v51, %v1341_v50  ;;  %v1343_v55 = vpop.f32.mrf.mxu0  ;;  %v1563_v57 = vadd.f32 %v2660_v28, %v1519_v48 }
 0x17f   : > { %v1456_v56 = vpop.f32.mrf.mxu1 }
 0x180   : > { %1683 = vst [vmem:[%s2671_s15 + $0x30] sm:$0xff] %v2037_v52  ;;  %v1564_v32 = vadd.f32 %v2662_v30, %v1520_v53  ;;  %v1521_v33 = vmul.f32 %v2655_v19, %v1455_v54  ;;  %v1457_v34 = vadd.f32 %v1456_v56, %v1343_v55  ;;  %v1345_v58 = vpop.f32.mrf.mxu0 }
 0x181   : > { %v1458_v59 = vpop.f32.mrf.mxu1 }
 0x182   : > { %v2038_v60 = vpack.c.bf16 %v1564_v32, %v1563_v57  ;;  %v1522_v61 = vmul.f32 %v2657_v24, %v1457_v34  ;;  %v1459_v62 = vadd.f32 %v1458_v59, %v1345_v58  ;;  %v1347_v63 = vpop.f32.mrf.mxu0  ;;  %v1565_v1 = vadd.f32 %v2660_v28, %v1521_v33 }
 0x183   : > { %v1460_v0 = vpop.f32.mrf.mxu1 }
 0x184   : > { %1684 = vst [vmem:[%s2671_s15 + $0x38] sm:$0xff] %v2038_v60  ;;  %v1566_v2 = vadd.f32 %v2662_v30, %v1522_v61  ;;  %v1523_v3 = vmul.f32 %v2655_v19, %v1459_v62  ;;  %v1461_v4 = vadd.f32 %v1460_v0, %v1347_v63  ;;  %v1351_v5 = vpop.f32.mrf.mxu0 }
 0x185   : > { %v1464_v6 = vpop.f32.mrf.mxu1 }
 0x186   : > { %v2039_v7 = vpack.c.bf16 %v1566_v2, %v1565_v1  ;;  %v1524_v8 = vmul.f32 %v2657_v24, %v1461_v4  ;;  %v1465_v9 = vadd.f32 %v1464_v6, %v1351_v5  ;;  %v1353_v10 = vpop.f32.mrf.mxu0  ;;  %v1567_v12 = vadd.f32 %v2660_v28, %v1523_v3 }
 0x187   : > { %v1466_v11 = vpop.f32.mrf.mxu1 }
 0x188   : > { %1685 = vst [vmem:[%s2671_s15 + $0x40] sm:$0xff] %v2039_v7  ;;  %v1568_v13 = vadd.f32 %v2662_v30, %v1524_v8  ;;  %v1525_v14 = vmul.f32 %v2655_v19, %v1465_v9  ;;  %v1467_v15 = vadd.f32 %v1466_v11, %v1353_v10  ;;  %v1355_v16 = vpop.f32.mrf.mxu0 }
 0x189   : > { %v1468_v17 = vpop.f32.mrf.mxu1 }
 0x18a   : > { %v2040_v18 = vpack.c.bf16 %v1568_v13, %v1567_v12  ;;  %v1526_v20 = vmul.f32 %v2657_v24, %v1467_v15  ;;  %v1469_v21 = vadd.f32 %v1468_v17, %v1355_v16  ;;  %v1357_v22 = vpop.f32.mrf.mxu0  ;;  %v1569_v25 = vadd.f32 %v2660_v28, %v1525_v14  ;;  %v1772_v16 = vld [vmem:[%s2671_s15 + $0x20] sm:$0xff] (%p2316_p7)  ;;  %v1774_v17 = vld [vmem:[%s2671_s15 + $0x28] sm:$0xff] (%p2316_p7) }
 0x18b   : > { %v1470_v23 = vpop.f32.mrf.mxu1  ;;  %1773 = vst [vmem:[%s1705_s5 + $0x40] sm:$0xff] (%p2316_p7), %v1772_v16  ;;  %1775 = vst [vmem:[%s1705_s5 + $0x50] sm:$0xff] (%p2316_p7), %v1774_v17 }
 0x18c   : > { %1686 = vst [vmem:[%s2671_s15 + $0x48] sm:$0xff] %v2040_v18  ;;  %v1570_v26 = vadd.f32 %v2662_v30, %v1526_v20  ;;  %v1527_v27 = vmul.f32 %v2655_v19, %v1469_v21  ;;  %v1471_v29 = vadd.f32 %v1470_v23, %v1357_v22  ;;  %v1361_v31 = vpop.f32.mrf.mxu0  ;;  %v1776_v18 = vld [vmem:[%s2671_s15 + $0x30] sm:$0xff] (%p2316_p7)  ;;  %v1778_v20 = vld [vmem:[%s2671_s15 + $0x38] sm:$0xff] (%p2316_p7) }
 0x18d   : > { %v1474_v35 = vpop.f32.mrf.mxu1  ;;  %1777 = vst [vmem:[%s1705_s5 + $0x60] sm:$0xff] (%p2316_p7), %v1776_v18  ;;  %1779 = vst [vmem:[%s1705_s5 + $0x70] sm:$0xff] (%p2316_p7), %v1778_v20 }
 0x18e   : > { %v2041_v36 = vpack.c.bf16 %v1570_v26, %v1569_v25  ;;  %v1528_v37 = vmul.f32 %v2657_v24, %v1471_v29  ;;  %v1475_v38 = vadd.f32 %v1474_v35, %v1361_v31  ;;  %v1363_v39 = vpop.f32.mrf.mxu0  ;;  %v1571_v41 = vadd.f32 %v2660_v28, %v1527_v27 }
 0x18f   : > { %v1476_v40 = vpop.f32.mrf.mxu1  ;;  %v1780_v21 = vld [vmem:[%s2671_s15 + $0x40] sm:$0xff] (%p2316_p7) }
 0x190   : > { %1687 = vst [vmem:[%s2671_s15 + $0x50] sm:$0xff] %v2041_v36  ;;  %v1572_v42 = vadd.f32 %v2662_v30, %v1528_v37  ;;  %v1529_v43 = vmul.f32 %v2655_v19, %v1475_v38  ;;  %v1477_v44 = vadd.f32 %v1476_v40, %v1363_v39  ;;  %v1365_v45 = vpop.f32.mrf.mxu0  ;;  %1781 = vst [vmem:[%s1705_s5 + $0x80] sm:$0xff] (%p2316_p7), %v1780_v21 }
 0x191   : > { %v1478_v46 = vpop.f32.mrf.mxu1 }
 0x192   : > { %v2042_v47 = vpack.c.bf16 %v1572_v42, %v1571_v41  ;;  %v1530_v48 = vmul.f32 %v2657_v24, %v1477_v44  ;;  %v1479_v49 = vadd.f32 %v1478_v46, %v1365_v45  ;;  %v1367_v50 = vpop.f32.mrf.mxu0  ;;  %v1573_v52 = vadd.f32 %v2660_v28, %v1529_v43 }
 0x193   : > { %v1480_v51 = vpop.f32.mrf.mxu1  ;;  %v1782_v22 = vld [vmem:[%s2671_s15 + $0x48] sm:$0xff] (%p2316_p7) }
 0x194   : > { %1688 = vst [vmem:[%s2671_s15 + $0x58] sm:$0xff] %v2042_v47  ;;  %v1574_v53 = vadd.f32 %v2662_v30, %v1530_v48  ;;  %v1531_v54 = vmul.f32 %v2655_v19, %v1479_v49  ;;  %v1481_v55 = vadd.f32 %v1480_v51, %v1367_v50  ;;  %v1371_v56 = vpop.f32.mrf.mxu0  ;;  %1783 = vst [vmem:[%s1705_s5 + $0x90] sm:$0xff] (%p2316_p7), %v1782_v22 }
 0x195   : > { %v1484_v57 = vpop.f32.mrf.mxu1 }
 0x196   : > { %v2043_v32 = vpack.c.bf16 %v1574_v53, %v1573_v52  ;;  %v1532_v33 = vmul.f32 %v2657_v24, %v1481_v55  ;;  %v1485_v34 = vadd.f32 %v1484_v57, %v1371_v56  ;;  %v1373_v58 = vpop.f32.mrf.mxu0  ;;  %v1575_v60 = vadd.f32 %v2660_v28, %v1531_v54 }
 0x197   : > { %v1486_v59 = vpop.f32.mrf.mxu1  ;;  %v1784_v23 = vld [vmem:[%s2671_s15 + $0x50] sm:$0xff] (%p2316_p7) }
 0x198   : > { %1689 = vst [vmem:[%s2671_s15 + $0x60] sm:$0xff] %v2043_v32  ;;  %v1576_v61 = vadd.f32 %v2662_v30, %v1532_v33  ;;  %v1533_v62 = vmul.f32 %v2655_v19, %v1485_v34  ;;  %v1487_v63 = vadd.f32 %v1486_v59, %v1373_v58  ;;  %v1375_v0 = vpop.f32.mrf.mxu0  ;;  %1785 = vst [vmem:[%s1705_s5 + $0xa0] sm:$0xff] (%p2316_p7), %v1784_v23 }
 0x199   : > { %v1488_v1 = vpop.f32.mrf.mxu1 }
 0x19a   : > { %v2044_v2 = vpack.c.bf16 %v1576_v61, %v1575_v60  ;;  %v1534_v3 = vmul.f32 %v2657_v24, %v1487_v63  ;;  %v1489_v4 = vadd.f32 %v1488_v1, %v1375_v0  ;;  %v1377_v5 = vpop.f32.mrf.mxu0  ;;  %v1577_v7 = vadd.f32 %v2660_v28, %v1533_v62 }
 0x19b   : > { %v1490_v6 = vpop.f32.mrf.mxu1  ;;  %v1786_v25 = vld [vmem:[%s2671_s15 + $0x58] sm:$0xff] (%p2316_p7) }
 0x19c   : > { %1690 = vst [vmem:[%s2671_s15 + $0x68] sm:$0xff] %v2044_v2  ;;  %v1578_v8 = vadd.f32 %v2662_v30, %v1534_v3  ;;  %v1535_v9 = vmul.f32 %v2655_v19, %v1489_v4  ;;  %v1491_v10 = vadd.f32 %v1490_v6, %v1377_v5  ;;  %v1764_v19 = vld [vmem:[%s2671_s15] sm:$0xff] (%p2316_p7)  ;;  %1787 = vst [vmem:[%s1705_s5 + $0xb0] sm:$0xff] (%p2316_p7), %v1786_v25 }
 0x19d   : > { %1765 = vst [vmem:[%s1705_s5] sm:$0xff] (%p2316_p7), %v1764_v19 }
 0x19e   : > { %v2045_v11 = vpack.c.bf16 %v1578_v8, %v1577_v7  ;;  %v1536_v12 = vmul.f32 %v2657_v24, %v1491_v10  ;;  %v1579_v13 = vadd.f32 %v2660_v28, %v1535_v9  ;;  %v1766_v24 = vld [vmem:[%s2671_s15 + $0x8] sm:$0xff] (%p2316_p7)  ;;  %v1768_v28 = vld [vmem:[%s2671_s15 + $0x10] sm:$0xff] (%p2316_p7) }
 0x19f   : > { %1767 = vst [vmem:[%s1705_s5 + $0x10] sm:$0xff] (%p2316_p7), %v1766_v24  ;;  %1769 = vst [vmem:[%s1705_s5 + $0x20] sm:$0xff] (%p2316_p7), %v1768_v28  ;;  %v1788_v26 = vld [vmem:[%s2671_s15 + $0x60] sm:$0xff] (%p2316_p7) }
 0x1a0   : > { %1691 = vst [vmem:[%s2671_s15 + $0x70] sm:$0xff] %v2045_v11  ;;  %v1580_v14 = vadd.f32 %v2662_v30, %v1536_v12  ;;  %1699 = sbr.rel (!%p2316_p7) target bundleno = 429 (0x1ad), region = 101  ;;  %v1770_v30 = vld [vmem:[%s2671_s15 + $0x18] sm:$0xff] (%p2316_p7)  ;;  %1789 = vst [vmem:[%s1705_s5 + $0xc0] sm:$0xff] (%p2316_p7), %v1788_v26 }
 0x1a1   : > { %1771 = vst [vmem:[%s1705_s5 + $0x30] sm:$0xff] (%p2316_p7), %v1770_v30 }
 0x1a2   : > { %v2046_v15 = vpack.c.bf16 %v1580_v14, %v1579_v13 }
 0x1a3   : > { %v1790_v27 = vld [vmem:[%s2671_s15 + $0x68] sm:$0xff] (%p2316_p7) }
 0x1a4   : > { %1692 = vst [vmem:[%s2671_s15 + $0x78] sm:$0xff] %v2046_v15  ;;  %1791 = vst [vmem:[%s1705_s5 + $0xd0] sm:$0xff] (%p2316_p7), %v1790_v27 }
 0x1a7   : > { %v1792_v29 = vld [vmem:[%s2671_s15 + $0x70] sm:$0xff] }
 0x1a8   : > { %1793 = vst [vmem:[%s1705_s5 + $0xe0] sm:$0xff] %v1792_v29 }
 0x1ab   : > { %v1794_v31 = vld [vmem:[%s2671_s15 + $0x78] sm:$0xff] }
 0x1ac   : > { %1795 = vst [vmem:[%s1705_s5 + $0xf0] sm:$0xff] %v1794_v31 }
 0x1ad PF: > { %s14_s19 = sadd.s32 1, %s2249_s19   ;;  %s2792_s15 = smov %s2237_s16 }
 0x1ae   : > { %p11_p13 = scmp.ge.s32.totalorder %s14_s19, 4   ;;  %s2793_s16 = smov %s2322_s26 }
 0x1af   : > { %s2794_s17 = smov %s2245_s18  ;;  %s2795_s18 = smov %s2797_s21 }
 0x1b0   :  { %13 = sbr.rel (!%p11_p13) target bundleno = 3 (0x3), region = 181 }

// kernel: bottleneck_apply.4
= control target key start
LH: loop header
LB: loop body
LE: loop exit
PB: predicated region body
PF: predicated region fallthrough
CT: control target
= control target key end

     0   :  { %v3185_v0 = vmov 0   ;;  %s3967_s1 = inlined_call_operand.vmem [shape: bf16[512,128], index: 1, kind: input, shape index: {}]   ;;  %s3968_s0 = inlined_call_operand.vmem [shape: bf16[512,512], index: 0, kind: input, shape index: {}]   ;;  %s3969_s2 = inlined_call_operand.vmem [shape: f32[1,128], index: 2, kind: input, shape index: {}]   ;;  %s3970_s3 = inlined_call_operand.vmem [shape: f32[1,128], index: 3, kind: input, shape index: {}]   ;;  %s3971_s4 = inlined_call_operand.vmem [shape: bf16[512,128], index: 4, kind: output, shape index: {}]  }
   0x1   :  { %1174 = vmatprep.subr.bf16.mxu0 %v3185_v0  ;;  %1463 = vmatprep.subr.bf16.mxu1 %v3185_v0  ;;  %v2959_v1 = vld [vmem:[%s3967_s1 + $0x38] sm:$0xff]   ;;  %v2961_v3 = vld [vmem:[%s3967_s1 + $0x30] sm:$0xff]   ;;  %v2963_v5 = vld [vmem:[%s3967_s1 + $0x28] sm:$0xff]  }
   0x2   :  { %v2960_v2 = vld [vmem:[%s3967_s1 + $0xb8] sm:$0xff]   ;;  %1175 = vmatpush1.bf16.msra.mxu0 %v2959_v1  ;;  %v2962_v4 = vld [vmem:[%s3967_s1 + $0xb0] sm:$0xff]   ;;  %v2964_v6 = vld [vmem:[%s3967_s1 + $0xa8] sm:$0xff]  }
   0x3   :  { %1464 = vmatpush1.bf16.msra.mxu1 %v2960_v2  ;;  %1176 = vmatprep.subr.bf16.mxu0 %v3185_v0  ;;  %v2965_v7 = vld [vmem:[%s3967_s1 + $0x20] sm:$0xff]   ;;  %v2967_v9 = vld [vmem:[%s3967_s1 + $0x18] sm:$0xff]   ;;  %v2969_v11 = vld [vmem:[%s3967_s1 + $0x10] sm:$0xff]  }
   0x4   :  { %1465 = vmatprep.subr.bf16.mxu1 %v3185_v0  ;;  %v2966_v8 = vld [vmem:[%s3967_s1 + $0xa0] sm:$0xff]   ;;  %v2968_v10 = vld [vmem:[%s3967_s1 + $0x98] sm:$0xff]   ;;  %v2970_v12 = vld [vmem:[%s3967_s1 + $0x90] sm:$0xff]  }
   0x5   :  { %v2971_v13 = vld [vmem:[%s3967_s1 + $0x8] sm:$0xff]   ;;  %v2973_v15 = vld [vmem:[%s3967_s1] sm:$0xff]   ;;  %v2975_v17 = vld [vmem:[%s3967_s1 + $0x78] sm:$0xff]  }
   0x6   :  { %1177 = vmatpush1.bf16.msra.mxu0 %v2961_v3  ;;  %v2972_v14 = vld [vmem:[%s3967_s1 + $0x88] sm:$0xff]   ;;  %v2974_v16 = vld [vmem:[%s3967_s1 + $0x80] sm:$0xff]   ;;  %v2976_v18 = vld [vmem:[%s3967_s1 + $0xf8] sm:$0xff]  }
   0x7   :  { %1466 = vmatpush1.bf16.msra.mxu1 %v2962_v4  ;;  %1178 = vmatprep.subr.bf16.mxu0 %v3185_v0  ;;  %v2993_v19 = vld [vmem:[%s3968_s0 + $0x4] ss:$16 sps:$4 sm:$0xff]   ;;  %v2996_v21 = vld [vmem:[%s3968_s0 + $0xc] ss:$16 sps:$4 sm:$0xff]   ;;  %v2991_v35 = vld [vmem:[%s3968_s0] ss:$16 sps:$4 sm:$0xff]  }
   0x8   :  { %1467 = vmatprep.subr.bf16.mxu1 %v3185_v0  ;;  %v2977_v20 = vld [vmem:[%s3967_s1 + $0x70] sm:$0xff]   ;;  %1206 = vmatprep.mubr.bf16.mxu0 %v2993_v19  ;;  %v2979_v23 = vld [vmem:[%s3967_s1 + $0x68] sm:$0xff]   ;;  %v2981_v25 = vld [vmem:[%s3967_s1 + $0x60] sm:$0xff]  }
   0x9   :  { %v2978_v22 = vld [vmem:[%s3967_s1 + $0xf0] sm:$0xff]   ;;  %1495 = vmatprep.mubr.bf16.mxu1 %v2996_v21  ;;  %v2980_v24 = vld [vmem:[%s3967_s1 + $0xe8] sm:$0xff]   ;;  %v2982_v26 = vld [vmem:[%s3967_s1 + $0xe0] sm:$0xff]  }
   0xa   :  { %1179 = vmatpush1.bf16.msra.mxu0 %v2963_v5  ;;  %v2983_v27 = vld [vmem:[%s3967_s1 + $0x58] sm:$0xff]   ;;  %v2985_v29 = vld [vmem:[%s3967_s1 + $0x50] sm:$0xff]   ;;  %v2987_v31 = vld [vmem:[%s3967_s1 + $0x48] sm:$0xff]  }
   0xb   :  { %1468 = vmatpush1.bf16.msra.mxu1 %v2964_v6  ;;  %1180 = vmatprep.subr.bf16.mxu0 %v3185_v0  ;;  %v2984_v28 = vld [vmem:[%s3967_s1 + $0xd8] sm:$0xff]   ;;  %v2986_v30 = vld [vmem:[%s3967_s1 + $0xd0] sm:$0xff]   ;;  %v2988_v32 = vld [vmem:[%s3967_s1 + $0xc8] sm:$0xff]  }
   0xc   :  { %1469 = vmatprep.subr.bf16.mxu1 %v3185_v0  ;;  %v2989_v33 = vld [vmem:[%s3967_s1 + $0x40] sm:$0xff]   ;;  %v2994_v36 = vld [vmem:[%s3968_s0 + $0x8] ss:$16 sps:$4 sm:$0xff]   ;;  %v2999_v38 = vld [vmem:[%s3968_s0 + $0x2c] ss:$16 sps:$4 sm:$0xff]  }
   0xd   :  { %v2990_v34 = vld [vmem:[%s3967_s1 + $0xc0] sm:$0xff]   ;;  %v3002_v40 = vld [vmem:[%s3968_s0 + $0x28] ss:$16 sps:$4 sm:$0xff]   ;;  %v3005_v42 = vld [vmem:[%s3968_s0 + $0x4c] ss:$16 sps:$4 sm:$0xff]  }
   0xe   :  { %1181 = vmatpush1.bf16.msra.mxu0 %v2965_v7  ;;  %v2997_v37 = vld [vmem:[%s3968_s0 + $0x24] ss:$16 sps:$4 sm:$0xff]   ;;  %v3001_v39 = vld [vmem:[%s3968_s0 + $0x20] ss:$16 sps:$4 sm:$0xff]   ;;  %v3008_v44 = vld [vmem:[%s3968_s0 + $0x48] ss:$16 sps:$4 sm:$0xff]  }
   0xf   :  { %1470 = vmatpush1.bf16.msra.mxu1 %v2966_v8  ;;  %1182 = vmatprep.subr.bf16.mxu0 %v3185_v0  ;;  %v3003_v41 = vld [vmem:[%s3968_s0 + $0x44] ss:$16 sps:$4 sm:$0xff]   ;;  %v3007_v43 = vld [vmem:[%s3968_s0 + $0x40] ss:$16 sps:$4 sm:$0xff]   ;;  %v3011_v46 = vld [vmem:[%s3968_s0 + $0x6c] ss:$16 sps:$4 sm:$0xff]  }
  0x10   :  { %1471 = vmatprep.subr.bf16.mxu1 %v3185_v0  ;;  %v3009_v45 = vld [vmem:[%s3968_s0 + $0x64] ss:$16 sps:$4 sm:$0xff]   ;;  %v3013_v47 = vld [vmem:[%s3968_s0 + $0x60] ss:$16 sps:$4 sm:$0xff]   ;;  %v3014_v48 = vld [vmem:[%s3968_s0 + $0x68] ss:$16 sps:$4 sm:$0xff]  }
  0x11   :  { %v3015_v49 = vld [vmem:[%s3968_s0 + $0x84] ss:$16 sps:$4 sm:$0xff]   ;;  %v3017_v50 = vld [vmem:[%s3968_s0 + $0x8c] ss:$16 sps:$4 sm:$0xff]   ;;  %v3019_v51 = vld [vmem:[%s3968_s0 + $0x80] ss:$16 sps:$4 sm:$0xff]  }
  0x12   :  { %1183 = vmatpush1.bf16.msra.mxu0 %v2967_v9  ;;  %v3020_v52 = vld [vmem:[%s3968_s0 + $0x88] ss:$16 sps:$4 sm:$0xff]   ;;  %v3021_v53 = vld [vmem:[%s3968_s0 + $0xa4] ss:$16 sps:$4 sm:$0xff]   ;;  %v3023_v54 = vld [vmem:[%s3968_s0 + $0xac] ss:$16 sps:$4 sm:$0xff]  }
  0x13   :  { %1472 = vmatpush1.bf16.msra.mxu1 %v2968_v10  ;;  %1184 = vmatprep.subr.bf16.mxu0 %v3185_v0  ;;  %v3025_v55 = vld [vmem:[%s3968_s0 + $0xa0] ss:$16 sps:$4 sm:$0xff]   ;;  %v3026_v56 = vld [vmem:[%s3968_s0 + $0xa8] ss:$16 sps:$4 sm:$0xff]   ;;  %v3027_v57 = vld [vmem:[%s3968_s0 + $0xc4] ss:$16 sps:$4 sm:$0xff]  }
  0x14   :  { %1473 = vmatprep.subr.bf16.mxu1 %v3185_v0  ;;  %v3029_v58 = vld [vmem:[%s3968_s0 + $0xcc] ss:$16 sps:$4 sm:$0xff]   ;;  %v3031_v59 = vld [vmem:[%s3968_s0 + $0xc0] ss:$16 sps:$4 sm:$0xff]   ;;  %v3032_v60 = vld [vmem:[%s3968_s0 + $0xc8] ss:$16 sps:$4 sm:$0xff]  }
  0x15   :  { %v3033_v61 = vld [vmem:[%s3968_s0 + $0xe4] ss:$16 sps:$4 sm:$0xff]   ;;  %v3035_v62 = vld [vmem:[%s3968_s0 + $0xec] ss:$16 sps:$4 sm:$0xff]   ;;  %v3037_v63 = vld [vmem:[%s3968_s0 + $0xe0] ss:$16 sps:$4 sm:$0xff]  }
  0x16   :  { %1185 = vmatpush1.bf16.msra.mxu0 %v2969_v11  ;;  %v3039_v1 = vld [vmem:[%s3968_s0 + $0x104] ss:$16 sps:$4 sm:$0xff]   ;;  %v3041_v2 = vld [vmem:[%s3968_s0 + $0x10c] ss:$16 sps:$4 sm:$0xff]   ;;  %v3043_v3 = vld [vmem:[%s3968_s0 + $0x100] ss:$16 sps:$4 sm:$0xff]  }
  0x17   :  { %1474 = vmatpush1.bf16.msra.mxu1 %v2970_v12  ;;  %1186 = vmatprep.subr.bf16.mxu0 %v3185_v0  ;;  %v3044_v4 = vld [vmem:[%s3968_s0 + $0x108] ss:$16 sps:$4 sm:$0xff]   ;;  %v3045_v5 = vld [vmem:[%s3968_s0 + $0x124] ss:$16 sps:$4 sm:$0xff]   ;;  %v3047_v6 = vld [vmem:[%s3968_s0 + $0x12c] ss:$16 sps:$4 sm:$0xff]  }
  0x18   :  { %1475 = vmatprep.subr.bf16.mxu1 %v3185_v0  ;;  %v3049_v7 = vld [vmem:[%s3968_s0 + $0x120] ss:$16 sps:$4 sm:$0xff]   ;;  %v3050_v8 = vld [vmem:[%s3968_s0 + $0x128] ss:$16 sps:$4 sm:$0xff]   ;;  %v3051_v9 = vld [vmem:[%s3968_s0 + $0x144] ss:$16 sps:$4 sm:$0xff]  }
  0x19   :  { %v3053_v10 = vld [vmem:[%s3968_s0 + $0x14c] ss:$16 sps:$4 sm:$0xff]   ;;  %v3055_v11 = vld [vmem:[%s3968_s0 + $0x140] ss:$16 sps:$4 sm:$0xff]   ;;  %v3056_v12 = vld [vmem:[%s3968_s0 + $0x148] ss:$16 sps:$4 sm:$0xff]  }
  0x1a   :  { %1187 = vmatpush1.bf16.msra.mxu0 %v2971_v13  ;;  %v3057_v13 = vld [vmem:[%s3968_s0 + $0x164] ss:$16 sps:$4 sm:$0xff]   ;;  %v3067_v19 = vld [vmem:[%s3968_s0 + $0x180] ss:$16 sps:$4 sm:$0xff]  }
  0x1b   :  { %1476 = vmatpush1.bf16.msra.mxu1 %v2972_v14  ;;  %1188 = vmatprep.subr.bf16.mxu0 %v3185_v0  ;;  %v3059_v14 = vld [vmem:[%s3968_s0 + $0x16c] ss:$16 sps:$4 sm:$0xff]   ;;  %v3069_v21 = vld [vmem:[%s3968_s0 + $0x1a4] ss:$16 sps:$4 sm:$0xff]  }
  0x1c   :  { %1477 = vmatprep.subr.bf16.mxu1 %v3185_v0 }
  0x1e   :  { %1189 = vmatpush1.bf16.msra.mxu0 %v2973_v15  ;;  %v3061_v15 = vld [vmem:[%s3968_s0 + $0x160] ss:$16 sps:$4 sm:$0xff]  }
  0x1f   :  { %1478 = vmatpush1.bf16.msra.mxu1 %v2974_v16  ;;  %1190 = vmatprep.subr.bf16.mxu0 %v3185_v0  ;;  %v3062_v16 = vld [vmem:[%s3968_s0 + $0x168] ss:$16 sps:$4 sm:$0xff]  }
  0x20   :  { %1479 = vmatprep.subr.bf16.mxu1 %v3185_v0 }
  0x22   :  { %1191 = vmatpush2.bf16.msra.mxu0 %v2975_v17  ;;  %v3063_v17 = vld [vmem:[%s3968_s0 + $0x184] ss:$16 sps:$4 sm:$0xff]  }
  0x23   :  { %1480 = vmatpush2.bf16.msra.mxu1 %v2976_v18  ;;  %1192 = vmatprep.subr.bf16.mxu0 %v3185_v0  ;;  %v3065_v18 = vld [vmem:[%s3968_s0 + $0x18c] ss:$16 sps:$4 sm:$0xff]  }
  0x24   :  { %1481 = vmatprep.subr.bf16.mxu1 %v3185_v0 }
  0x26   :  { %1193 = vmatpush2.bf16.msra.mxu0 %v2977_v20  ;;  %v3068_v20 = vld [vmem:[%s3968_s0 + $0x188] ss:$16 sps:$4 sm:$0xff]  }
  0x27   :  { %1482 = vmatpush2.bf16.msra.mxu1 %v2978_v22  ;;  %1194 = vmatprep.subr.bf16.mxu0 %v3185_v0  ;;  %v3071_v22 = vld [vmem:[%s3968_s0 + $0x1ac] ss:$16 sps:$4 sm:$0xff]  }
  0x28   :  { %1483 = vmatprep.subr.bf16.mxu1 %v3185_v0 }
  0x2a   :  { %1195 = vmatpush2.bf16.msra.mxu0 %v2979_v23  ;;  %v3073_v23 = vld [vmem:[%s3968_s0 + $0x1a0] ss:$16 sps:$4 sm:$0xff]  }
  0x2b   :  { %1484 = vmatpush2.bf16.msra.mxu1 %v2980_v24  ;;  %1196 = vmatprep.subr.bf16.mxu0 %v3185_v0  ;;  %v3074_v24 = vld [vmem:[%s3968_s0 + $0x1a8] ss:$16 sps:$4 sm:$0xff]  }
  0x2c   :  { %1485 = vmatprep.subr.bf16.mxu1 %v3185_v0 }
  0x2e   :  { %1197 = vmatpush2.bf16.msra.mxu0 %v2981_v25  ;;  %v3075_v25 = vld [vmem:[%s3968_s0 + $0x1c4] ss:$16 sps:$4 sm:$0xff]  }
  0x2f   :  { %1486 = vmatpush2.bf16.msra.mxu1 %v2982_v26  ;;  %1198 = vmatprep.subr.bf16.mxu0 %v3185_v0  ;;  %v3077_v26 = vld [vmem:[%s3968_s0 + $0x1cc] ss:$16 sps:$4 sm:$0xff]  }
  0x30   :  { %1487 = vmatprep.subr.bf16.mxu1 %v3185_v0 }
  0x32   :  { %1199 = vmatpush2.bf16.msra.mxu0 %v2983_v27  ;;  %v3079_v27 = vld [vmem:[%s3968_s0 + $0x1c0] ss:$16 sps:$4 sm:$0xff]  }
  0x33   :  { %1488 = vmatpush2.bf16.msra.mxu1 %v2984_v28  ;;  %1200 = vmatprep.subr.bf16.mxu0 %v3185_v0  ;;  %v3080_v28 = vld [vmem:[%s3968_s0 + $0x1c8] ss:$16 sps:$4 sm:$0xff]  }
  0x34   :  { %1489 = vmatprep.subr.bf16.mxu1 %v3185_v0 }
  0x36   :  { %1201 = vmatpush2.bf16.msra.mxu0 %v2985_v29  ;;  %v3081_v29 = vld [vmem:[%s3968_s0 + $0x1e4] ss:$16 sps:$4 sm:$0xff]  }
  0x37   :  { %1490 = vmatpush2.bf16.msra.mxu1 %v2986_v30  ;;  %1202 = vmatprep.subr.bf16.mxu0 %v3185_v0  ;;  %v3083_v30 = vld [vmem:[%s3968_s0 + $0x1ec] ss:$16 sps:$4 sm:$0xff]  }
  0x38   :  { %1491 = vmatprep.subr.bf16.mxu1 %v3185_v0 }
  0x3a   :  { %1203 = vmatpush2.bf16.msra.mxu0 %v2987_v31  ;;  %v3085_v31 = vld [vmem:[%s3968_s0 + $0x1e0] ss:$16 sps:$4 sm:$0xff]  }
  0x3b   :  { %1492 = vmatpush2.bf16.msra.mxu1 %v2988_v32  ;;  %1204 = vmatprep.subr.bf16.mxu0 %v3185_v0  ;;  %v3086_v32 = vld [vmem:[%s3968_s0 + $0x1e8] ss:$16 sps:$4 sm:$0xff]  }
  0x3c   :  { %1493 = vmatprep.subr.bf16.mxu1 %v3185_v0  ;;  %v3038_v0 = vld [vmem:[%s3968_s0 + $0xe8] ss:$16 sps:$4 sm:$0xff]  }
  0x3e   :  { %1205 = vmatpush2.bf16.msra.mxu0 %v2989_v33  ;;  %v3087_v33 = vld [vmem:[%s3968_s0 + $0x204] ss:$16 sps:$4 sm:$0xff]  }
  0x3f   :  { %1494 = vmatpush2.bf16.msra.mxu1 %v2990_v34  ;;  %v3089_v34 = vld [vmem:[%s3968_s0 + $0x20c] ss:$16 sps:$4 sm:$0xff]  }
  0x41   :  { %1207 = vmatmul.mubr.bf16.vlgmr.msra.gmra.mxu0 %v2991_v35  ;;  %v3091_v35 = vld [vmem:[%s3968_s0 + $0x200] ss:$16 sps:$4 sm:$0xff]  }
  0x42   :  { %1496 = vmatmul.mubr.bf16.vlgmr.msra.gmra.mxu1 %v2994_v36  ;;  %1214 = vmatprep.mubr.bf16.mxu0 %v2997_v37  ;;  %v3092_v36 = vld [vmem:[%s3968_s0 + $0x208] ss:$16 sps:$4 sm:$0xff]   ;;  %v3093_v37 = vld [vmem:[%s3968_s0 + $0x224] ss:$16 sps:$4 sm:$0xff]  }
  0x43   :  { %1503 = vmatprep.mubr.bf16.mxu1 %v2999_v38  ;;  %v3095_v38 = vld [vmem:[%s3968_s0 + $0x22c] ss:$16 sps:$4 sm:$0xff]  }
  0x49   :  { %1215 = vmatmul.mubr.bf16.gmra.mxu0 %v3001_v39  ;;  %v3097_v39 = vld [vmem:[%s3968_s0 + $0x220] ss:$16 sps:$4 sm:$0xff]  }
  0x4a   :  { %1504 = vmatmul.mubr.bf16.gmra.mxu1 %v3002_v40  ;;  %1222 = vmatprep.mubr.bf16.mxu0 %v3003_v41  ;;  %v3098_v40 = vld [vmem:[%s3968_s0 + $0x228] ss:$16 sps:$4 sm:$0xff]   ;;  %v3099_v41 = vld [vmem:[%s3968_s0 + $0x244] ss:$16 sps:$4 sm:$0xff]  }
  0x4b   :  { %1511 = vmatprep.mubr.bf16.mxu1 %v3005_v42  ;;  %v3101_v42 = vld [vmem:[%s3968_s0 + $0x24c] ss:$16 sps:$4 sm:$0xff]  }
  0x51   :  { %1223 = vmatmul.mubr.bf16.gmra.mxu0 %v3007_v43  ;;  %v3103_v43 = vld [vmem:[%s3968_s0 + $0x240] ss:$16 sps:$4 sm:$0xff]  }
  0x52   :  { %1512 = vmatmul.mubr.bf16.gmra.mxu1 %v3008_v44  ;;  %1230 = vmatprep.mubr.bf16.mxu0 %v3009_v45  ;;  %v3104_v44 = vld [vmem:[%s3968_s0 + $0x248] ss:$16 sps:$4 sm:$0xff]   ;;  %v3105_v45 = vld [vmem:[%s3968_s0 + $0x264] ss:$16 sps:$4 sm:$0xff]  }
  0x53   :  { %1519 = vmatprep.mubr.bf16.mxu1 %v3011_v46  ;;  %v3107_v46 = vld [vmem:[%s3968_s0 + $0x26c] ss:$16 sps:$4 sm:$0xff]  }
  0x59   :  { %1231 = vmatmul.mubr.bf16.gmra.mxu0 %v3013_v47  ;;  %v3109_v47 = vld [vmem:[%s3968_s0 + $0x260] ss:$16 sps:$4 sm:$0xff]  }
  0x5a   :  { %1520 = vmatmul.mubr.bf16.gmra.mxu1 %v3014_v48  ;;  %1238 = vmatprep.mubr.bf16.mxu0 %v3015_v49  ;;  %v3110_v48 = vld [vmem:[%s3968_s0 + $0x268] ss:$16 sps:$4 sm:$0xff]   ;;  %v3111_v49 = vld [vmem:[%s3968_s0 + $0x284] ss:$16 sps:$4 sm:$0xff]  }
  0x5b   :  { %1527 = vmatprep.mubr.bf16.mxu1 %v3017_v50  ;;  %v3113_v50 = vld [vmem:[%s3968_s0 + $0x28c] ss:$16 sps:$4 sm:$0xff]  }
  0x61   :  { %1239 = vmatmul.mubr.bf16.gmra.mxu0 %v3019_v51  ;;  %v3115_v51 = vld [vmem:[%s3968_s0 + $0x280] ss:$16 sps:$4 sm:$0xff]  }
  0x62   :  { %1528 = vmatmul.mubr.bf16.gmra.mxu1 %v3020_v52  ;;  %1246 = vmatprep.mubr.bf16.mxu0 %v3021_v53  ;;  %v3116_v52 = vld [vmem:[%s3968_s0 + $0x288] ss:$16 sps:$4 sm:$0xff]   ;;  %v3117_v53 = vld [vmem:[%s3968_s0 + $0x2a4] ss:$16 sps:$4 sm:$0xff]  }
  0x63   :  { %1535 = vmatprep.mubr.bf16.mxu1 %v3023_v54  ;;  %v3119_v54 = vld [vmem:[%s3968_s0 + $0x2ac] ss:$16 sps:$4 sm:$0xff]  }
  0x69   :  { %1247 = vmatmul.mubr.bf16.gmra.mxu0 %v3025_v55  ;;  %v3121_v55 = vld [vmem:[%s3968_s0 + $0x2a0] ss:$16 sps:$4 sm:$0xff]  }
  0x6a   :  { %1536 = vmatmul.mubr.bf16.gmra.mxu1 %v3026_v56  ;;  %1254 = vmatprep.mubr.bf16.mxu0 %v3027_v57  ;;  %v3122_v56 = vld [vmem:[%s3968_s0 + $0x2a8] ss:$16 sps:$4 sm:$0xff]   ;;  %v3123_v57 = vld [vmem:[%s3968_s0 + $0x2c4] ss:$16 sps:$4 sm:$0xff]  }
  0x6b   :  { %1543 = vmatprep.mubr.bf16.mxu1 %v3029_v58  ;;  %v3125_v58 = vld [vmem:[%s3968_s0 + $0x2cc] ss:$16 sps:$4 sm:$0xff]  }
  0x71   :  { %1255 = vmatmul.mubr.bf16.gmra.mxu0 %v3031_v59  ;;  %v3127_v59 = vld [vmem:[%s3968_s0 + $0x2c0] ss:$16 sps:$4 sm:$0xff]  }
  0x72   :  { %1544 = vmatmul.mubr.bf16.gmra.mxu1 %v3032_v60  ;;  %1262 = vmatprep.mubr.bf16.mxu0 %v3033_v61  ;;  %v3128_v60 = vld [vmem:[%s3968_s0 + $0x2c8] ss:$16 sps:$4 sm:$0xff]   ;;  %v3129_v61 = vld [vmem:[%s3968_s0 + $0x2e4] ss:$16 sps:$4 sm:$0xff]  }
  0x73   :  { %1551 = vmatprep.mubr.bf16.mxu1 %v3035_v62  ;;  %v3131_v62 = vld [vmem:[%s3968_s0 + $0x2ec] ss:$16 sps:$4 sm:$0xff]  }
  0x79   :  { %1263 = vmatmul.mubr.bf16.gmra.mxu0 %v3037_v63  ;;  %v3133_v63 = vld [vmem:[%s3968_s0 + $0x2e0] ss:$16 sps:$4 sm:$0xff]  }
  0x7a   :  { %1552 = vmatmul.mubr.bf16.gmra.mxu1 %v3038_v0  ;;  %1270 = vmatprep.mubr.bf16.mxu0 %v3039_v1  ;;  %v3134_v0 = vld [vmem:[%s3968_s0 + $0x2e8] ss:$16 sps:$4 sm:$0xff]   ;;  %v3135_v1 = vld [vmem:[%s3968_s0 + $0x304] ss:$16 sps:$4 sm:$0xff]  }
  0x7b   :  { %1559 = vmatprep.mubr.bf16.mxu1 %v3041_v2  ;;  %v3137_v2 = vld [vmem:[%s3968_s0 + $0x30c] ss:$16 sps:$4 sm:$0xff]  }
  0x81   :  { %1271 = vmatmul.mubr.bf16.gmra.mxu0 %v3043_v3  ;;  %v3139_v3 = vld [vmem:[%s3968_s0 + $0x300] ss:$16 sps:$4 sm:$0xff]  }
  0x82   :  { %1560 = vmatmul.mubr.bf16.gmra.mxu1 %v3044_v4  ;;  %1278 = vmatprep.mubr.bf16.mxu0 %v3045_v5  ;;  %v3140_v4 = vld [vmem:[%s3968_s0 + $0x308] ss:$16 sps:$4 sm:$0xff]   ;;  %v3141_v5 = vld [vmem:[%s3968_s0 + $0x324] ss:$16 sps:$4 sm:$0xff]  }
  0x83   :  { %1567 = vmatprep.mubr.bf16.mxu1 %v3047_v6  ;;  %v3143_v6 = vld [vmem:[%s3968_s0 + $0x32c] ss:$16 sps:$4 sm:$0xff]  }
  0x89   :  { %1279 = vmatmul.mubr.bf16.gmra.mxu0 %v3049_v7 }
  0x8a   :  { %1568 = vmatmul.mubr.bf16.gmra.mxu1 %v3050_v8  ;;  %1286 = vmatprep.mubr.bf16.mxu0 %v3051_v9  ;;  %v3648_v9 = vld [vmem:[%s3969_s2] ss:$0 sm:$0xff] }
  0x8b   :  { %1575 = vmatprep.mubr.bf16.mxu1 %v3053_v10 }
  0x91   :  { %1287 = vmatmul.mubr.bf16.gmra.mxu0 %v3055_v11 }
  0x92   :  { %1576 = vmatmul.mubr.bf16.gmra.mxu1 %v3056_v12  ;;  %1294 = vmatprep.mubr.bf16.mxu0 %v3057_v13 }
  0x93   :  { %1583 = vmatprep.mubr.bf16.mxu1 %v3059_v14 }
  0x99   :  { %1295 = vmatmul.mubr.bf16.gmra.mxu0 %v3061_v15  ;;  %v3145_v15 = vld [vmem:[%s3968_s0 + $0x320] ss:$16 sps:$4 sm:$0xff]  }
  0x9a   :  { %1584 = vmatmul.mubr.bf16.gmra.mxu1 %v3062_v16  ;;  %1302 = vmatprep.mubr.bf16.mxu0 %v3063_v17  ;;  %v3657_v16 = vld [vmem:[%s3970_s3] ss:$0 sm:$0xff] }
  0x9b   :  { %1591 = vmatprep.mubr.bf16.mxu1 %v3065_v18  ;;  %v3146_v18 = vld [vmem:[%s3968_s0 + $0x328] ss:$16 sps:$4 sm:$0xff]  }
  0xa1   :  { %1303 = vmatmul.mubr.bf16.gmra.mxu0 %v3067_v19  ;;  %v3147_v19 = vld [vmem:[%s3968_s0 + $0x344] ss:$16 sps:$4 sm:$0xff]  }
  0xa2   :  { %1592 = vmatmul.mubr.bf16.gmra.mxu1 %v3068_v20  ;;  %1310 = vmatprep.mubr.bf16.mxu0 %v3069_v21 }
  0xa3   :  { %1599 = vmatprep.mubr.bf16.mxu1 %v3071_v22  ;;  %v3149_v22 = vld [vmem:[%s3968_s0 + $0x34c] ss:$16 sps:$4 sm:$0xff]  }
  0xa9   :  { %1311 = vmatmul.mubr.bf16.gmra.mxu0 %v3073_v23 }
  0xaa   :  { %1600 = vmatmul.mubr.bf16.gmra.mxu1 %v3074_v24  ;;  %1318 = vmatprep.mubr.bf16.mxu0 %v3075_v25 }
  0xab   :  { %1607 = vmatprep.mubr.bf16.mxu1 %v3077_v26 }
  0xb1   :  { %1319 = vmatmul.mubr.bf16.gmra.mxu0 %v3079_v27 }
  0xb2   :  { %1608 = vmatmul.mubr.bf16.gmra.mxu1 %v3080_v28  ;;  %1326 = vmatprep.mubr.bf16.mxu0 %v3081_v29 }
  0xb3   :  { %1615 = vmatprep.mubr.bf16.mxu1 %v3083_v30 }
  0xb9   :  { %1327 = vmatmul.mubr.bf16.gmra.mxu0 %v3085_v31 }
  0xba   :  { %1616 = vmatmul.mubr.bf16.gmra.mxu1 %v3086_v32  ;;  %1334 = vmatprep.mubr.bf16.mxu0 %v3087_v33 }
  0xbb   :  { %1623 = vmatprep.mubr.bf16.mxu1 %v3089_v34 }
  0xc1   :  { %1335 = vmatmul.mubr.bf16.gmra.mxu0 %v3091_v35 }
  0xc2   :  { %1624 = vmatmul.mubr.bf16.gmra.mxu1 %v3092_v36  ;;  %1342 = vmatprep.mubr.bf16.mxu0 %v3093_v37  ;;  %v3151_v36 = vld [vmem:[%s3968_s0 + $0x340] ss:$16 sps:$4 sm:$0xff]  }
  0xc3   :  { %1631 = vmatprep.mubr.bf16.mxu1 %v3095_v38  ;;  %v3152_v38 = vld [vmem:[%s3968_s0 + $0x348] ss:$16 sps:$4 sm:$0xff]  }
  0xc9   :  { %1343 = vmatmul.mubr.bf16.gmra.mxu0 %v3097_v39  ;;  %v3153_v39 = vld [vmem:[%s3968_s0 + $0x364] ss:$16 sps:$4 sm:$0xff]  }
  0xca   :  { %1632 = vmatmul.mubr.bf16.gmra.mxu1 %v3098_v40  ;;  %1350 = vmatprep.mubr.bf16.mxu0 %v3099_v41 }
  0xcb   :  { %1639 = vmatprep.mubr.bf16.mxu1 %v3101_v42 }
  0xd1   :  { %1351 = vmatmul.mubr.bf16.gmra.mxu0 %v3103_v43  ;;  %v3155_v43 = vld [vmem:[%s3968_s0 + $0x36c] ss:$16 sps:$4 sm:$0xff]  }
  0xd2   :  { %1640 = vmatmul.mubr.bf16.gmra.mxu1 %v3104_v44  ;;  %1358 = vmatprep.mubr.bf16.mxu0 %v3105_v45 }
  0xd3   :  { %1647 = vmatprep.mubr.bf16.mxu1 %v3107_v46 }
  0xd9   :  { %1359 = vmatmul.mubr.bf16.gmra.mxu0 %v3109_v47 }
  0xda   :  { %1648 = vmatmul.mubr.bf16.gmra.mxu1 %v3110_v48  ;;  %1366 = vmatprep.mubr.bf16.mxu0 %v3111_v49 }
  0xdb   :  { %1655 = vmatprep.mubr.bf16.mxu1 %v3113_v50 }
  0xe1   :  { %1367 = vmatmul.mubr.bf16.gmra.mxu0 %v3115_v51 }
  0xe2   :  { %1656 = vmatmul.mubr.bf16.gmra.mxu1 %v3116_v52  ;;  %1374 = vmatprep.mubr.bf16.mxu0 %v3117_v53 }
  0xe3   :  { %1663 = vmatprep.mubr.bf16.mxu1 %v3119_v54 }
  0xe9   :  { %1375 = vmatmul.mubr.bf16.gmra.mxu0 %v3121_v55 }
  0xea   :  { %1664 = vmatmul.mubr.bf16.gmra.mxu1 %v3122_v56  ;;  %1382 = vmatprep.mubr.bf16.mxu0 %v3123_v57  ;;  %v3157_v57 = vld [vmem:[%s3968_s0 + $0x360] ss:$16 sps:$4 sm:$0xff]  }
  0xeb   :  { %1671 = vmatprep.mubr.bf16.mxu1 %v3125_v58 }
  0xf1   :  { %1383 = vmatmul.mubr.bf16.gmra.mxu0 %v3127_v59  ;;  %v3158_v59 = vld [vmem:[%s3968_s0 + $0x368] ss:$16 sps:$4 sm:$0xff]  }
  0xf2   :  { %1672 = vmatmul.mubr.bf16.gmra.mxu1 %v3128_v60  ;;  %1390 = vmatprep.mubr.bf16.mxu0 %v3129_v61  ;;  %v3161_v60 = vld [vmem:[%s3968_s0 + $0x384] ss:$16 sps:$4 sm:$0xff]  }
  0xf3   :  { %1679 = vmatprep.mubr.bf16.mxu1 %v3131_v62 }
  0xf9   :  { %1391 = vmatmul.mubr.bf16.gmra.mxu0 %v3133_v63 }
  0xfa   :  { %1680 = vmatmul.mubr.bf16.gmra.mxu1 %v3134_v0  ;;  %1398 = vmatprep.mubr.bf16.mxu0 %v3135_v1  ;;  %v3164_v0 = vld [vmem:[%s3968_s0 + $0x38c] ss:$16 sps:$4 sm:$0xff]  }
  0xfb   :  { %1687 = vmatprep.mubr.bf16.mxu1 %v3137_v2 }
 0x101   :  { %v1208_v7 = vpop.f32.mrf.mxu0  ;;  %1399 = vmatmul.mubr.bf16.gmra.mxu0 %v3139_v3 }
 0x102   :  { %v1497_v8 = vpop.f32.mrf.mxu1  ;;  %1688 = vmatmul.mubr.bf16.gmra.mxu1 %v3140_v4  ;;  %1406 = vmatprep.mubr.bf16.mxu0 %v3141_v5 }
 0x103   :  { %v1498_v10 = vadd.f32 %v1497_v8, %v1208_v7  ;;  %v1210_v11 = vpop.f32.mrf.mxu0  ;;  %1695 = vmatprep.mubr.bf16.mxu1 %v3143_v6 }
 0x104   :  { %v1499_v12 = vpop.f32.mrf.mxu1 }
 0x105   :  { %v1954_v13 = vmul.f32 %v3648_v9, %v1498_v10  ;;  %v1211_v14 = vpop.f32.mrf.mxu0 }
 0x106   :  { %v1500_v17 = vpop.f32.mrf.mxu1 }
 0x107   :  { %v1501_v20 = vadd.f32 %v1500_v17, %v1211_v14  ;;  %v1213_v21 = vpop.f32.mrf.mxu0  ;;  %v2025_v24 = vadd.f32 %v3657_v16, %v1954_v13 }
 0x108   :  { %v1502_v23 = vpop.f32.mrf.mxu1 }
 0x109   :  { %v1955_v25 = vmul.f32 %v3648_v9, %v1501_v20  ;;  %v1216_v26 = vpop.f32.mrf.mxu0  ;;  %1407 = vmatmul.mubr.bf16.gmra.mxu0 %v3145_v15  ;;  %v2089_v32 = vmax.f32 %v2025_v24, 0.0  ;;  %v3159_v15 = vld [vmem:[%s3968_s0 + $0x380] ss:$16 sps:$4 sm:$0xff]   ;;  %v3170_v23 = vld [vmem:[%s3968_s0 + $0x3ac] ss:$16 sps:$4 sm:$0xff]  }
 0x10a   :  { %v1505_v27 = vpop.f32.mrf.mxu1  ;;  %1696 = vmatmul.mubr.bf16.gmra.mxu1 %v3146_v18  ;;  %1414 = vmatprep.mubr.bf16.mxu0 %v3147_v19  ;;  %v3162_v18 = vld [vmem:[%s3968_s0 + $0x388] ss:$16 sps:$4 sm:$0xff]   ;;  %v3167_v19 = vld [vmem:[%s3968_s0 + $0x3a4] ss:$16 sps:$4 sm:$0xff]  }
 0x10b   :  { %v2026_v28 = vadd.f32 %v3657_v16, %v1955_v25  ;;  %v1506_v29 = vadd.f32 %v1505_v27, %v1216_v26  ;;  %v1218_v30 = vpop.f32.mrf.mxu0  ;;  %1703 = vmatprep.mubr.bf16.mxu1 %v3149_v22 }
 0x10c   :  { %v1507_v31 = vpop.f32.mrf.mxu1 }
 0x10d   :  { %v2090_v33 = vmax.f32 %v2026_v28, 0.0  ;;  %v1956_v34 = vmul.f32 %v3648_v9, %v1506_v29  ;;  %v1219_v35 = vpop.f32.mrf.mxu0 }
 0x10e   :  { %v1508_v37 = vpop.f32.mrf.mxu1 }
 0x10f   :  { %v2770_v40 = vpack.c.bf16 %v2090_v33, %v2089_v32  ;;  %v1509_v41 = vadd.f32 %v1508_v37, %v1219_v35  ;;  %v1221_v42 = vpop.f32.mrf.mxu0  ;;  %v2027_v45 = vadd.f32 %v3657_v16, %v1956_v34  ;;  %v3165_v37 = vld [vmem:[%s3968_s0 + $0x3a0] ss:$16 sps:$4 sm:$0xff]  }
 0x110   :  { %v1510_v44 = vpop.f32.mrf.mxu1 }
 0x111   :  { %2771 = vst [vmem:[%s3971_s4] sm:$0xff] %v2770_v40   ;;  %v1957_v46 = vmul.f32 %v3648_v9, %v1509_v41  ;;  %v1224_v47 = vpop.f32.mrf.mxu0  ;;  %1415 = vmatmul.mubr.bf16.gmra.mxu0 %v3151_v36  ;;  %v2091_v53 = vmax.f32 %v2027_v45, 0.0  ;;  %v3173_v40 = vld [vmem:[%s3968_s0 + $0x3c4] ss:$16 sps:$4 sm:$0xff]   ;;  %v3176_v44 = vld [vmem:[%s3968_s0 + $0x3cc] ss:$16 sps:$4 sm:$0xff]  }
 0x112   :  { %v1513_v48 = vpop.f32.mrf.mxu1  ;;  %1704 = vmatmul.mubr.bf16.gmra.mxu1 %v3152_v38  ;;  %1422 = vmatprep.mubr.bf16.mxu0 %v3153_v39  ;;  %v3168_v39 = vld [vmem:[%s3968_s0 + $0x3a8] ss:$16 sps:$4 sm:$0xff]  }
 0x113   :  { %v2028_v49 = vadd.f32 %v3657_v16, %v1957_v46  ;;  %v1514_v50 = vadd.f32 %v1513_v48, %v1224_v47  ;;  %v1226_v51 = vpop.f32.mrf.mxu0  ;;  %1711 = vmatprep.mubr.bf16.mxu1 %v3155_v43 }
 0x114   :  { %v1515_v52 = vpop.f32.mrf.mxu1 }
 0x115   :  { %v2092_v54 = vmax.f32 %v2028_v49, 0.0  ;;  %v1958_v55 = vmul.f32 %v3648_v9, %v1514_v50  ;;  %v1227_v56 = vpop.f32.mrf.mxu0 }
 0x116   :  { %v1516_v58 = vpop.f32.mrf.mxu1 }
 0x117   :  { %v2775_v61 = vpack.c.bf16 %v2092_v54, %v2091_v53  ;;  %v1517_v62 = vadd.f32 %v1516_v58, %v1227_v56  ;;  %v1229_v63 = vpop.f32.mrf.mxu0  ;;  %v2029_v2 = vadd.f32 %v3657_v16, %v1958_v55  ;;  %v3171_v58 = vld [vmem:[%s3968_s0 + $0x3c0] ss:$16 sps:$4 sm:$0xff]  }
 0x118   :  { %v1518_v1 = vpop.f32.mrf.mxu1 }
 0x119   :  { %2927 = vst [vmem:[%s3971_s4 + $0x8] sm:$0xff] %v2775_v61   ;;  %v1959_v3 = vmul.f32 %v3648_v9, %v1517_v62  ;;  %v1232_v4 = vpop.f32.mrf.mxu0  ;;  %1423 = vmatmul.mubr.bf16.gmra.mxu0 %v3157_v57  ;;  %v2093_v11 = vmax.f32 %v2029_v2, 0.0  ;;  %v3179_v61 = vld [vmem:[%s3968_s0 + $0x3e4] ss:$16 sps:$4 sm:$0xff]   ;;  %v3182_v1 = vld [vmem:[%s3968_s0 + $0x3ec] ss:$16 sps:$4 sm:$0xff]  }
 0x11a   :  { %v1521_v5 = vpop.f32.mrf.mxu1  ;;  %1712 = vmatmul.mubr.bf16.gmra.mxu1 %v3158_v59  ;;  %1430 = vmatprep.mubr.bf16.mxu0 %v3161_v60  ;;  %v3174_v60 = vld [vmem:[%s3968_s0 + $0x3c8] ss:$16 sps:$4 sm:$0xff]  }
 0x11b   :  { %v2030_v6 = vadd.f32 %v3657_v16, %v1959_v3  ;;  %v1522_v7 = vadd.f32 %v1521_v5, %v1232_v4  ;;  %v1234_v8 = vpop.f32.mrf.mxu0  ;;  %1719 = vmatprep.mubr.bf16.mxu1 %v3164_v0 }
 0x11c   :  { %v1523_v10 = vpop.f32.mrf.mxu1 }
 0x11d   :  { %v2094_v12 = vmax.f32 %v2030_v6, 0.0  ;;  %v1960_v13 = vmul.f32 %v3648_v9, %v1522_v7  ;;  %v1235_v14 = vpop.f32.mrf.mxu0 }
 0x11e   :  { %v1524_v17 = vpop.f32.mrf.mxu1 }
 0x11f   :  { %v2780_v20 = vpack.c.bf16 %v2094_v12, %v2093_v11  ;;  %v1525_v21 = vadd.f32 %v1524_v17, %v1235_v14  ;;  %v1237_v22 = vpop.f32.mrf.mxu0  ;;  %v2031_v25 = vadd.f32 %v3657_v16, %v1960_v13  ;;  %v3177_v17 = vld [vmem:[%s3968_s0 + $0x3e0] ss:$16 sps:$4 sm:$0xff]  }
 0x120   :  { %v1526_v24 = vpop.f32.mrf.mxu1 }
 0x121   :  { %2928 = vst [vmem:[%s3971_s4 + $0x10] sm:$0xff] %v2780_v20   ;;  %v1961_v26 = vmul.f32 %v3648_v9, %v1525_v21  ;;  %v1240_v27 = vpop.f32.mrf.mxu0  ;;  %1431 = vmatmul.mubr.bf16.gmra.mxu0 %v3159_v15  ;;  %v2095_v33 = vmax.f32 %v2031_v25, 0.0 }
 0x122   :  { %v1529_v28 = vpop.f32.mrf.mxu1  ;;  %1720 = vmatmul.mubr.bf16.gmra.mxu1 %v3162_v18  ;;  %1438 = vmatprep.mubr.bf16.mxu0 %v3167_v19  ;;  %v3180_v19 = vld [vmem:[%s3968_s0 + $0x3e8] ss:$16 sps:$4 sm:$0xff]  }
 0x123   :  { %v2032_v29 = vadd.f32 %v3657_v16, %v1961_v26  ;;  %v1530_v30 = vadd.f32 %v1529_v28, %v1240_v27  ;;  %v1242_v31 = vpop.f32.mrf.mxu0  ;;  %1727 = vmatprep.mubr.bf16.mxu1 %v3170_v23 }
 0x124   :  { %v1531_v32 = vpop.f32.mrf.mxu1 }
 0x125   :  { %v2096_v34 = vmax.f32 %v2032_v29, 0.0  ;;  %v1962_v35 = vmul.f32 %v3648_v9, %v1530_v30  ;;  %v1243_v36 = vpop.f32.mrf.mxu0 }
 0x126   :  { %v1532_v38 = vpop.f32.mrf.mxu1 }
 0x127   :  { %v2785_v41 = vpack.c.bf16 %v2096_v34, %v2095_v33  ;;  %v1533_v42 = vadd.f32 %v1532_v38, %v1243_v36  ;;  %v1245_v43 = vpop.f32.mrf.mxu0  ;;  %v2033_v46 = vadd.f32 %v3657_v16, %v1962_v35 }
 0x128   :  { %v1534_v45 = vpop.f32.mrf.mxu1 }
 0x129   :  { %2929 = vst [vmem:[%s3971_s4 + $0x18] sm:$0xff] %v2785_v41   ;;  %v1963_v47 = vmul.f32 %v3648_v9, %v1533_v42  ;;  %v1248_v48 = vpop.f32.mrf.mxu0  ;;  %1439 = vmatmul.mubr.bf16.gmra.mxu0 %v3165_v37  ;;  %v2097_v54 = vmax.f32 %v2033_v46, 0.0 }
 0x12a   :  { %v1537_v49 = vpop.f32.mrf.mxu1  ;;  %1728 = vmatmul.mubr.bf16.gmra.mxu1 %v3168_v39  ;;  %1446 = vmatprep.mubr.bf16.mxu0 %v3173_v40 }
 0x12b   :  { %v2034_v50 = vadd.f32 %v3657_v16, %v1963_v47  ;;  %v1538_v51 = vadd.f32 %v1537_v49, %v1248_v48  ;;  %v1250_v52 = vpop.f32.mrf.mxu0  ;;  %1735 = vmatprep.mubr.bf16.mxu1 %v3176_v44 }
 0x12c   :  { %v1539_v53 = vpop.f32.mrf.mxu1 }
 0x12d   :  { %v2098_v55 = vmax.f32 %v2034_v50, 0.0  ;;  %v1964_v56 = vmul.f32 %v3648_v9, %v1538_v51  ;;  %v1251_v57 = vpop.f32.mrf.mxu0 }
 0x12e   :  { %v1540_v59 = vpop.f32.mrf.mxu1 }
 0x12f   :  { %v2790_v62 = vpack.c.bf16 %v2098_v55, %v2097_v54  ;;  %v1541_v63 = vadd.f32 %v1540_v59, %v1251_v57  ;;  %v1253_v0 = vpop.f32.mrf.mxu0  ;;  %v2035_v3 = vadd.f32 %v3657_v16, %v1964_v56 }
 0x130   :  { %v1542_v2 = vpop.f32.mrf.mxu1 }
 0x131   :  { %2930 = vst [vmem:[%s3971_s4 + $0x20] sm:$0xff] %v2790_v62   ;;  %v1965_v4 = vmul.f32 %v3648_v9, %v1541_v63  ;;  %v1256_v5 = vpop.f32.mrf.mxu0  ;;  %1447 = vmatmul.mubr.bf16.gmra.mxu0 %v3171_v58  ;;  %v2099_v12 = vmax.f32 %v2035_v3, 0.0 }
 0x132   :  { %v1545_v6 = vpop.f32.mrf.mxu1  ;;  %1736 = vmatmul.mubr.bf16.gmra.mxu1 %v3174_v60  ;;  %1454 = vmatprep.mubr.bf16.mxu0 %v3179_v61 }
 0x133   :  { %v2036_v7 = vadd.f32 %v3657_v16, %v1965_v4  ;;  %v1546_v8 = vadd.f32 %v1545_v6, %v1256_v5  ;;  %v1258_v10 = vpop.f32.mrf.mxu0  ;;  %1743 = vmatprep.mubr.bf16.mxu1 %v3182_v1 }
 0x134   :  { %v1547_v11 = vpop.f32.mrf.mxu1 }
 0x135   :  { %v2100_v13 = vmax.f32 %v2036_v7, 0.0  ;;  %v1966_v14 = vmul.f32 %v3648_v9, %v1546_v8  ;;  %v1259_v15 = vpop.f32.mrf.mxu0 }
 0x136   :  { %v1548_v18 = vpop.f32.mrf.mxu1 }
 0x137   :  { %v2795_v20 = vpack.c.bf16 %v2100_v13, %v2099_v12  ;;  %v1549_v21 = vadd.f32 %v1548_v18, %v1259_v15  ;;  %v1261_v22 = vpop.f32.mrf.mxu0  ;;  %v2037_v24 = vadd.f32 %v3657_v16, %v1966_v14 }
 0x138   :  { %v1550_v23 = vpop.f32.mrf.mxu1 }
 0x139   :  { %2931 = vst [vmem:[%s3971_s4 + $0x28] sm:$0xff] %v2795_v20   ;;  %v1967_v25 = vmul.f32 %v3648_v9, %v1549_v21  ;;  %v1264_v26 = vpop.f32.mrf.mxu0  ;;  %1455 = vmatmul.mubr.bf16.gmra.mxu0 %v3177_v17  ;;  %v2101_v32 = vmax.f32 %v2037_v24, 0.0 }
 0x13a   :  { %v1553_v27 = vpop.f32.mrf.mxu1  ;;  %1744 = vmatmul.mubr.bf16.gmra.mxu1 %v3180_v19 }
 0x13b   :  { %v2038_v28 = vadd.f32 %v3657_v16, %v1967_v25  ;;  %v1554_v29 = vadd.f32 %v1553_v27, %v1264_v26  ;;  %v1266_v30 = vpop.f32.mrf.mxu0 }
 0x13c   :  { %v1555_v31 = vpop.f32.mrf.mxu1 }
 0x13d   :  { %v2102_v33 = vmax.f32 %v2038_v28, 0.0  ;;  %v1968_v34 = vmul.f32 %v3648_v9, %v1554_v29  ;;  %v1267_v35 = vpop.f32.mrf.mxu0 }
 0x13e   :  { %v1556_v36 = vpop.f32.mrf.mxu1 }
 0x13f   :  { %v2800_v37 = vpack.c.bf16 %v2102_v33, %v2101_v32  ;;  %v1557_v38 = vadd.f32 %v1556_v36, %v1267_v35  ;;  %v1269_v39 = vpop.f32.mrf.mxu0  ;;  %v2039_v41 = vadd.f32 %v3657_v16, %v1968_v34 }
 0x140   :  { %v1558_v40 = vpop.f32.mrf.mxu1 }
 0x141   :  { %2932 = vst [vmem:[%s3971_s4 + $0x30] sm:$0xff] %v2800_v37   ;;  %v1969_v42 = vmul.f32 %v3648_v9, %v1557_v38  ;;  %v1272_v43 = vpop.f32.mrf.mxu0  ;;  %v2103_v49 = vmax.f32 %v2039_v41, 0.0 }
 0x142   :  { %v1561_v44 = vpop.f32.mrf.mxu1 }
 0x143   :  { %v2040_v45 = vadd.f32 %v3657_v16, %v1969_v42  ;;  %v1562_v46 = vadd.f32 %v1561_v44, %v1272_v43  ;;  %v1274_v47 = vpop.f32.mrf.mxu0 }
 0x144   :  { %v1563_v48 = vpop.f32.mrf.mxu1 }
 0x145   :  { %v2104_v50 = vmax.f32 %v2040_v45, 0.0  ;;  %v1970_v51 = vmul.f32 %v3648_v9, %v1562_v46  ;;  %v1275_v52 = vpop.f32.mrf.mxu0 }
 0x146   :  { %v1564_v53 = vpop.f32.mrf.mxu1 }
 0x147   :  { %v2805_v54 = vpack.c.bf16 %v2104_v50, %v2103_v49  ;;  %v1565_v55 = vadd.f32 %v1564_v53, %v1275_v52  ;;  %v1277_v56 = vpop.f32.mrf.mxu0  ;;  %v2041_v58 = vadd.f32 %v3657_v16, %v1970_v51 }
 0x148   :  { %v1566_v57 = vpop.f32.mrf.mxu1 }
 0x149   :  { %2933 = vst [vmem:[%s3971_s4 + $0x38] sm:$0xff] %v2805_v54   ;;  %v1971_v59 = vmul.f32 %v3648_v9, %v1565_v55  ;;  %v1280_v60 = vpop.f32.mrf.mxu0  ;;  %v2105_v2 = vmax.f32 %v2041_v58, 0.0 }
 0x14a   :  { %v1569_v61 = vpop.f32.mrf.mxu1 }
 0x14b   :  { %v2042_v62 = vadd.f32 %v3657_v16, %v1971_v59  ;;  %v1570_v63 = vadd.f32 %v1569_v61, %v1280_v60  ;;  %v1282_v0 = vpop.f32.mrf.mxu0 }
 0x14c   :  { %v1571_v1 = vpop.f32.mrf.mxu1 }
 0x14d   :  { %v2106_v3 = vmax.f32 %v2042_v62, 0.0  ;;  %v1972_v4 = vmul.f32 %v3648_v9, %v1570_v63  ;;  %v1283_v5 = vpop.f32.mrf.mxu0 }
 0x14e   :  { %v1572_v6 = vpop.f32.mrf.mxu1 }
 0x14f   :  { %v2810_v7 = vpack.c.bf16 %v2106_v3, %v2105_v2  ;;  %v1573_v8 = vadd.f32 %v1572_v6, %v1283_v5  ;;  %v1285_v10 = vpop.f32.mrf.mxu0  ;;  %v2043_v12 = vadd.f32 %v3657_v16, %v1972_v4 }
 0x150   :  { %v1574_v11 = vpop.f32.mrf.mxu1 }
 0x151   :  { %2934 = vst [vmem:[%s3971_s4 + $0x40] sm:$0xff] %v2810_v7   ;;  %v1973_v13 = vmul.f32 %v3648_v9, %v1573_v8  ;;  %v1288_v14 = vpop.f32.mrf.mxu0  ;;  %v2107_v21 = vmax.f32 %v2043_v12, 0.0 }
 0x152   :  { %v1577_v15 = vpop.f32.mrf.mxu1 }
 0x153   :  { %v2044_v17 = vadd.f32 %v3657_v16, %v1973_v13  ;;  %v1578_v18 = vadd.f32 %v1577_v15, %v1288_v14  ;;  %v1290_v19 = vpop.f32.mrf.mxu0 }
 0x154   :  { %v1579_v20 = vpop.f32.mrf.mxu1 }
 0x155   :  { %v2108_v22 = vmax.f32 %v2044_v17, 0.0  ;;  %v1974_v23 = vmul.f32 %v3648_v9, %v1578_v18  ;;  %v1291_v24 = vpop.f32.mrf.mxu0 }
 0x156   :  { %v1580_v25 = vpop.f32.mrf.mxu1 }
 0x157   :  { %v2815_v26 = vpack.c.bf16 %v2108_v22, %v2107_v21  ;;  %v1581_v27 = vadd.f32 %v1580_v25, %v1291_v24  ;;  %v1293_v28 = vpop.f32.mrf.mxu0  ;;  %v2045_v30 = vadd.f32 %v3657_v16, %v1974_v23 }
 0x158   :  { %v1582_v29 = vpop.f32.mrf.mxu1 }
 0x159   :  { %2935 = vst [vmem:[%s3971_s4 + $0x48] sm:$0xff] %v2815_v26   ;;  %v1975_v31 = vmul.f32 %v3648_v9, %v1581_v27  ;;  %v1296_v32 = vpop.f32.mrf.mxu0  ;;  %v2109_v38 = vmax.f32 %v2045_v30, 0.0 }
 0x15a   :  { %v1585_v33 = vpop.f32.mrf.mxu1 }
 0x15b   :  { %v2046_v34 = vadd.f32 %v3657_v16, %v1975_v31  ;;  %v1586_v35 = vadd.f32 %v1585_v33, %v1296_v32  ;;  %v1298_v36 = vpop.f32.mrf.mxu0 }
 0x15c   :  { %v1587_v37 = vpop.f32.mrf.mxu1 }
 0x15d   :  { %v2110_v39 = vmax.f32 %v2046_v34, 0.0  ;;  %v1976_v40 = vmul.f32 %v3648_v9, %v1586_v35  ;;  %v1299_v41 = vpop.f32.mrf.mxu0 }
 0x15e   :  { %v1588_v42 = vpop.f32.mrf.mxu1 }
 0x15f   :  { %v2820_v43 = vpack.c.bf16 %v2110_v39, %v2109_v38  ;;  %v1589_v44 = vadd.f32 %v1588_v42, %v1299_v41  ;;  %v1301_v45 = vpop.f32.mrf.mxu0  ;;  %v2047_v47 = vadd.f32 %v3657_v16, %v1976_v40 }
 0x160   :  { %v1590_v46 = vpop.f32.mrf.mxu1 }
 0x161   :  { %2936 = vst [vmem:[%s3971_s4 + $0x50] sm:$0xff] %v2820_v43   ;;  %v1977_v48 = vmul.f32 %v3648_v9, %v1589_v44  ;;  %v1304_v49 = vpop.f32.mrf.mxu0  ;;  %v2111_v55 = vmax.f32 %v2047_v47, 0.0 }
 0x162   :  { %v1593_v50 = vpop.f32.mrf.mxu1 }
 0x163   :  { %v2048_v51 = vadd.f32 %v3657_v16, %v1977_v48  ;;  %v1594_v52 = vadd.f32 %v1593_v50, %v1304_v49  ;;  %v1306_v53 = vpop.f32.mrf.mxu0 }
 0x164   :  { %v1595_v54 = vpop.f32.mrf.mxu1 }
 0x165   :  { %v2112_v56 = vmax.f32 %v2048_v51, 0.0  ;;  %v1978_v57 = vmul.f32 %v3648_v9, %v1594_v52  ;;  %v1307_v58 = vpop.f32.mrf.mxu0 }
 0x166   :  { %v1596_v59 = vpop.f32.mrf.mxu1 }
 0x167   :  { %v2825_v60 = vpack.c.bf16 %v2112_v56, %v2111_v55  ;;  %v1597_v61 = vadd.f32 %v1596_v59, %v1307_v58  ;;  %v1309_v62 = vpop.f32.mrf.mxu0  ;;  %v2049_v0 = vadd.f32 %v3657_v16, %v1978_v57 }
 0x168   :  { %v1598_v63 = vpop.f32.mrf.mxu1 }
 0x169   :  { %2937 = vst [vmem:[%s3971_s4 + $0x58] sm:$0xff] %v2825_v60   ;;  %v1979_v1 = vmul.f32 %v3648_v9, %v1597_v61  ;;  %v1312_v2 = vpop.f32.mrf.mxu0  ;;  %v2113_v8 = vmax.f32 %v2049_v0, 0.0 }
 0x16a   :  { %v1601_v3 = vpop.f32.mrf.mxu1 }
 0x16b   :  { %v2050_v4 = vadd.f32 %v3657_v16, %v1979_v1  ;;  %v1602_v5 = vadd.f32 %v1601_v3, %v1312_v2  ;;  %v1314_v6 = vpop.f32.mrf.mxu0 }
 0x16c   :  { %v1603_v7 = vpop.f32.mrf.mxu1 }
 0x16d   :  { %v2114_v10 = vmax.f32 %v2050_v4, 0.0  ;;  %v1980_v11 = vmul.f32 %v3648_v9, %v1602_v5  ;;  %v1315_v12 = vpop.f32.mrf.mxu0 }
 0x16e   :  { %v1604_v13 = vpop.f32.mrf.mxu1 }
 0x16f   :  { %v2830_v14 = vpack.c.bf16 %v2114_v10, %v2113_v8  ;;  %v1605_v15 = vadd.f32 %v1604_v13, %v1315_v12  ;;  %v1317_v17 = vpop.f32.mrf.mxu0  ;;  %v2051_v19 = vadd.f32 %v3657_v16, %v1980_v11 }
 0x170   :  { %v1606_v18 = vpop.f32.mrf.mxu1 }
 0x171   :  { %2938 = vst [vmem:[%s3971_s4 + $0x60] sm:$0xff] %v2830_v14   ;;  %v1981_v20 = vmul.f32 %v3648_v9, %v1605_v15  ;;  %v1320_v21 = vpop.f32.mrf.mxu0  ;;  %v2115_v27 = vmax.f32 %v2051_v19, 0.0 }
 0x172   :  { %v1609_v22 = vpop.f32.mrf.mxu1 }
 0x173   :  { %v2052_v23 = vadd.f32 %v3657_v16, %v1981_v20  ;;  %v1610_v24 = vadd.f32 %v1609_v22, %v1320_v21  ;;  %v1322_v25 = vpop.f32.mrf.mxu0 }
 0x174   :  { %v1611_v26 = vpop.f32.mrf.mxu1 }
 0x175   :  { %v2116_v28 = vmax.f32 %v2052_v23, 0.0  ;;  %v1982_v29 = vmul.f32 %v3648_v9, %v1610_v24  ;;  %v1323_v30 = vpop.f32.mrf.mxu0 }
 0x176   :  { %v1612_v31 = vpop.f32.mrf.mxu1 }
 0x177   :  { %v2835_v32 = vpack.c.bf16 %v2116_v28, %v2115_v27  ;;  %v1613_v33 = vadd.f32 %v1612_v31, %v1323_v30  ;;  %v1325_v34 = vpop.f32.mrf.mxu0  ;;  %v2053_v36 = vadd.f32 %v3657_v16, %v1982_v29 }
 0x178   :  { %v1614_v35 = vpop.f32.mrf.mxu1 }
 0x179   :  { %2939 = vst [vmem:[%s3971_s4 + $0x68] sm:$0xff] %v2835_v32   ;;  %v1983_v37 = vmul.f32 %v3648_v9, %v1613_v33  ;;  %v1328_v38 = vpop.f32.mrf.mxu0  ;;  %v2117_v44 = vmax.f32 %v2053_v36, 0.0 }
 0x17a   :  { %v1617_v39 = vpop.f32.mrf.mxu1 }
 0x17b   :  { %v2054_v40 = vadd.f32 %v3657_v16, %v1983_v37  ;;  %v1618_v41 = vadd.f32 %v1617_v39, %v1328_v38  ;;  %v1330_v42 = vpop.f32.mrf.mxu0 }
 0x17c   :  { %v1619_v43 = vpop.f32.mrf.mxu1 }
 0x17d   :  { %v2118_v45 = vmax.f32 %v2054_v40, 0.0  ;;  %v1984_v46 = vmul.f32 %v3648_v9, %v1618_v41  ;;  %v1331_v47 = vpop.f32.mrf.mxu0 }
 0x17e   :  { %v1620_v48 = vpop.f32.mrf.mxu1 }
 0x17f   :  { %v2840_v49 = vpack.c.bf16 %v2118_v45, %v2117_v44  ;;  %v1621_v50 = vadd.f32 %v1620_v48, %v1331_v47  ;;  %v1333_v51 = vpop.f32.mrf.mxu0  ;;  %v2055_v53 = vadd.f32 %v3657_v16, %v1984_v46 }
 0x180   :  { %v1622_v52 = vpop.f32.mrf.mxu1 }
 0x181   :  { %2940 = vst [vmem:[%s3971_s4 + $0x70] sm:$0xff] %v2840_v49   ;;  %v1985_v54 = vmul.f32 %v3648_v9, %v1621_v50  ;;  %v1336_v55 = vpop.f32.mrf.mxu0  ;;  %v2119_v61 = vmax.f32 %v2055_v53, 0.0 }
 0x182   :  { %v1625_v56 = vpop.f32.mrf.mxu1 }
 0x183   :  { %v2056_v57 = vadd.f32 %v3657_v16, %v1985_v54  ;;  %v1626_v58 = vadd.f32 %v1625_v56, %v1336_v55  ;;  %v1338_v59 = vpop.f32.mrf.mxu0 }
 0x184   :  { %v1627_v60 = vpop.f32.mrf.mxu1 }
 0x185   :  { %v2120_v62 = vmax.f32 %v2056_v57, 0.0  ;;  %v1986_v63 = vmul.f32 %v3648_v9, %v1626_v58  ;;  %v1339_v0 = vpop.f32.mrf.mxu0 }
 0x186   :  { %v1628_v1 = vpop.f32.mrf.mxu1 }
 0x187   :  { %v2845_v2 = vpack.c.bf16 %v2120_v62, %v2119_v61  ;;  %v1629_v3 = vadd.f32 %v1628_v1, %v1339_v0  ;;  %v1341_v4 = vpop.f32.mrf.mxu0  ;;  %v2057_v6 = vadd.f32 %v3657_v16, %v1986_v63 }
 0x188   :  { %v1630_v5 = vpop.f32.mrf.mxu1 }
 0x189   :  { %2941 = vst [vmem:[%s3971_s4 + $0x78] sm:$0xff] %v2845_v2   ;;  %v1987_v7 = vmul.f32 %v3648_v9, %v1629_v3  ;;  %v1344_v8 = vpop.f32.mrf.mxu0  ;;  %v2121_v15 = vmax.f32 %v2057_v6, 0.0 }
 0x18a   :  { %v1633_v10 = vpop.f32.mrf.mxu1 }
 0x18b   :  { %v2058_v11 = vadd.f32 %v3657_v16, %v1987_v7  ;;  %v1634_v12 = vadd.f32 %v1633_v10, %v1344_v8  ;;  %v1346_v13 = vpop.f32.mrf.mxu0 }
 0x18c   :  { %v1635_v14 = vpop.f32.mrf.mxu1 }
 0x18d   :  { %v2122_v17 = vmax.f32 %v2058_v11, 0.0  ;;  %v1988_v18 = vmul.f32 %v3648_v9, %v1634_v12  ;;  %v1347_v19 = vpop.f32.mrf.mxu0 }
 0x18e   :  { %v1636_v20 = vpop.f32.mrf.mxu1 }
 0x18f   :  { %v2850_v21 = vpack.c.bf16 %v2122_v17, %v2121_v15  ;;  %v1637_v22 = vadd.f32 %v1636_v20, %v1347_v19  ;;  %v1349_v23 = vpop.f32.mrf.mxu0  ;;  %v2059_v25 = vadd.f32 %v3657_v16, %v1988_v18 }
 0x190   :  { %v1638_v24 = vpop.f32.mrf.mxu1 }
 0x191   :  { %2942 = vst [vmem:[%s3971_s4 + $0x80] sm:$0xff] %v2850_v21   ;;  %v1989_v26 = vmul.f32 %v3648_v9, %v1637_v22  ;;  %v1352_v27 = vpop.f32.mrf.mxu0  ;;  %v2123_v33 = vmax.f32 %v2059_v25, 0.0 }
 0x192   :  { %v1641_v28 = vpop.f32.mrf.mxu1 }
 0x193   :  { %v2060_v29 = vadd.f32 %v3657_v16, %v1989_v26  ;;  %v1642_v30 = vadd.f32 %v1641_v28, %v1352_v27  ;;  %v1354_v31 = vpop.f32.mrf.mxu0 }
 0x194   :  { %v1643_v32 = vpop.f32.mrf.mxu1 }
 0x195   :  { %v2124_v34 = vmax.f32 %v2060_v29, 0.0  ;;  %v1990_v35 = vmul.f32 %v3648_v9, %v1642_v30  ;;  %v1355_v36 = vpop.f32.mrf.mxu0 }
 0x196   :  { %v1644_v37 = vpop.f32.mrf.mxu1 }
 0x197   :  { %v2855_v38 = vpack.c.bf16 %v2124_v34, %v2123_v33  ;;  %v1645_v39 = vadd.f32 %v1644_v37, %v1355_v36  ;;  %v1357_v40 = vpop.f32.mrf.mxu0  ;;  %v2061_v42 = vadd.f32 %v3657_v16, %v1990_v35 }
 0x198   :  { %v1646_v41 = vpop.f32.mrf.mxu1 }
 0x199   :  { %2943 = vst [vmem:[%s3971_s4 + $0x88] sm:$0xff] %v2855_v38   ;;  %v1991_v43 = vmul.f32 %v3648_v9, %v1645_v39  ;;  %v1360_v44 = vpop.f32.mrf.mxu0  ;;  %v2125_v50 = vmax.f32 %v2061_v42, 0.0 }
 0x19a   :  { %v1649_v45 = vpop.f32.mrf.mxu1 }
 0x19b   :  { %v2062_v46 = vadd.f32 %v3657_v16, %v1991_v43  ;;  %v1650_v47 = vadd.f32 %v1649_v45, %v1360_v44  ;;  %v1362_v48 = vpop.f32.mrf.mxu0 }
 0x19c   :  { %v1651_v49 = vpop.f32.mrf.mxu1 }
 0x19d   :  { %v2126_v51 = vmax.f32 %v2062_v46, 0.0  ;;  %v1992_v52 = vmul.f32 %v3648_v9, %v1650_v47  ;;  %v1363_v53 = vpop.f32.mrf.mxu0 }
 0x19e   :  { %v1652_v54 = vpop.f32.mrf.mxu1 }
 0x19f   :  { %v2860_v55 = vpack.c.bf16 %v2126_v51, %v2125_v50  ;;  %v1653_v56 = vadd.f32 %v1652_v54, %v1363_v53  ;;  %v1365_v57 = vpop.f32.mrf.mxu0  ;;  %v2063_v59 = vadd.f32 %v3657_v16, %v1992_v52 }
 0x1a0   :  { %v1654_v58 = vpop.f32.mrf.mxu1 }
 0x1a1   :  { %2944 = vst [vmem:[%s3971_s4 + $0x90] sm:$0xff] %v2860_v55   ;;  %v1993_v60 = vmul.f32 %v3648_v9, %v1653_v56  ;;  %v1368_v61 = vpop.f32.mrf.mxu0  ;;  %v2127_v3 = vmax.f32 %v2063_v59, 0.0 }
 0x1a2   :  { %v1657_v62 = vpop.f32.mrf.mxu1 }
 0x1a3   :  { %v2064_v63 = vadd.f32 %v3657_v16, %v1993_v60  ;;  %v1658_v0 = vadd.f32 %v1657_v62, %v1368_v61  ;;  %v1370_v1 = vpop.f32.mrf.mxu0 }
 0x1a4   :  { %v1659_v2 = vpop.f32.mrf.mxu1 }
 0x1a5   :  { %v2128_v4 = vmax.f32 %v2064_v63, 0.0  ;;  %v1994_v5 = vmul.f32 %v3648_v9, %v1658_v0  ;;  %v1371_v6 = vpop.f32.mrf.mxu0 }
 0x1a6   :  { %v1660_v7 = vpop.f32.mrf.mxu1 }
 0x1a7   :  { %v2865_v8 = vpack.c.bf16 %v2128_v4, %v2127_v3  ;;  %v1661_v10 = vadd.f32 %v1660_v7, %v1371_v6  ;;  %v1373_v11 = vpop.f32.mrf.mxu0  ;;  %v2065_v13 = vadd.f32 %v3657_v16, %v1994_v5 }
 0x1a8   :  { %v1662_v12 = vpop.f32.mrf.mxu1 }
 0x1a9   :  { %2945 = vst [vmem:[%s3971_s4 + $0x98] sm:$0xff] %v2865_v8   ;;  %v1995_v14 = vmul.f32 %v3648_v9, %v1661_v10  ;;  %v1376_v15 = vpop.f32.mrf.mxu0  ;;  %v2129_v22 = vmax.f32 %v2065_v13, 0.0 }
 0x1aa   :  { %v1665_v17 = vpop.f32.mrf.mxu1 }
 0x1ab   :  { %v2066_v18 = vadd.f32 %v3657_v16, %v1995_v14  ;;  %v1666_v19 = vadd.f32 %v1665_v17, %v1376_v15  ;;  %v1378_v20 = vpop.f32.mrf.mxu0 }
 0x1ac   :  { %v1667_v21 = vpop.f32.mrf.mxu1 }
 0x1ad   :  { %v2130_v23 = vmax.f32 %v2066_v18, 0.0  ;;  %v1996_v24 = vmul.f32 %v3648_v9, %v1666_v19  ;;  %v1379_v25 = vpop.f32.mrf.mxu0 }
 0x1ae   :  { %v1668_v26 = vpop.f32.mrf.mxu1 }
 0x1af   :  { %v2870_v27 = vpack.c.bf16 %v2130_v23, %v2129_v22  ;;  %v1669_v28 = vadd.f32 %v1668_v26, %v1379_v25  ;;  %v1381_v29 = vpop.f32.mrf.mxu0  ;;  %v2067_v31 = vadd.f32 %v3657_v16, %v1996_v24 }
 0x1b0   :  { %v1670_v30 = vpop.f32.mrf.mxu1 }
 0x1b1   :  { %2946 = vst [vmem:[%s3971_s4 + $0xa0] sm:$0xff] %v2870_v27   ;;  %v1997_v32 = vmul.f32 %v3648_v9, %v1669_v28  ;;  %v1384_v33 = vpop.f32.mrf.mxu0  ;;  %v2131_v39 = vmax.f32 %v2067_v31, 0.0 }
 0x1b2   :  { %v1673_v34 = vpop.f32.mrf.mxu1 }
 0x1b3   :  { %v2068_v35 = vadd.f32 %v3657_v16, %v1997_v32  ;;  %v1674_v36 = vadd.f32 %v1673_v34, %v1384_v33  ;;  %v1386_v37 = vpop.f32.mrf.mxu0 }
 0x1b4   :  { %v1675_v38 = vpop.f32.mrf.mxu1 }
 0x1b5   :  { %v2132_v40 = vmax.f32 %v2068_v35, 0.0  ;;  %v1998_v41 = vmul.f32 %v3648_v9, %v1674_v36  ;;  %v1387_v42 = vpop.f32.mrf.mxu0  ;;  %v3913_v38 = vld [vmem:[%s3969_s2] ss:$0 sm:$0xff] }
 0x1b6   :  { %v1676_v43 = vpop.f32.mrf.mxu1 }
 0x1b7   :  { %v2875_v44 = vpack.c.bf16 %v2132_v40, %v2131_v39  ;;  %v1677_v45 = vadd.f32 %v1676_v43, %v1387_v42  ;;  %v1389_v46 = vpop.f32.mrf.mxu0  ;;  %v2069_v48 = vadd.f32 %v3657_v16, %v1998_v41 }
 0x1b8   :  { %v1678_v47 = vpop.f32.mrf.mxu1 }
 0x1b9   :  { %2947 = vst [vmem:[%s3971_s4 + $0xa8] sm:$0xff] %v2875_v44   ;;  %v1999_v49 = vmul.f32 %v3648_v9, %v1677_v45  ;;  %v1392_v50 = vpop.f32.mrf.mxu0  ;;  %v2133_v56 = vmax.f32 %v2069_v48, 0.0 }
 0x1ba   :  { %v1681_v51 = vpop.f32.mrf.mxu1 }
 0x1bb   :  { %v2070_v52 = vadd.f32 %v3657_v16, %v1999_v49  ;;  %v1682_v53 = vadd.f32 %v1681_v51, %v1392_v50  ;;  %v1394_v54 = vpop.f32.mrf.mxu0 }
 0x1bc   :  { %v1683_v55 = vpop.f32.mrf.mxu1 }
 0x1bd   :  { %v2134_v57 = vmax.f32 %v2070_v52, 0.0  ;;  %v2000_v58 = vmul.f32 %v3648_v9, %v1682_v53  ;;  %v1395_v59 = vpop.f32.mrf.mxu0 }
 0x1be   :  { %v1684_v60 = vpop.f32.mrf.mxu1 }
 0x1bf   :  { %v2880_v61 = vpack.c.bf16 %v2134_v57, %v2133_v56  ;;  %v1685_v62 = vadd.f32 %v1684_v60, %v1395_v59  ;;  %v1397_v63 = vpop.f32.mrf.mxu0  ;;  %v2071_v1 = vadd.f32 %v3657_v16, %v2000_v58 }
 0x1c0   :  { %v1686_v0 = vpop.f32.mrf.mxu1 }
 0x1c1   :  { %2948 = vst [vmem:[%s3971_s4 + $0xb0] sm:$0xff] %v2880_v61   ;;  %v2001_v2 = vmul.f32 %v3648_v9, %v1685_v62  ;;  %v1400_v3 = vpop.f32.mrf.mxu0  ;;  %v2135_v10 = vmax.f32 %v2071_v1, 0.0 }
 0x1c2   :  { %v1689_v4 = vpop.f32.mrf.mxu1 }
 0x1c3   :  { %v2072_v5 = vadd.f32 %v3657_v16, %v2001_v2  ;;  %v1690_v6 = vadd.f32 %v1689_v4, %v1400_v3  ;;  %v1402_v7 = vpop.f32.mrf.mxu0 }
 0x1c4   :  { %v1691_v8 = vpop.f32.mrf.mxu1 }
 0x1c5   :  { %v2136_v11 = vmax.f32 %v2072_v5, 0.0  ;;  %v2002_v12 = vmul.f32 %v3648_v9, %v1690_v6  ;;  %v1403_v13 = vpop.f32.mrf.mxu0 }
 0x1c6   :  { %v1692_v14 = vpop.f32.mrf.mxu1 }
 0x1c7   :  { %v2885_v15 = vpack.c.bf16 %v2136_v11, %v2135_v10  ;;  %v1693_v17 = vadd.f32 %v1692_v14, %v1403_v13  ;;  %v1405_v18 = vpop.f32.mrf.mxu0  ;;  %v2073_v20 = vadd.f32 %v3657_v16, %v2002_v12 }
 0x1c8   :  { %v1694_v19 = vpop.f32.mrf.mxu1 }
 0x1c9   :  { %2949 = vst [vmem:[%s3971_s4 + $0xb8] sm:$0xff] %v2885_v15   ;;  %v2003_v21 = vmul.f32 %v3648_v9, %v1693_v17  ;;  %v1408_v22 = vpop.f32.mrf.mxu0  ;;  %v2137_v28 = vmax.f32 %v2073_v20, 0.0 }
 0x1ca   :  { %v1697_v23 = vpop.f32.mrf.mxu1 }
 0x1cb   :  { %v2074_v24 = vadd.f32 %v3657_v16, %v2003_v21  ;;  %v1698_v25 = vadd.f32 %v1697_v23, %v1408_v22  ;;  %v1410_v26 = vpop.f32.mrf.mxu0 }
 0x1cc   :  { %v1699_v27 = vpop.f32.mrf.mxu1 }
 0x1cd   :  { %v2138_v29 = vmax.f32 %v2074_v24, 0.0  ;;  %v2004_v30 = vmul.f32 %v3648_v9, %v1698_v25  ;;  %v1411_v31 = vpop.f32.mrf.mxu0 }
 0x1ce   :  { %v1700_v32 = vpop.f32.mrf.mxu1 }
 0x1cf   :  { %v2890_v33 = vpack.c.bf16 %v2138_v29, %v2137_v28  ;;  %v1701_v34 = vadd.f32 %v1700_v32, %v1411_v31  ;;  %v1413_v35 = vpop.f32.mrf.mxu0  ;;  %v2075_v37 = vadd.f32 %v3657_v16, %v2004_v30 }
 0x1d0   :  { %v1702_v36 = vpop.f32.mrf.mxu1 }
 0x1d1   :  { %2950 = vst [vmem:[%s3971_s4 + $0xc0] sm:$0xff] %v2890_v33   ;;  %v2005_v39 = vmul.f32 %v3913_v38, %v1701_v34  ;;  %v1416_v9 = vpop.f32.mrf.mxu0  ;;  %v2139_v45 = vmax.f32 %v2075_v37, 0.0 }
 0x1d2   :  { %v1705_v40 = vpop.f32.mrf.mxu1 }
 0x1d3   :  { %v2076_v41 = vadd.f32 %v3657_v16, %v2005_v39  ;;  %v1706_v42 = vadd.f32 %v1705_v40, %v1416_v9  ;;  %v1418_v43 = vpop.f32.mrf.mxu0  ;;  %v3924_v16 = vld [vmem:[%s3970_s3] ss:$0 sm:$0xff] }
 0x1d4   :  { %v1707_v44 = vpop.f32.mrf.mxu1 }
 0x1d5   :  { %v2140_v46 = vmax.f32 %v2076_v41, 0.0  ;;  %v2006_v47 = vmul.f32 %v3913_v38, %v1706_v42  ;;  %v1419_v48 = vpop.f32.mrf.mxu0 }
 0x1d6   :  { %v1708_v49 = vpop.f32.mrf.mxu1 }
 0x1d7   :  { %v2895_v50 = vpack.c.bf16 %v2140_v46, %v2139_v45  ;;  %v1709_v51 = vadd.f32 %v1708_v49, %v1419_v48  ;;  %v1421_v52 = vpop.f32.mrf.mxu0  ;;  %v2077_v54 = vadd.f32 %v3924_v16, %v2006_v47 }
 0x1d8   :  { %v1710_v53 = vpop.f32.mrf.mxu1 }
 0x1d9   :  { %2951 = vst [vmem:[%s3971_s4 + $0xc8] sm:$0xff] %v2895_v50   ;;  %v2007_v55 = vmul.f32 %v3913_v38, %v1709_v51  ;;  %v1424_v56 = vpop.f32.mrf.mxu0  ;;  %v2141_v62 = vmax.f32 %v2077_v54, 0.0 }
 0x1da   :  { %v1713_v57 = vpop.f32.mrf.mxu1 }
 0x1db   :  { %v2078_v58 = vadd.f32 %v3924_v16, %v2007_v55  ;;  %v1714_v59 = vadd.f32 %v1713_v57, %v1424_v56  ;;  %v1426_v60 = vpop.f32.mrf.mxu0 }
 0x1dc   :  { %v1715_v61 = vpop.f32.mrf.mxu1 }
 0x1dd   :  { %v2142_v63 = vmax.f32 %v2078_v58, 0.0  ;;  %v2008_v0 = vmul.f32 %v3913_v38, %v1714_v59  ;;  %v1427_v1 = vpop.f32.mrf.mxu0 }
 0x1de   :  { %v1716_v2 = vpop.f32.mrf.mxu1 }
 0x1df   :  { %v2900_v3 = vpack.c.bf16 %v2142_v63, %v2141_v62  ;;  %v1717_v4 = vadd.f32 %v1716_v2, %v1427_v1  ;;  %v1429_v5 = vpop.f32.mrf.mxu0  ;;  %v2079_v7 = vadd.f32 %v3924_v16, %v2008_v0 }
 0x1e0   :  { %v1718_v6 = vpop.f32.mrf.mxu1 }
 0x1e1   :  { %2952 = vst [vmem:[%s3971_s4 + $0xd0] sm:$0xff] %v2900_v3   ;;  %v2009_v8 = vmul.f32 %v3913_v38, %v1717_v4  ;;  %v1432_v10 = vpop.f32.mrf.mxu0  ;;  %v2143_v17 = vmax.f32 %v2079_v7, 0.0 }
 0x1e2   :  { %v1721_v11 = vpop.f32.mrf.mxu1 }
 0x1e3   :  { %v2080_v12 = vadd.f32 %v3924_v16, %v2009_v8  ;;  %v1722_v13 = vadd.f32 %v1721_v11, %v1432_v10  ;;  %v1434_v14 = vpop.f32.mrf.mxu0 }
 0x1e4   :  { %v1723_v15 = vpop.f32.mrf.mxu1 }
 0x1e5   :  { %v2144_v18 = vmax.f32 %v2080_v12, 0.0  ;;  %v2010_v19 = vmul.f32 %v3913_v38, %v1722_v13  ;;  %v1435_v20 = vpop.f32.mrf.mxu0 }
 0x1e6   :  { %v1724_v21 = vpop.f32.mrf.mxu1 }
 0x1e7   :  { %v2905_v22 = vpack.c.bf16 %v2144_v18, %v2143_v17  ;;  %v1725_v23 = vadd.f32 %v1724_v21, %v1435_v20  ;;  %v1437_v24 = vpop.f32.mrf.mxu0  ;;  %v2081_v26 = vadd.f32 %v3924_v16, %v2010_v19 }
 0x1e8   :  { %v1726_v25 = vpop.f32.mrf.mxu1 }
 0x1e9   :  { %2953 = vst [vmem:[%s3971_s4 + $0xd8] sm:$0xff] %v2905_v22   ;;  %v2011_v27 = vmul.f32 %v3913_v38, %v1725_v23  ;;  %v1440_v28 = vpop.f32.mrf.mxu0  ;;  %v2145_v34 = vmax.f32 %v2081_v26, 0.0 }
 0x1ea   :  { %v1729_v29 = vpop.f32.mrf.mxu1 }
 0x1eb   :  { %v2082_v30 = vadd.f32 %v3924_v16, %v2011_v27  ;;  %v1730_v31 = vadd.f32 %v1729_v29, %v1440_v28  ;;  %v1442_v32 = vpop.f32.mrf.mxu0 }
 0x1ec   :  { %v1731_v33 = vpop.f32.mrf.mxu1 }
 0x1ed   :  { %v2146_v35 = vmax.f32 %v2082_v30, 0.0  ;;  %v2012_v36 = vmul.f32 %v3913_v38, %v1730_v31  ;;  %v1443_v37 = vpop.f32.mrf.mxu0 }
 0x1ee   :  { %v1732_v39 = vpop.f32.mrf.mxu1 }
 0x1ef   :  { %v2910_v9 = vpack.c.bf16 %v2146_v35, %v2145_v34  ;;  %v1733_v40 = vadd.f32 %v1732_v39, %v1443_v37  ;;  %v1445_v41 = vpop.f32.mrf.mxu0  ;;  %v2083_v43 = vadd.f32 %v3924_v16, %v2012_v36 }
 0x1f0   :  { %v1734_v42 = vpop.f32.mrf.mxu1 }
 0x1f1   :  { %2954 = vst [vmem:[%s3971_s4 + $0xe0] sm:$0xff] %v2910_v9   ;;  %v2013_v44 = vmul.f32 %v3913_v38, %v1733_v40  ;;  %v1448_v45 = vpop.f32.mrf.mxu0  ;;  %v2147_v51 = vmax.f32 %v2083_v43, 0.0 }
 0x1f2   :  { %v1737_v46 = vpop.f32.mrf.mxu1 }
 0x1f3   :  { %v2084_v47 = vadd.f32 %v3924_v16, %v2013_v44  ;;  %v1738_v48 = vadd.f32 %v1737_v46, %v1448_v45  ;;  %v1450_v49 = vpop.f32.mrf.mxu0 }
 0x1f4   :  { %v1739_v50 = vpop.f32.mrf.mxu1 }
 0x1f5   :  { %v2148_v52 = vmax.f32 %v2084_v47, 0.0  ;;  %v2014_v53 = vmul.f32 %v3913_v38, %v1738_v48  ;;  %v1451_v54 = vpop.f32.mrf.mxu0 }
 0x1f6   :  { %v1740_v55 = vpop.f32.mrf.mxu1 }
 0x1f7   :  { %v2915_v56 = vpack.c.bf16 %v2148_v52, %v2147_v51  ;;  %v1741_v57 = vadd.f32 %v1740_v55, %v1451_v54  ;;  %v1453_v58 = vpop.f32.mrf.mxu0  ;;  %v2085_v60 = vadd.f32 %v3924_v16, %v2014_v53 }
 0x1f8   :  { %v1742_v59 = vpop.f32.mrf.mxu1 }
 0x1f9   :  { %2955 = vst [vmem:[%s3971_s4 + $0xe8] sm:$0xff] %v2915_v56   ;;  %v2015_v61 = vmul.f32 %v3913_v38, %v1741_v57  ;;  %v1456_v62 = vpop.f32.mrf.mxu0  ;;  %v2149_v4 = vmax.f32 %v2085_v60, 0.0 }
 0x1fa   :  { %v1745_v63 = vpop.f32.mrf.mxu1 }
 0x1fb   :  { %v2086_v0 = vadd.f32 %v3924_v16, %v2015_v61  ;;  %v1746_v1 = vadd.f32 %v1745_v63, %v1456_v62  ;;  %v1458_v2 = vpop.f32.mrf.mxu0 }
 0x1fc   :  { %v1747_v3 = vpop.f32.mrf.mxu1 }
 0x1fd   :  { %v2150_v5 = vmax.f32 %v2086_v0, 0.0  ;;  %v2016_v6 = vmul.f32 %v3913_v38, %v1746_v1  ;;  %v1459_v7 = vpop.f32.mrf.mxu0 }
 0x1fe   :  { %v1748_v8 = vpop.f32.mrf.mxu1 }
 0x1ff   :  { %v2920_v10 = vpack.c.bf16 %v2150_v5, %v2149_v4  ;;  %v1749_v11 = vadd.f32 %v1748_v8, %v1459_v7  ;;  %v1461_v12 = vpop.f32.mrf.mxu0  ;;  %v2087_v14 = vadd.f32 %v3924_v16, %v2016_v6 }
 0x200   :  { %v1750_v13 = vpop.f32.mrf.mxu1 }
 0x201   :  { %2956 = vst [vmem:[%s3971_s4 + $0xf0] sm:$0xff] %v2920_v10   ;;  %v2017_v15 = vmul.f32 %v3913_v38, %v1749_v11  ;;  %v2151_v18 = vmax.f32 %v2087_v14, 0.0 }
 0x203   :  { %v2088_v17 = vadd.f32 %v3924_v16, %v2017_v15 }
 0x205   :  { %v2152_v19 = vmax.f32 %v2088_v17, 0.0 }
 0x207   :  { %v2925_v20 = vpack.c.bf16 %v2152_v19, %v2151_v18 }
 0x209   :  { %2957 = vst [vmem:[%s3971_s4 + $0xf8] sm:$0xff] %v2925_v20  }

// kernel: bottleneck_apply.7
= control target key start
LH: loop header
LB: loop body
LE: loop exit
PB: predicated region body
PF: predicated region fallthrough
CT: control target
= control target key end

     0   :  { %v1429_v2 = vmov 0   ;;  %s2104_s0 = inlined_call_operand.vmem [shape: bf16[128,128], index: 0, kind: input, shape index: {}]   ;;  %s2105_s1 = inlined_call_operand.vmem [shape: bf16[128,512], index: 1, kind: input, shape index: {}]   ;;  %s2106_s2 = inlined_call_operand.vmem [shape: f32[1,512], index: 2, kind: input, shape index: {}]   ;;  %s2107_s3 = inlined_call_operand.vmem [shape: f32[1,512], index: 3, kind: input, shape index: {}]   ;;  %s2108_s4 = inlined_call_operand.vmem [shape: bf16[128,512], index: 4, kind: input, shape index: {}]   ;;  %s2109_s5 = inlined_call_operand.hbm [shape: f32[128,512], index: 5, kind: output, shape index: {}]  }
   0x1   :  { %v1351_v0 = vld [vmem:[%s2105_s1 + $0xe4] ss:$16 sps:$4 sm:$0xff]   ;;  %v1353_v1 = vld [vmem:[%s2105_s1 + $0xec] ss:$16 sps:$4 sm:$0xff]   ;;  %442 = vmatprep.mubr.bf16.mxu0 %v1429_v2  ;;  %555 = vmatprep.mubr.bf16.mxu1 %v1429_v2  ;;  %v1355_v3 = vld [vmem:[%s2105_s1 + $0xe0] ss:$16 sps:$4 sm:$0xff]  }
   0x2   :  { %410 = vmatprep.subr.bf16.mxu0 %v1351_v0  ;;  %v1356_v4 = vld [vmem:[%s2105_s1 + $0xe8] ss:$16 sps:$4 sm:$0xff]   ;;  %523 = vmatprep.subr.bf16.mxu1 %v1353_v1  ;;  %v1357_v5 = vld [vmem:[%s2105_s1 + $0xc4] ss:$16 sps:$4 sm:$0xff]   ;;  %v1359_v6 = vld [vmem:[%s2105_s1 + $0xcc] ss:$16 sps:$4 sm:$0xff]  }
   0x3   :  { %411 = vmatpush1.bf16.msra.mxu0 %v1355_v3  ;;  %524 = vmatpush1.bf16.msra.mxu1 %v1356_v4  ;;  %v1361_v7 = vld [vmem:[%s2105_s1 + $0xc0] ss:$16 sps:$4 sm:$0xff]   ;;  %v1362_v8 = vld [vmem:[%s2105_s1 + $0xc8] ss:$16 sps:$4 sm:$0xff]   ;;  %v1363_v9 = vld [vmem:[%s2105_s1 + $0xa4] ss:$16 sps:$4 sm:$0xff]  }
   0x4   :  { %412 = vmatprep.subr.bf16.mxu0 %v1357_v5  ;;  %525 = vmatprep.subr.bf16.mxu1 %v1359_v6  ;;  %v1365_v10 = vld [vmem:[%s2105_s1 + $0xac] ss:$16 sps:$4 sm:$0xff]   ;;  %v1367_v11 = vld [vmem:[%s2105_s1 + $0xa0] ss:$16 sps:$4 sm:$0xff]   ;;  %v1368_v12 = vld [vmem:[%s2105_s1 + $0xa8] ss:$16 sps:$4 sm:$0xff]  }
   0x5   :  { %v1369_v13 = vld [vmem:[%s2105_s1 + $0x84] ss:$16 sps:$4 sm:$0xff]   ;;  %v1371_v14 = vld [vmem:[%s2105_s1 + $0x8c] ss:$16 sps:$4 sm:$0xff]   ;;  %v1373_v15 = vld [vmem:[%s2105_s1 + $0x80] ss:$16 sps:$4 sm:$0xff]  }
   0x6   :  { %v1374_v16 = vld [vmem:[%s2105_s1 + $0x88] ss:$16 sps:$4 sm:$0xff]   ;;  %v1375_v17 = vld [vmem:[%s2105_s1 + $0x64] ss:$16 sps:$4 sm:$0xff]   ;;  %v1377_v18 = vld [vmem:[%s2105_s1 + $0x6c] ss:$16 sps:$4 sm:$0xff]  }
   0x7   :  { %413 = vmatpush1.bf16.msra.mxu0 %v1361_v7  ;;  %526 = vmatpush1.bf16.msra.mxu1 %v1362_v8  ;;  %v1379_v19 = vld [vmem:[%s2105_s1 + $0x60] ss:$16 sps:$4 sm:$0xff]   ;;  %v1380_v20 = vld [vmem:[%s2105_s1 + $0x68] ss:$16 sps:$4 sm:$0xff]   ;;  %v1381_v21 = vld [vmem:[%s2105_s1 + $0x44] ss:$16 sps:$4 sm:$0xff]  }
   0x8   :  { %414 = vmatprep.subr.bf16.mxu0 %v1363_v9  ;;  %527 = vmatprep.subr.bf16.mxu1 %v1365_v10  ;;  %v1383_v22 = vld [vmem:[%s2105_s1 + $0x4c] ss:$16 sps:$4 sm:$0xff]   ;;  %v1385_v23 = vld [vmem:[%s2105_s1 + $0x40] ss:$16 sps:$4 sm:$0xff]   ;;  %v1386_v24 = vld [vmem:[%s2105_s1 + $0x48] ss:$16 sps:$4 sm:$0xff]  }
   0x9   :  { %v1387_v25 = vld [vmem:[%s2105_s1 + $0x24] ss:$16 sps:$4 sm:$0xff]   ;;  %v1389_v26 = vld [vmem:[%s2105_s1 + $0x2c] ss:$16 sps:$4 sm:$0xff]   ;;  %v1391_v27 = vld [vmem:[%s2105_s1 + $0x20] ss:$16 sps:$4 sm:$0xff]  }
   0xa   :  { %v1392_v28 = vld [vmem:[%s2105_s1 + $0x28] ss:$16 sps:$4 sm:$0xff]   ;;  %v1393_v29 = vld [vmem:[%s2105_s1 + $0x4] ss:$16 sps:$4 sm:$0xff]   ;;  %v1395_v30 = vld [vmem:[%s2105_s1 + $0xc] ss:$16 sps:$4 sm:$0xff]  }
   0xb   :  { %415 = vmatpush1.bf16.msra.mxu0 %v1367_v11  ;;  %528 = vmatpush1.bf16.msra.mxu1 %v1368_v12  ;;  %v1397_v31 = vld [vmem:[%s2105_s1] ss:$16 sps:$4 sm:$0xff]   ;;  %v1398_v32 = vld [vmem:[%s2105_s1 + $0x8] ss:$16 sps:$4 sm:$0xff]  }
   0xc   :  { %416 = vmatprep.subr.bf16.mxu0 %v1369_v13  ;;  %529 = vmatprep.subr.bf16.mxu1 %v1371_v14 }
   0xf   :  { %417 = vmatpush1.bf16.msra.mxu0 %v1373_v15  ;;  %530 = vmatpush1.bf16.msra.mxu1 %v1374_v16 }
  0x10   :  { %418 = vmatprep.subr.bf16.mxu0 %v1375_v17  ;;  %531 = vmatprep.subr.bf16.mxu1 %v1377_v18 }
  0x13   :  { %419 = vmatpush1.bf16.msra.mxu0 %v1379_v19  ;;  %532 = vmatpush1.bf16.msra.mxu1 %v1380_v20 }
  0x14   :  { %420 = vmatprep.subr.bf16.mxu0 %v1381_v21  ;;  %533 = vmatprep.subr.bf16.mxu1 %v1383_v22 }
  0x17   :  { %421 = vmatpush1.bf16.msra.mxu0 %v1385_v23  ;;  %534 = vmatpush1.bf16.msra.mxu1 %v1386_v24 }
  0x18   :  { %422 = vmatprep.subr.bf16.mxu0 %v1387_v25  ;;  %535 = vmatprep.subr.bf16.mxu1 %v1389_v26 }
  0x1b   :  { %423 = vmatpush1.bf16.msra.mxu0 %v1391_v27  ;;  %536 = vmatpush1.bf16.msra.mxu1 %v1392_v28 }
  0x1c   :  { %424 = vmatprep.subr.bf16.mxu0 %v1393_v29  ;;  %537 = vmatprep.subr.bf16.mxu1 %v1395_v30 }
  0x1d   :  { %10 = vsyncpa [#allocation4], 0  ;;  %v1399_v33 = vld [vmem:[%s2104_s0] sm:$0xff]   ;;  %v1400_v34 = vld [vmem:[%s2104_s0 + $0x8] sm:$0xff]   ;;  %v833_v41 = vlaneseq }
  0x1e   :  { %v1401_v35 = vld [vmem:[%s2104_s0 + $0x10] sm:$0xff]   ;;  %v1402_v36 = vld [vmem:[%s2104_s0 + $0x18] sm:$0xff]   ;;  %v1403_v37 = vld [vmem:[%s2104_s0 + $0x20] sm:$0xff]  }
  0x1f   :  { %425 = vmatpush1.bf16.msra.mxu0 %v1397_v31  ;;  %538 = vmatpush1.bf16.msra.mxu1 %v1398_v32  ;;  %v1404_v38 = vld [vmem:[%s2104_s0 + $0x28] sm:$0xff]   ;;  %v1405_v39 = vld [vmem:[%s2104_s0 + $0x30] sm:$0xff]   ;;  %v1406_v40 = vld [vmem:[%s2104_s0 + $0x38] sm:$0xff]   ;;  %v834_v42 = vshrl.u32 %v833_v41, 7 }
  0x20   :  { %v831_v45 = vld [vmem:[%s2106_s2] sm:$0xf]  ;;  %v1613_v50 = vld [vmem:[%s2108_s4 + $0x8] sm:$0xff]  ;;  %v1626_v55 = vld [vmem:[%s2108_s4 + $0x10] sm:$0xff] }
  0x21   :  { %v835_v43 = vsub.s32 0, %v834_v42  ;;  %v843_v44 = vsub.s32 2, %v834_v42  ;;  %v917_v46 = vld [vmem:[%s2107_s3] sm:$0xf]  ;;  %v839_v47 = vsub.s32 1, %v834_v42  ;;  %v847_v48 = vsub.s32 3, %v834_v42 }
  0x22   :  { %443 = vmatmul.mubr.bf16.vlgmr.msra.gmra.mxu0 %v1399_v33  ;;  %556 = vmatmul.mubr.bf16.vlgmr.msra.gmra.mxu1 %v1399_v33  ;;  %v1608_v49 = vld [vmem:[%s2108_s4] sm:$0xff]  ;;  %v1631_v56 = vld [vmem:[%s2108_s4 + $0x18] sm:$0xff]  ;;  %v1037_v58 = vunpack.c.l.bf16 %v1613_v50  ;;  %v1647_v62 = vld [vmem:[%s2108_s4 + $0x28] sm:$0xff]  ;;  %v1039_v5 = vunpack.c.l.bf16 %v1626_v55 }
  0x23   :  { %452 = vmatprep.mubr.bf16.mxu0 %v1429_v2  ;;  %565 = vmatprep.mubr.bf16.mxu1 %v1429_v2  ;;  %v1615_v51 = vrot.slane %v831_v45, %v835_v43  ;;  %v1617_v52 = vrot.slane %v917_v46, %v835_v43  ;;  %v1619_v53 = vrot.slane %v831_v45, %v843_v44  ;;  %v1035_v57 = vunpack.c.l.bf16 %v1608_v49  ;;  %v1642_v61 = vld [vmem:[%s2108_s4 + $0x20] sm:$0xff]  ;;  %v1658_v3 = vld [vmem:[%s2108_s4 + $0x30] sm:$0xff]  ;;  %v1663_v4 = vld [vmem:[%s2108_s4 + $0x38] sm:$0xff] }
  0x24   :  { %v1621_v54 = vrot.slane %v917_v46, %v843_v44  ;;  %v1635_v59 = vrot.slane %v831_v45, %v839_v47  ;;  %v1637_v60 = vrot.slane %v831_v45, %v847_v48  ;;  %v1649_v63 = vrot.slane %v917_v46, %v839_v47  ;;  %v1672_v9 = vld [vmem:[%s2108_s4 + $0x40] sm:$0xff]  ;;  %v1677_v10 = vld [vmem:[%s2108_s4 + $0x48] sm:$0xff]  ;;  %v1686_v15 = vld [vmem:[%s2108_s4 + $0x50] sm:$0xff] }
  0x25   :  { %v1036_v0 = vunpack.c.h.bf16 %v1608_v49  ;;  %v1652_v1 = vrot.slane %v917_v46, %v847_v48  ;;  %v1041_v6 = vunpack.c.l.bf16 %v1631_v56  ;;  %v1691_v16 = vld [vmem:[%s2108_s4 + $0x58] sm:$0xff]  ;;  %v1700_v21 = vld [vmem:[%s2108_s4 + $0x60] sm:$0xff]  ;;  %v1705_v22 = vld [vmem:[%s2108_s4 + $0x68] sm:$0xff] }
  0x26   :  { %v1714_v27 = vld [vmem:[%s2108_s4 + $0x70] sm:$0xff]  ;;  %v1719_v28 = vld [vmem:[%s2108_s4 + $0x78] sm:$0xff]  ;;  %v1728_v33 = vld [vmem:[%s2108_s4 + $0x80] sm:$0xff] }
  0x27   :  { %v1756_v45 = vld [vmem:[%s2108_s4 + $0xa0] sm:$0xff]  ;;  %v1761_v46 = vld [vmem:[%s2108_s4 + $0xa8] sm:$0xff]  ;;  %v1770_v44 = vld [vmem:[%s2108_s4 + $0xb0] sm:$0xff] }
  0x28   :  { %v1775_v41 = vld [vmem:[%s2108_s4 + $0xb8] sm:$0xff]  ;;  %v1784_v43 = vld [vmem:[%s2108_s4 + $0xc0] sm:$0xff]  ;;  %v1798_v42 = vld [vmem:[%s2108_s4 + $0xd0] sm:$0xff] }
  0x29   :  { %v1812_v48 = vld [vmem:[%s2108_s4 + $0xe0] sm:$0xff]  ;;  %v1817_v31 = vld [vmem:[%s2108_s4 + $0xe8] sm:$0xff]  ;;  %v1830_v20 = vld [vmem:[%s2108_s4 + $0xf0] sm:$0xff] }
  0x2a   :  { %453 = vmatmul.mubr.bf16.gmra.mxu0 %v1400_v34  ;;  %566 = vmatmul.mubr.bf16.gmra.mxu1 %v1400_v34  ;;  %v1733_v34 = vld [vmem:[%s2108_s4 + $0x88] sm:$0xff] }
  0x2b   :  { %462 = vmatprep.mubr.bf16.mxu0 %v1429_v2  ;;  %575 = vmatprep.mubr.bf16.mxu1 %v1429_v2 }
  0x32   :  { %463 = vmatmul.mubr.bf16.gmra.mxu0 %v1401_v35  ;;  %576 = vmatmul.mubr.bf16.gmra.mxu1 %v1401_v35  ;;  %v1803_v35 = vld [vmem:[%s2108_s4 + $0xd8] sm:$0xff] }
  0x33   :  { %472 = vmatprep.mubr.bf16.mxu0 %v1429_v2  ;;  %585 = vmatprep.mubr.bf16.mxu1 %v1429_v2 }
  0x3a   :  { %473 = vmatmul.mubr.bf16.gmra.mxu0 %v1402_v36  ;;  %586 = vmatmul.mubr.bf16.gmra.mxu1 %v1402_v36  ;;  %v1835_v36 = vld [vmem:[%s2108_s4 + $0xf8] sm:$0xff] }
  0x3b   :  { %482 = vmatprep.mubr.bf16.mxu0 %v1429_v2  ;;  %595 = vmatprep.mubr.bf16.mxu1 %v1429_v2  ;;  %v1098_v24 = vunpack.c.h.bf16 %v1835_v36 }
  0x42   :  { %483 = vmatmul.mubr.bf16.gmra.mxu0 %v1403_v37  ;;  %596 = vmatmul.mubr.bf16.gmra.mxu1 %v1403_v37  ;;  %v1789_v37 = vld [vmem:[%s2108_s4 + $0xc8] sm:$0xff] }
  0x43   :  { %492 = vmatprep.mubr.bf16.mxu0 %v1429_v2  ;;  %605 = vmatprep.mubr.bf16.mxu1 %v1429_v2 }
  0x4a   :  { %493 = vmatmul.mubr.bf16.gmra.mxu0 %v1404_v38  ;;  %606 = vmatmul.mubr.bf16.gmra.mxu1 %v1404_v38 }
  0x4b   :  { %502 = vmatprep.mubr.bf16.mxu0 %v1429_v2  ;;  %615 = vmatprep.mubr.bf16.mxu1 %v1429_v2 }
  0x52   :  { %503 = vmatmul.mubr.bf16.gmra.mxu0 %v1405_v39  ;;  %616 = vmatmul.mubr.bf16.gmra.mxu1 %v1405_v39  ;;  %v1742_v39 = vld [vmem:[%s2108_s4 + $0x90] sm:$0xff] }
  0x53   :  { %512 = vmatprep.mubr.bf16.mxu0 %v1429_v2  ;;  %625 = vmatprep.mubr.bf16.mxu1 %v1429_v2  ;;  %v1038_v2 = vunpack.c.h.bf16 %v1613_v50 }
  0x5a   :  { %513 = vmatmul.mubr.bf16.gmra.mxu0 %v1406_v40  ;;  %626 = vmatmul.mubr.bf16.gmra.mxu1 %v1406_v40  ;;  %v1747_v40 = vld [vmem:[%s2108_s4 + $0x98] sm:$0xff]  ;;  %s1430_s4 = smov [#allocation3]  }
  0x5b   :  { %s1296_s29 = sshll.u32 %s1430_s4, 4  ;;  %s1297_s29 = int_to_ptr.vmem [resolvable:$true] %s1296_s29 }
  0x5c   :  { %s1407_s30 = scalar_lea.vmem %s1297_s29, 8192  ;;  %p1412_p1 = scmp.lt.s32.totalorder %s1297_s29, %s1297_s29 }
  0x5d   :  { %p1408_p0 = scmp.ne.s32.totalorder %s1297_s29, %s1407_s30  ;;  %p1413_p2 = scmp.lt.s32.totalorder %s1407_s30, %s1407_s30 }
  0x5f   :  { %p1414_p3 = por %p1413_p2, %p1412_p1 }
  0x61   :  { %p1415_p4 = pnand %p1414_p3, %p1408_p0 }
  0xe2   :  { %v444_v30 = vpop.f32.mrf.mxu0  ;;  %v557_v29 = vpop.f32.mrf.mxu1 }
  0xe3   :  { %v853_v26 = vmul.f32 %v1615_v51, %v444_v30  ;;  %v855_v25 = vmul.f32 %v1619_v53, %v557_v29  ;;  %v1096_v29 = vunpack.c.h.bf16 %v1830_v20 }
  0xe4   :  { %v446_v38 = vpop.f32.mrf.mxu0  ;;  %v559_v47 = vpop.f32.mrf.mxu1 }
  0xe5   :  { %v939_v32 = vadd.f32 %v1617_v52, %v853_v26  ;;  %v941_v19 = vadd.f32 %v1621_v54, %v855_v25  ;;  %v854_v18 = vmul.f32 %v1635_v59, %v446_v38  ;;  %v856_v17 = vmul.f32 %v1637_v60, %v559_v47 }
  0xe6   :  { %v448_v14 = vpop.f32.mrf.mxu0  ;;  %v561_v13 = vpop.f32.mrf.mxu1 }
  0xe7   :  { %v1099_v23 = vadd.f32 %v1035_v57, %v939_v32  ;;  %v1101_v25 = vadd.f32 %v1037_v58, %v941_v19  ;;  %v940_v26 = vadd.f32 %v1649_v63, %v854_v18  ;;  %v942_v38 = vadd.f32 %v1652_v1, %v856_v17 }
  0xe8   :  { %v857_v47 = vmul.f32 %v1615_v51, %v448_v14  ;;  %v859_v12 = vmul.f32 %v1619_v53, %v561_v13  ;;  %v450_v11 = vpop.f32.mrf.mxu0  ;;  %v563_v30 = vpop.f32.mrf.mxu1 }
  0xe9   :  { %v1163_v8 = vmax.f32 %v1099_v23, 0.0  ;;  %v1165_v7 = vmax.f32 %v1101_v25, 0.0  ;;  %v1100_v57 = vadd.f32 %v1036_v0, %v940_v26  ;;  %v1102_v58 = vadd.f32 %v1038_v2, %v942_v38 }
  0xea   :  { %v943_v17 = vadd.f32 %v1617_v52, %v857_v47  ;;  %v945_v14 = vadd.f32 %v1621_v54, %v859_v12  ;;  %v858_v13 = vmul.f32 %v1635_v59, %v450_v11  ;;  %v860_v18 = vmul.f32 %v1637_v60, %v563_v30  ;;  %v454_v19 = vpop.f32.mrf.mxu0  ;;  %v567_v32 = vpop.f32.mrf.mxu1 }
  0xeb   :  { %1227 = vst [vmem:[#allocation3] sm:$0xff] %v1163_v8  ;;  %1229 = vst [vmem:[#allocation3 + $0x10] sm:$0xff] %v1165_v7  ;;  %v1164_v23 = vmax.f32 %v1100_v57, 0.0  ;;  %v1166_v25 = vmax.f32 %v1102_v58, 0.0  ;;  %v861_v49 = vmul.f32 %v1615_v51, %v454_v19  ;;  %v863_v0 = vmul.f32 %v1619_v53, %v567_v32 }
  0xec   :  { %v1103_v50 = vadd.f32 %v1039_v5, %v943_v17  ;;  %v1105_v2 = vadd.f32 %v1041_v6, %v945_v14  ;;  %v944_v11 = vadd.f32 %v1649_v63, %v858_v13  ;;  %v946_v12 = vadd.f32 %v1652_v1, %v860_v18  ;;  %v456_v30 = vpop.f32.mrf.mxu0  ;;  %v569_v26 = vpop.f32.mrf.mxu1 }
  0xed   :  { %1228 = vst [vmem:[#allocation3 + $0x8] sm:$0xff] %v1164_v23  ;;  %1230 = vst [vmem:[#allocation3 + $0x18] sm:$0xff] %v1166_v25  ;;  %v947_v7 = vadd.f32 %v1617_v52, %v861_v49  ;;  %v949_v8 = vadd.f32 %v1621_v54, %v863_v0  ;;  %v862_v38 = vmul.f32 %v1635_v59, %v456_v30  ;;  %v2110_v6 = vunpack.c.h.bf16 %v1626_v55 }
  0xee   :  { %v864_v47 = vmul.f32 %v1637_v60, %v569_v26  ;;  %v1167_v5 = vmax.f32 %v1103_v50, 0.0  ;;  %v1169_v57 = vmax.f32 %v1105_v2, 0.0  ;;  %v2111_v17 = vunpack.c.h.bf16 %v1631_v56  ;;  %v458_v13 = vpop.f32.mrf.mxu0  ;;  %v571_v18 = vpop.f32.mrf.mxu1 }
  0xef   :  { %v1104_v58 = vadd.f32 %v2110_v6, %v944_v11  ;;  %v2112_v19 = vunpack.c.l.bf16 %v1642_v61  ;;  %v2113_v23 = vunpack.c.l.bf16 %v1647_v62  ;;  %v948_v49 = vadd.f32 %v1649_v63, %v862_v38 }
  0xf0   :  { %v1106_v14 = vadd.f32 %v2111_v17, %v946_v12  ;;  %v950_v0 = vadd.f32 %v1652_v1, %v864_v47  ;;  %1231 = vst [vmem:[#allocation3 + $0x20] sm:$0xff] %v1167_v5  ;;  %1233 = vst [vmem:[#allocation3 + $0x30] sm:$0xff] %v1169_v57  ;;  %v865_v2 = vmul.f32 %v1615_v51, %v458_v13  ;;  %v460_v11 = vpop.f32.mrf.mxu0  ;;  %v573_v12 = vpop.f32.mrf.mxu1 }
  0xf1   :  { %v1107_v32 = vadd.f32 %v2112_v19, %v947_v7  ;;  %v1109_v25 = vadd.f32 %v2113_v23, %v949_v8  ;;  %v1168_v50 = vmax.f32 %v1104_v58, 0.0  ;;  %v867_v56 = vmul.f32 %v1619_v53, %v571_v18 }
  0xf2   :  { %v1170_v55 = vmax.f32 %v1106_v14, 0.0  ;;  %v2114_v7 = vunpack.c.h.bf16 %v1642_v61  ;;  %v2115_v8 = vunpack.c.h.bf16 %v1647_v62  ;;  %v951_v47 = vadd.f32 %v1617_v52, %v865_v2  ;;  %v464_v17 = vpop.f32.mrf.mxu0  ;;  %v577_v14 = vpop.f32.mrf.mxu1 }
  0xf3   :  { %v1171_v30 = vmax.f32 %v1107_v32, 0.0  ;;  %v1173_v26 = vmax.f32 %v1109_v25, 0.0  ;;  %1232 = vst [vmem:[#allocation3 + $0x28] sm:$0xff] %v1168_v50  ;;  %v953_v5 = vadd.f32 %v1621_v54, %v867_v56  ;;  %v866_v57 = vmul.f32 %v1635_v59, %v460_v11 }
  0xf4   :  { %v1108_v6 = vadd.f32 %v2114_v7, %v948_v49  ;;  %v1110_v38 = vadd.f32 %v2115_v8, %v950_v0  ;;  %1234 = vst [vmem:[#allocation3 + $0x38] sm:$0xff] %v1170_v55  ;;  %v868_v58 = vmul.f32 %v1637_v60, %v573_v12  ;;  %v869_v18 = vmul.f32 %v1615_v51, %v464_v17  ;;  %v466_v50 = vpop.f32.mrf.mxu0  ;;  %v579_v55 = vpop.f32.mrf.mxu1 }
  0xf5   :  { %1235 = vst [vmem:[#allocation3 + $0x40] sm:$0xff] %v1171_v30  ;;  %1237 = vst [vmem:[#allocation3 + $0x50] sm:$0xff] %v1173_v26  ;;  %v871_v62 = vmul.f32 %v1619_v53, %v577_v14  ;;  %v2116_v19 = vunpack.c.l.bf16 %v1658_v3  ;;  %v2117_v23 = vunpack.c.l.bf16 %v1663_v4  ;;  %v952_v49 = vadd.f32 %v1649_v63, %v866_v57 }
  0xf6   :  { %v1172_v13 = vmax.f32 %v1108_v6, 0.0  ;;  %v1174_v61 = vmax.f32 %v1110_v38, 0.0  ;;  %v954_v0 = vadd.f32 %v1652_v1, %v868_v58  ;;  %v955_v2 = vadd.f32 %v1617_v52, %v869_v18 }
  0xf7   :  { %v1111_v32 = vadd.f32 %v2116_v19, %v951_v47  ;;  %v1113_v25 = vadd.f32 %v2117_v23, %v953_v5  ;;  %v957_v56 = vadd.f32 %v1621_v54, %v871_v62  ;;  %v870_v11 = vmul.f32 %v1635_v59, %v466_v50  ;;  %v468_v47 = vpop.f32.mrf.mxu0  ;;  %v581_v5 = vpop.f32.mrf.mxu1 }
  0xf8   :  { %1236 = vst [vmem:[#allocation3 + $0x48] sm:$0xff] %v1172_v13  ;;  %1238 = vst [vmem:[#allocation3 + $0x58] sm:$0xff] %v1174_v61  ;;  %v872_v12 = vmul.f32 %v1637_v60, %v579_v55  ;;  %v2118_v7 = vunpack.c.h.bf16 %v1658_v3  ;;  %v2119_v8 = vunpack.c.h.bf16 %v1663_v4  ;;  %v2120_v57 = vunpack.c.l.bf16 %v1672_v9 }
  0xf9   :  { %v1175_v30 = vmax.f32 %v1111_v32, 0.0  ;;  %v1177_v26 = vmax.f32 %v1113_v25, 0.0  ;;  %v2121_v17 = vunpack.c.l.bf16 %v1677_v10  ;;  %v956_v13 = vadd.f32 %v1649_v63, %v870_v11  ;;  %v470_v19 = vpop.f32.mrf.mxu0  ;;  %v583_v32 = vpop.f32.mrf.mxu1 }
  0xfa   :  { %v1112_v6 = vadd.f32 %v2118_v7, %v952_v49  ;;  %v1114_v38 = vadd.f32 %v2119_v8, %v954_v0  ;;  %v1115_v58 = vadd.f32 %v2120_v57, %v955_v2  ;;  %v958_v61 = vadd.f32 %v1652_v1, %v872_v12 }
  0xfb   :  { %v1117_v14 = vadd.f32 %v2121_v17, %v957_v56  ;;  %1239 = vst [vmem:[#allocation3 + $0x60] sm:$0xff] %v1175_v30  ;;  %1241 = vst [vmem:[#allocation3 + $0x70] sm:$0xff] %v1177_v26  ;;  %v873_v62 = vmul.f32 %v1615_v51, %v468_v47  ;;  %v875_v4 = vmul.f32 %v1619_v53, %v581_v5  ;;  %v2122_v49 = vunpack.c.h.bf16 %v1672_v9  ;;  %v474_v30 = vpop.f32.mrf.mxu0  ;;  %v587_v26 = vpop.f32.mrf.mxu1 }
  0xfc   :  { %v1176_v18 = vmax.f32 %v1112_v6, 0.0  ;;  %v1178_v3 = vmax.f32 %v1114_v38, 0.0  ;;  %v1179_v23 = vmax.f32 %v1115_v58, 0.0  ;;  %v2123_v50 = vunpack.c.h.bf16 %v1677_v10 }
  0xfd   :  { %v1181_v25 = vmax.f32 %v1117_v14, 0.0  ;;  %v1116_v0 = vadd.f32 %v2122_v49, %v956_v13  ;;  %v959_v2 = vadd.f32 %v1617_v52, %v873_v62  ;;  %v961_v56 = vadd.f32 %v1621_v54, %v875_v4  ;;  %v476_v17 = vpop.f32.mrf.mxu0  ;;  %v589_v14 = vpop.f32.mrf.mxu1 }
  0xfe   :  { %v1118_v55 = vadd.f32 %v2123_v50, %v958_v61  ;;  %1240 = vst [vmem:[#allocation3 + $0x68] sm:$0xff] %v1176_v18  ;;  %1242 = vst [vmem:[#allocation3 + $0x78] sm:$0xff] %v1178_v3  ;;  %v874_v11 = vmul.f32 %v1635_v59, %v470_v19  ;;  %v876_v12 = vmul.f32 %v1637_v60, %v583_v32  ;;  %v2124_v8 = vunpack.c.l.bf16 %v1686_v15 }
  0xff   :  { %1243 = vst [vmem:[#allocation3 + $0x80] sm:$0xff] %v1179_v23  ;;  %1245 = vst [vmem:[#allocation3 + $0x90] sm:$0xff] %v1181_v25  ;;  %v1180_v7 = vmax.f32 %v1116_v0, 0.0  ;;  %v877_v6 = vmul.f32 %v1615_v51, %v474_v30  ;;  %v879_v10 = vmul.f32 %v1619_v53, %v587_v26  ;;  %v2125_v47 = vunpack.c.l.bf16 %v1691_v16  ;;  %v478_v49 = vpop.f32.mrf.mxu0  ;;  %v591_v0 = vpop.f32.mrf.mxu1 }
 0x100   :  { %v1182_v9 = vmax.f32 %v1118_v55, 0.0  ;;  %v1119_v38 = vadd.f32 %v2124_v8, %v959_v2  ;;  %v960_v57 = vadd.f32 %v1649_v63, %v874_v11  ;;  %v962_v58 = vadd.f32 %v1652_v1, %v876_v12 }
 0x101   :  { %v1121_v5 = vadd.f32 %v2125_v47, %v961_v56  ;;  %1244 = vst [vmem:[#allocation3 + $0x88] sm:$0xff] %v1180_v7  ;;  %v963_v13 = vadd.f32 %v1617_v52, %v877_v6  ;;  %v965_v61 = vadd.f32 %v1621_v54, %v879_v10  ;;  %v878_v18 = vmul.f32 %v1635_v59, %v476_v17  ;;  %v480_v7 = vpop.f32.mrf.mxu0 }
 0x102   :  { %1246 = vst [vmem:[#allocation3 + $0x98] sm:$0xff] %v1182_v9  ;;  %v880_v3 = vmul.f32 %v1637_v60, %v589_v14  ;;  %v1183_v62 = vmax.f32 %v1119_v38, 0.0  ;;  %v2126_v19 = vunpack.c.h.bf16 %v1686_v15  ;;  %v2127_v23 = vunpack.c.h.bf16 %v1691_v16  ;;  %v593_v9 = vpop.f32.mrf.mxu1 }
 0x103   :  { %v1185_v4 = vmax.f32 %v1121_v5, 0.0  ;;  %v2128_v50 = vunpack.c.l.bf16 %v1700_v21  ;;  %v2129_v2 = vunpack.c.l.bf16 %v1705_v22  ;;  %v964_v11 = vadd.f32 %v1649_v63, %v878_v18 }
 0x104   :  { %v1120_v32 = vadd.f32 %v2126_v19, %v960_v57  ;;  %v1122_v25 = vadd.f32 %v2127_v23, %v962_v58  ;;  %v966_v12 = vadd.f32 %v1652_v1, %v880_v3  ;;  %1247 = vst [vmem:[#allocation3 + $0xa0] sm:$0xff] %v1183_v62  ;;  %v881_v26 = vmul.f32 %v1615_v51, %v478_v49 }
 0x105   :  { %v1123_v55 = vadd.f32 %v2128_v50, %v963_v13  ;;  %v1125_v56 = vadd.f32 %v2129_v2, %v965_v61  ;;  %1249 = vst [vmem:[#allocation3 + $0xb0] sm:$0xff] %v1185_v4  ;;  %v883_v16 = vmul.f32 %v1619_v53, %v591_v0  ;;  %v2130_v8 = vunpack.c.h.bf16 %v1700_v21  ;;  %v484_v13 = vpop.f32.mrf.mxu0  ;;  %v597_v61 = vpop.f32.mrf.mxu1 }
 0x106   :  { %v1184_v30 = vmax.f32 %v1120_v32, 0.0  ;;  %v1186_v15 = vmax.f32 %v1122_v25, 0.0  ;;  %v2131_v47 = vunpack.c.h.bf16 %v1705_v22  ;;  %v967_v57 = vadd.f32 %v1617_v52, %v881_v26 }
 0x107   :  { %v1187_v6 = vmax.f32 %v1123_v55, 0.0  ;;  %v1189_v10 = vmax.f32 %v1125_v56, 0.0  ;;  %v1124_v38 = vadd.f32 %v2130_v8, %v964_v11  ;;  %v969_v58 = vadd.f32 %v1621_v54, %v883_v16  ;;  %v486_v49 = vpop.f32.mrf.mxu0  ;;  %v599_v0 = vpop.f32.mrf.mxu1 }
 0x108   :  { %v1126_v5 = vadd.f32 %v2131_v47, %v966_v12  ;;  %1248 = vst [vmem:[#allocation3 + $0xa8] sm:$0xff] %v1184_v30  ;;  %1250 = vst [vmem:[#allocation3 + $0xb8] sm:$0xff] %v1186_v15  ;;  %v882_v17 = vmul.f32 %v1635_v59, %v480_v7  ;;  %v884_v14 = vmul.f32 %v1637_v60, %v593_v9  ;;  %v2132_v62 = vunpack.c.l.bf16 %v1714_v27 }
 0x109   :  { %1251 = vst [vmem:[#allocation3 + $0xc0] sm:$0xff] %v1187_v6  ;;  %1253 = vst [vmem:[#allocation3 + $0xd0] sm:$0xff] %v1189_v10  ;;  %v1188_v18 = vmax.f32 %v1124_v38, 0.0  ;;  %v885_v3 = vmul.f32 %v1615_v51, %v484_v13  ;;  %v887_v22 = vmul.f32 %v1619_v53, %v597_v61  ;;  %v2133_v19 = vunpack.c.l.bf16 %v1719_v28  ;;  %v488_v7 = vpop.f32.mrf.mxu0  ;;  %v601_v9 = vpop.f32.mrf.mxu1 }
 0x10a   :  { %v1190_v21 = vmax.f32 %v1126_v5, 0.0  ;;  %v1127_v4 = vadd.f32 %v2132_v62, %v967_v57  ;;  %v968_v23 = vadd.f32 %v1649_v63, %v882_v17  ;;  %v970_v25 = vadd.f32 %v1652_v1, %v884_v14 }
 0x10b   :  { %v1129_v32 = vadd.f32 %v2133_v19, %v969_v58  ;;  %1252 = vst [vmem:[#allocation3 + $0xc8] sm:$0xff] %v1188_v18  ;;  %v971_v50 = vadd.f32 %v1617_v52, %v885_v3  ;;  %v973_v55 = vadd.f32 %v1621_v54, %v887_v22  ;;  %v886_v2 = vmul.f32 %v1635_v59, %v486_v49  ;;  %v490_v17 = vpop.f32.mrf.mxu0  ;;  %v603_v14 = vpop.f32.mrf.mxu1 }
 0x10c   :  { %1254 = vst [vmem:[#allocation3 + $0xd8] sm:$0xff] %v1190_v21  ;;  %v888_v56 = vmul.f32 %v1637_v60, %v599_v0  ;;  %v1191_v11 = vmax.f32 %v1127_v4, 0.0  ;;  %v2134_v30 = vunpack.c.h.bf16 %v1714_v27  ;;  %v2135_v26 = vunpack.c.h.bf16 %v1719_v28 }
 0x10d   :  { %v1193_v12 = vmax.f32 %v1129_v32, 0.0  ;;  %v2136_v6 = vunpack.c.l.bf16 %v1728_v33  ;;  %v2137_v8 = vunpack.c.l.bf16 %v1733_v34  ;;  %v972_v47 = vadd.f32 %v1649_v63, %v886_v2 }
 0x10e   :  { %v1128_v15 = vadd.f32 %v2134_v30, %v968_v23  ;;  %v1130_v16 = vadd.f32 %v2135_v26, %v970_v25  ;;  %v974_v5 = vadd.f32 %v1652_v1, %v888_v56  ;;  %1255 = vst [vmem:[#allocation3 + $0xe0] sm:$0xff] %v1191_v11  ;;  %v889_v58 = vmul.f32 %v1615_v51, %v488_v7  ;;  %v494_v23 = vpop.f32.mrf.mxu0  ;;  %v607_v25 = vpop.f32.mrf.mxu1 }
 0x10f   :  { %v1131_v10 = vadd.f32 %v2136_v6, %v971_v50  ;;  %v1133_v38 = vadd.f32 %v2137_v8, %v973_v55  ;;  %1257 = vst [vmem:[#allocation3 + $0xf0] sm:$0xff] %v1193_v12  ;;  %v891_v28 = vmul.f32 %v1619_v53, %v601_v9  ;;  %v2138_v18 = vunpack.c.h.bf16 %v1728_v33 }
 0x110   :  { %v1192_v57 = vmax.f32 %v1128_v15, 0.0  ;;  %v1194_v27 = vmax.f32 %v1130_v16, 0.0  ;;  %v2139_v3 = vunpack.c.h.bf16 %v1733_v34  ;;  %v975_v62 = vadd.f32 %v1617_v52, %v889_v58  ;;  %v496_v30 = vpop.f32.mrf.mxu0  ;;  %v609_v15 = vpop.f32.mrf.mxu1 }
 0x111   :  { %v1195_v13 = vmax.f32 %v1131_v10, 0.0  ;;  %v1197_v61 = vmax.f32 %v1133_v38, 0.0  ;;  %v1132_v21 = vadd.f32 %v2138_v18, %v972_v47  ;;  %v977_v4 = vadd.f32 %v1621_v54, %v891_v28 }
 0x112   :  { %v1134_v22 = vadd.f32 %v2139_v3, %v974_v5  ;;  %1256 = vst [vmem:[#allocation3 + $0xe8] sm:$0xff] %v1192_v57  ;;  %1258 = vst [vmem:[#allocation3 + $0xf8] sm:$0xff] %v1194_v27  ;;  %v890_v19 = vmul.f32 %v1635_v59, %v490_v17  ;;  %v892_v32 = vmul.f32 %v1637_v60, %v603_v14  ;;  %v2140_v50 = vunpack.c.l.bf16 %v1742_v39  ;;  %v498_v57 = vpop.f32.mrf.mxu0  ;;  %v611_v27 = vpop.f32.mrf.mxu1 }
 0x113   :  { %1259 = vst [vmem:[#allocation3 + $0x100] sm:$0xff] %v1195_v13  ;;  %1261 = vst [vmem:[#allocation3 + $0x110] sm:$0xff] %v1197_v61  ;;  %v1196_v49 = vmax.f32 %v1132_v21, 0.0  ;;  %v893_v0 = vmul.f32 %v1615_v51, %v494_v23  ;;  %v895_v34 = vmul.f32 %v1619_v53, %v607_v25  ;;  %v2141_v2 = vunpack.c.l.bf16 %v1747_v40 }
 0x114   :  { %v1198_v33 = vmax.f32 %v1134_v22, 0.0  ;;  %v1135_v55 = vadd.f32 %v2140_v50, %v975_v62  ;;  %v976_v11 = vadd.f32 %v1649_v63, %v890_v19  ;;  %v978_v12 = vadd.f32 %v1652_v1, %v892_v32  ;;  %v500_v3 = vpop.f32.mrf.mxu0  ;;  %v613_v22 = vpop.f32.mrf.mxu1 }
 0x115   :  { %v1137_v56 = vadd.f32 %v2141_v2, %v977_v4  ;;  %1260 = vst [vmem:[#allocation3 + $0x108] sm:$0xff] %v1196_v49  ;;  %v979_v26 = vadd.f32 %v1617_v52, %v893_v0  ;;  %v981_v16 = vadd.f32 %v1621_v54, %v895_v34  ;;  %v894_v7 = vmul.f32 %v1635_v59, %v496_v30 }
 0x116   :  { %1262 = vst [vmem:[#allocation3 + $0x118] sm:$0xff] %v1198_v33  ;;  %v896_v9 = vmul.f32 %v1637_v60, %v609_v15  ;;  %v1199_v6 = vmax.f32 %v1135_v55, 0.0  ;;  %v2142_v8 = vunpack.c.h.bf16 %v1742_v39  ;;  %v2143_v47 = vunpack.c.h.bf16 %v1747_v40  ;;  %v504_v50 = vpop.f32.mrf.mxu0  ;;  %v617_v55 = vpop.f32.mrf.mxu1 }
 0x117   :  { %v1201_v10 = vmax.f32 %v1137_v56, 0.0  ;;  %v2144_v58 = vunpack.c.l.bf16 %v1756_v45  ;;  %v2145_v17 = vunpack.c.l.bf16 %v1761_v46  ;;  %v980_v13 = vadd.f32 %v1649_v63, %v894_v7 }
 0x118   :  { %v1136_v38 = vadd.f32 %v2142_v8, %v976_v11  ;;  %v1138_v5 = vadd.f32 %v2143_v47, %v978_v12  ;;  %v982_v61 = vadd.f32 %v1652_v1, %v896_v9  ;;  %1263 = vst [vmem:[#allocation3 + $0x120] sm:$0xff] %v1199_v6  ;;  %v897_v21 = vmul.f32 %v1615_v51, %v498_v57  ;;  %v506_v7 = vpop.f32.mrf.mxu0  ;;  %v619_v9 = vpop.f32.mrf.mxu1 }
 0x119   :  { %v1139_v28 = vadd.f32 %v2144_v58, %v979_v26  ;;  %v1141_v14 = vadd.f32 %v2145_v17, %v981_v16  ;;  %1265 = vst [vmem:[#allocation3 + $0x130] sm:$0xff] %v1201_v10  ;;  %v899_v40 = vmul.f32 %v1619_v53, %v611_v27  ;;  %v2146_v19 = vunpack.c.h.bf16 %v1756_v45 }
 0x11a   :  { %v1200_v18 = vmax.f32 %v1136_v38, 0.0  ;;  %v1202_v39 = vmax.f32 %v1138_v5, 0.0  ;;  %v2147_v23 = vunpack.c.h.bf16 %v1761_v46  ;;  %v983_v49 = vadd.f32 %v1617_v52, %v897_v21  ;;  %v508_v17 = vpop.f32.mrf.mxu0 }
 0x11b   :  { %v1203_v62 = vmax.f32 %v1139_v28, 0.0  ;;  %v1205_v4 = vmax.f32 %v1141_v14, 0.0  ;;  %v1140_v32 = vadd.f32 %v2146_v19, %v980_v13  ;;  %v985_v33 = vadd.f32 %v1621_v54, %v899_v40  ;;  %v621_v14 = vpop.f32.mrf.mxu1 }
 0x11c   :  { %v1142_v25 = vadd.f32 %v2147_v23, %v982_v61  ;;  %1264 = vst [vmem:[#allocation3 + $0x128] sm:$0xff] %v1200_v18  ;;  %1266 = vst [vmem:[#allocation3 + $0x138] sm:$0xff] %v1202_v39  ;;  %v898_v0 = vmul.f32 %v1635_v59, %v500_v3  ;;  %v900_v34 = vmul.f32 %v1637_v60, %v613_v22  ;;  %v2148_v11 = vunpack.c.l.bf16 %v1770_v44 }
 0x11d   :  { %1267 = vst [vmem:[#allocation3 + $0x140] sm:$0xff] %v1203_v62  ;;  %1269 = vst [vmem:[#allocation3 + $0x150] sm:$0xff] %v1205_v4  ;;  %v1204_v2 = vmax.f32 %v1140_v32, 0.0  ;;  %v901_v56 = vmul.f32 %v1615_v51, %v504_v50  ;;  %v903_v46 = vmul.f32 %v1619_v53, %v617_v55  ;;  %v2149_v30 = vunpack.c.l.bf16 %v1775_v41  ;;  %v510_v62 = vpop.f32.mrf.mxu0  ;;  %v623_v4 = vpop.f32.mrf.mxu1 }
 0x11e   :  { %v1206_v45 = vmax.f32 %v1142_v25, 0.0  ;;  %v1143_v12 = vadd.f32 %v2148_v11, %v983_v49  ;;  %v984_v26 = vadd.f32 %v1649_v63, %v898_v0  ;;  %v986_v16 = vadd.f32 %v1652_v1, %v900_v34 }
 0x11f   :  { %v1145_v15 = vadd.f32 %v2149_v30, %v985_v33  ;;  %1268 = vst [vmem:[#allocation3 + $0x148] sm:$0xff] %v1204_v2  ;;  %v987_v6 = vadd.f32 %v1617_v52, %v901_v56  ;;  %v989_v10 = vadd.f32 %v1621_v54, %v903_v46  ;;  %v902_v8 = vmul.f32 %v1635_v59, %v506_v7  ;;  %v514_v2 = vpop.f32.mrf.mxu0 }
 0x120   :  { %1270 = vst [vmem:[#allocation3 + $0x158] sm:$0xff] %v1206_v45  ;;  %v904_v38 = vmul.f32 %v1637_v60, %v619_v9  ;;  %v1207_v47 = vmax.f32 %v1143_v12, 0.0  ;;  %v2150_v57 = vunpack.c.h.bf16 %v1770_v44  ;;  %v2151_v58 = vunpack.c.h.bf16 %v1775_v41  ;;  %v627_v45 = vpop.f32.mrf.mxu1 }
 0x121   :  { %v1209_v5 = vmax.f32 %v1145_v15, 0.0  ;;  %v2152_v13 = vunpack.c.l.bf16 %v1784_v43  ;;  %v2153_v18 = vunpack.c.l.bf16 %v1789_v37  ;;  %v988_v21 = vadd.f32 %v1649_v63, %v902_v8  ;;  %v516_v7 = vpop.f32.mrf.mxu0 }
 0x122   :  { %v1144_v27 = vadd.f32 %v2150_v57, %v984_v26  ;;  %v1146_v28 = vadd.f32 %v2151_v58, %v986_v16  ;;  %v990_v40 = vadd.f32 %v1652_v1, %v904_v38  ;;  %1271 = vst [vmem:[#allocation3 + $0x160] sm:$0xff] %v1207_v47  ;;  %v905_v22 = vmul.f32 %v1615_v51, %v508_v17  ;;  %v629_v9 = vpop.f32.mrf.mxu1 }
 0x123   :  { %v1147_v61 = vadd.f32 %v2152_v13, %v987_v6  ;;  %v1149_v39 = vadd.f32 %v2153_v18, %v989_v10  ;;  %1273 = vst [vmem:[#allocation3 + $0x170] sm:$0xff] %v1209_v5  ;;  %v907_v41 = vmul.f32 %v1619_v53, %v621_v14  ;;  %v2154_v23 = vunpack.c.h.bf16 %v1784_v43  ;;  %v518_v17 = vpop.f32.mrf.mxu0 }
 0x124   :  { %v1208_v3 = vmax.f32 %v1144_v27, 0.0  ;;  %v1210_v44 = vmax.f32 %v1146_v28, 0.0  ;;  %v2155_v49 = vunpack.c.h.bf16 %v1789_v37  ;;  %v991_v0 = vadd.f32 %v1617_v52, %v905_v22  ;;  %v631_v14 = vpop.f32.mrf.mxu1 }
 0x125   :  { %v1211_v19 = vmax.f32 %v1147_v61, 0.0  ;;  %v1213_v32 = vmax.f32 %v1149_v39, 0.0  ;;  %v1148_v25 = vadd.f32 %v2154_v23, %v988_v21  ;;  %v993_v34 = vadd.f32 %v1621_v54, %v907_v41  ;;  %v520_v22 = vpop.f32.mrf.mxu0 }
 0x126   :  { %v1150_v33 = vadd.f32 %v2155_v49, %v990_v40  ;;  %1272 = vst [vmem:[#allocation3 + $0x168] sm:$0xff] %v1208_v3  ;;  %1274 = vst [vmem:[#allocation3 + $0x178] sm:$0xff] %v1210_v44  ;;  %v906_v50 = vmul.f32 %v1635_v59, %v510_v62  ;;  %v908_v55 = vmul.f32 %v1637_v60, %v623_v4  ;;  %v2156_v11 = vunpack.c.l.bf16 %v1798_v42  ;;  %v633_v41 = vpop.f32.mrf.mxu1 }
 0x127   :  { %1275 = vst [vmem:[#allocation3 + $0x180] sm:$0xff] %v1211_v19  ;;  %1277 = vst [vmem:[#allocation3 + $0x190] sm:$0xff] %v1213_v32  ;;  %v1212_v56 = vmax.f32 %v1148_v25, 0.0  ;;  %v909_v46 = vmul.f32 %v1615_v51, %v514_v2  ;;  %v911_v37 = vmul.f32 %v1619_v53, %v627_v45  ;;  %v2157_v30 = vunpack.c.l.bf16 %v1803_v35 }
 0x128   :  { %v1214_v43 = vmax.f32 %v1150_v33, 0.0  ;;  %v1151_v12 = vadd.f32 %v2156_v11, %v991_v0  ;;  %v992_v26 = vadd.f32 %v1649_v63, %v906_v50  ;;  %v994_v16 = vadd.f32 %v1652_v1, %v908_v55 }
 0x129   :  { %v1153_v15 = vadd.f32 %v2157_v30, %v993_v34  ;;  %1276 = vst [vmem:[#allocation3 + $0x188] sm:$0xff] %v1212_v56  ;;  %v995_v6 = vadd.f32 %v1617_v52, %v909_v46  ;;  %v997_v10 = vadd.f32 %v1621_v54, %v911_v37  ;;  %v910_v8 = vmul.f32 %v1635_v59, %v516_v7 }
 0x12a   :  { %1278 = vst [vmem:[#allocation3 + $0x198] sm:$0xff] %v1214_v43  ;;  %v912_v38 = vmul.f32 %v1637_v60, %v629_v9  ;;  %v1215_v47 = vmax.f32 %v1151_v12, 0.0  ;;  %v2158_v57 = vunpack.c.h.bf16 %v1798_v42  ;;  %v2159_v58 = vunpack.c.h.bf16 %v1803_v35 }
 0x12b   :  { %v1217_v5 = vmax.f32 %v1153_v15, 0.0  ;;  %v2160_v13 = vunpack.c.l.bf16 %v1812_v48  ;;  %v2161_v18 = vunpack.c.l.bf16 %v1817_v31  ;;  %v996_v21 = vadd.f32 %v1649_v63, %v910_v8 }
 0x12c   :  { %v1152_v27 = vadd.f32 %v2158_v57, %v992_v26  ;;  %v1154_v28 = vadd.f32 %v2159_v58, %v994_v16  ;;  %v998_v40 = vadd.f32 %v1652_v1, %v912_v38  ;;  %1279 = vst [vmem:[#allocation3 + $0x1a0] sm:$0xff] %v1215_v47  ;;  %v913_v44 = vmul.f32 %v1615_v51, %v518_v17 }
 0x12d   :  { %v1155_v61 = vadd.f32 %v2160_v13, %v995_v6  ;;  %v1157_v39 = vadd.f32 %v2161_v18, %v997_v10  ;;  %1281 = vst [vmem:[#allocation3 + $0x1b0] sm:$0xff] %v1217_v5  ;;  %v915_v35 = vmul.f32 %v1619_v53, %v631_v14  ;;  %v2162_v19 = vunpack.c.h.bf16 %v1812_v48 }
 0x12e   :  { %v1216_v3 = vmax.f32 %v1152_v27, 0.0  ;;  %v1218_v42 = vmax.f32 %v1154_v28, 0.0  ;;  %v2163_v23 = vunpack.c.h.bf16 %v1817_v31  ;;  %v999_v49 = vadd.f32 %v1617_v52, %v913_v44 }
 0x12f   :  { %v1219_v62 = vmax.f32 %v1155_v61, 0.0  ;;  %v1221_v4 = vmax.f32 %v1157_v39, 0.0  ;;  %v1156_v32 = vadd.f32 %v2162_v19, %v996_v21  ;;  %v1001_v33 = vadd.f32 %v1621_v54, %v915_v35 }
 0x130   :  { %v1158_v25 = vadd.f32 %v2163_v23, %v998_v40  ;;  %1280 = vst [vmem:[#allocation3 + $0x1a8] sm:$0xff] %v1216_v3  ;;  %1282 = vst [vmem:[#allocation3 + $0x1b8] sm:$0xff] %v1218_v42  ;;  %v914_v51 = vmul.f32 %v1635_v59, %v520_v22  ;;  %v916_v53 = vmul.f32 %v1637_v60, %v633_v41  ;;  %v2164_v48 = vunpack.c.l.bf16 %v1830_v20 }
 0x131   :  { %1283 = vst [vmem:[#allocation3 + $0x1c0] sm:$0xff] %v1219_v62  ;;  %1285 = vst [vmem:[#allocation3 + $0x1d0] sm:$0xff] %v1221_v4  ;;  %v1220_v0 = vmax.f32 %v1156_v32, 0.0  ;;  %v2165_v31 = vunpack.c.l.bf16 %v1835_v36 }
 0x132   :  { %v1222_v34 = vmax.f32 %v1158_v25, 0.0  ;;  %v1159_v50 = vadd.f32 %v2164_v48, %v999_v49  ;;  %v1000_v2 = vadd.f32 %v1649_v63, %v914_v51  ;;  %v1002_v52 = vadd.f32 %v1652_v1, %v916_v53 }
 0x133   :  { %v1161_v55 = vadd.f32 %v2165_v31, %v1001_v33  ;;  %1284 = vst [vmem:[#allocation3 + $0x1c8] sm:$0xff] %v1220_v0 }
 0x134   :  { %1286 = vst [vmem:[#allocation3 + $0x1d8] sm:$0xff] %v1222_v34  ;;  %v1223_v54 = vmax.f32 %v1159_v50, 0.0  ;;  %v1160_v60 = vadd.f32 %v1096_v29, %v1000_v2  ;;  %v1162_v45 = vadd.f32 %v1098_v24, %v1002_v52 }
 0x135   :  { %v1225_v59 = vmax.f32 %v1161_v55, 0.0 }
 0x136   :  { %1287 = vst [vmem:[#allocation3 + $0x1e0] sm:$0xff] %v1223_v54  ;;  %v1224_v56 = vmax.f32 %v1160_v60, 0.0  ;;  %v1226_v43 = vmax.f32 %v1162_v45, 0.0 }
 0x137   :  { %1289 = vst [vmem:[#allocation3 + $0x1f0] sm:$0xff] %v1225_v59 }
 0x138   :  { %1288 = vst [vmem:[#allocation3 + $0x1e8] sm:$0xff] %v1224_v56  ;;  %1290 = vst [vmem:[#allocation3 + $0x1f8] sm:$0xff] %v1226_v43 }
 0x139   :  { %1418 = shalt.err (!%p1415_p4)
}
 0x13a   :  { %s1431_s6 = smov 512   ;;  %s1432_s7 = smov 32  }
 0x13b   :  { %1302 = dma.vmem_to_hbm [thread:$0]  %s1297_s29, 8192, %s2109_s5, [#allocation4], %s1431_s6, %s1431_s6, %s1432_s7  }
 0x13c   :  { %1427 = dma.done.wait [#allocation4], 8192  }
 0x13d   :  { %1428 = vsyncadd [#allocation4], 4294959104 }
 0x13e   :  { %1306 = vsyncpa [#allocation4], 1 }

// kernel: bottleneck_apply.5
= control target key start
LH: loop header
LB: loop body
LE: loop exit
PB: predicated region body
PF: predicated region fallthrough
CT: control target
= control target key end

     0   :  { %vm500_vm0 = vsmask.f32 3328  ;;  %vm501_vm1 = vsmask.f32 7440  ;;  %s5191_s1 = inlined_call_operand.vmem [shape: bf16[3,384,128], index: 1, kind: input, shape index: {}]   ;;  %s5192_s0 = inlined_call_operand.vmem [shape: bf16[2,9,2,9,256], index: 0, kind: input, shape index: {}]   ;;  %s5193_s2 = inlined_call_operand.vmem [shape: f32[1,128], index: 2, kind: input, shape index: {}]   ;;  %s5194_s3 = inlined_call_operand.vmem [shape: f32[1,128], index: 3, kind: input, shape index: {}]   ;;  %s5195_s4 = inlined_call_operand.vmem [shape: bf16[2,64,128], index: 4, kind: output, shape index: {}]  }
   0x1   :  { %v3877_v0 = vld [vmem:[%s5191_s1 + $0x78] sm:$0xff]   ;;  %v3879_v2 = vld [vmem:[%s5191_s1 + $0x70] sm:$0xff]   ;;  %v3881_v4 = vld [vmem:[%s5191_s1 + $0x68] sm:$0xff]  }
   0x2   :  { %v3878_v1 = vld [vmem:[%s5191_s1 + $0x38] sm:$0xff]   ;;  %3573 = vmatprep.subr.bf16.mxu0 %v3877_v0  ;;  %v3880_v3 = vld [vmem:[%s5191_s1 + $0x30] sm:$0xff]   ;;  %v3882_v5 = vld [vmem:[%s5191_s1 + $0x28] sm:$0xff]  }
   0x3   :  { %3605 = vmatprep.subr.bf16.mxu1 %v3878_v1  ;;  %3574 = vmatpush3.bf16.msra.mxu0 %v3877_v0  ;;  %v3883_v6 = vld [vmem:[%s5191_s1 + $0x60] sm:$0xff]   ;;  %v3885_v8 = vld [vmem:[%s5191_s1 + $0x58] sm:$0xff]   ;;  %v3887_v10 = vld [vmem:[%s5191_s1 + $0x50] sm:$0xff]  }
   0x4   :  { %3606 = vmatpush3.bf16.msra.mxu1 %v3878_v1  ;;  %3575 = vmatprep.subr.bf16.mxu0 %v3879_v2  ;;  %v3884_v7 = vld [vmem:[%s5191_s1 + $0x20] sm:$0xff]   ;;  %v3886_v9 = vld [vmem:[%s5191_s1 + $0x18] sm:$0xff]   ;;  %v3888_v14 = vld [vmem:[%s5191_s1 + $0x10] sm:$0xff]  }
   0x5   :  { %3607 = vmatprep.subr.bf16.mxu1 %v3880_v3  ;;  %v50_v11 = vld [vmem:[%s5192_s0 + $0x4] sm:$0xf]  ;;  %v18_v13 = vld [vmem:[%s5192_s0] sm:$0xf]  ;;  %v3889_v18 = vld [vmem:[%s5191_s1 + $0x48] sm:$0xff]  }
   0x6   :  { %v51_v12 = vld [vmem:[%s5192_s0 + $0x24] sm:$0xf]  ;;  %v19_v16 = vld [vmem:[%s5192_s0 + $0x20] sm:$0xf]  ;;  %v3890_v19 = vld [vmem:[%s5191_s1 + $0x8] sm:$0xff]  }
   0x7   :  { %3576 = vmatpush3.bf16.msra.mxu0 %v3879_v2  ;;  %v2980_v15 = vcombine.low %v50_v11, %v51_v12  ;;  %v2996_v17 = vcombine.low %v18_v13, %v19_v16  ;;  %v3891_v20 = vld [vmem:[%s5191_s1 + $0x40] sm:$0xff]   ;;  %v3893_v26 = vld [vmem:[%s5191_s1 + $0xb8] sm:$0xff]   ;;  %v3895_v34 = vld [vmem:[%s5191_s1 + $0xb0] sm:$0xff]  }
   0x8   :  { %3608 = vmatpush3.bf16.msra.mxu1 %v3880_v3  ;;  %3577 = vmatprep.subr.bf16.mxu0 %v3881_v4  ;;  %v3892_v21 = vld [vmem:[%s5191_s1] sm:$0xff]   ;;  %v3894_v27 = vld [vmem:[%s5191_s1 + $0xf8] sm:$0xff]   ;;  %v3896_v35 = vld [vmem:[%s5191_s1 + $0xf0] sm:$0xff]  }
   0x9   :  { %3609 = vmatprep.subr.bf16.mxu1 %v3882_v5  ;;  %3589 = vmatprep.mubr.bf16.mxu0 %v2980_v15  ;;  %v52_v22 = vld [vmem:[%s5192_s0 + $0x44] sm:$0xf]  ;;  %v20_v24 = vld [vmem:[%s5192_s0 + $0x40] sm:$0xf]  ;;  %v3897_v42 = vld [vmem:[%s5191_s1 + $0xa8] sm:$0xff]  }
   0xa   :  { %3621 = vmatprep.mubr.bf16.mxu1 %v2996_v17  ;;  %v53_v23 = vld [vmem:[%s5192_s0 + $0x64] sm:$0xf]  ;;  %v21_v25 = vld [vmem:[%s5192_s0 + $0x60] sm:$0xf]  ;;  %v3898_v43 = vld [vmem:[%s5191_s1 + $0xe8] sm:$0xff]  }
   0xb   :  { %3578 = vmatpush3.bf16.msra.mxu0 %v3881_v4  ;;  %v2981_v28 = vcombine.low %v52_v22, %v53_v23  ;;  %v54_v29 = vld [vmem:[%s5192_s0 + $0x84] sm:$0xf]  ;;  %v2997_v31 = vcombine.low %v20_v24, %v21_v25  ;;  %v22_v32 = vld [vmem:[%s5192_s0 + $0x80] sm:$0xf]  ;;  %v3901_v58 = vld [vmem:[%s5191_s1 + $0x98] sm:$0xff]  }
   0xc   :  { %3610 = vmatpush3.bf16.msra.mxu1 %v3882_v5  ;;  %3579 = vmatprep.subr.bf16.mxu0 %v3883_v6  ;;  %v55_v30 = vld [vmem:[%s5192_s0 + $0xa4] sm:$0xf]  ;;  %v23_v33 = vld [vmem:[%s5192_s0 + $0xa0] sm:$0xf]  ;;  %v3902_v61 = vld [vmem:[%s5191_s1 + $0xd8] sm:$0xff]  }
   0xd   :  { %3611 = vmatprep.subr.bf16.mxu1 %v3884_v7  ;;  %v2982_v36 = vcombine.low %v54_v29, %v55_v30  ;;  %v2998_v37 = vcombine.low %v22_v32, %v23_v33  ;;  %v56_v38 = vld [vmem:[%s5192_s0 + $0xc4] sm:$0xf]  ;;  %v24_v40 = vld [vmem:[%s5192_s0 + $0xc0] sm:$0xf]  ;;  %v469_v62 = vld [vmem:[%s5192_s0 + $0x8] sm:$0x1] }
   0xe   :  { %v57_v39 = vld [vmem:[%s5192_s0 + $0xe4] sm:$0xf]  ;;  %v25_v41 = vld [vmem:[%s5192_s0 + $0xe0] sm:$0xf]  ;;  %v471_v0 = vld [vmem:[%s5192_s0 + $0x28] sm:$0x1] }
   0xf   :  { %3580 = vmatpush3.bf16.msra.mxu0 %v3883_v6  ;;  %v58_v44 = vld [vmem:[%s5192_s0 + $0x124] sm:$0xf]  ;;  %v2983_v45 = vcombine.low %v56_v38, %v57_v39  ;;  %v26_v48 = vld [vmem:[%s5192_s0 + $0x120] sm:$0xf]  ;;  %v2999_v49 = vcombine.low %v24_v40, %v25_v41  ;;  %v513_v4 = vshll.u32 %v469_v62, 16  ;;  %v3903_v23 = vld [vmem:[%s5191_s1 + $0x90] sm:$0xff]  }
  0x10   :  { %3612 = vmatpush3.bf16.msra.mxu1 %v3884_v7  ;;  %3581 = vmatprep.subr.bf16.mxu0 %v3885_v8  ;;  %v3899_v46 = vld [vmem:[%s5191_s1 + $0xa0] sm:$0xff]   ;;  %v473_v16 = vld [vmem:[%s5192_s0 + $0x48] sm:$0x1]  ;;  %vm4180_vm2 = vmor %vm500_vm0, %vm501_vm1 }
  0x11   :  { %3613 = vmatprep.subr.bf16.mxu1 %v3886_v9  ;;  %v59_v47 = vld [vmem:[%s5192_s0 + $0x144] sm:$0xf]  ;;  %v27_v51 = vld [vmem:[%s5192_s0 + $0x140] sm:$0xf]  ;;  %v475_v22 = vld [vmem:[%s5192_s0 + $0x68] sm:$0x1] }
  0x12   :  { %v3900_v50 = vld [vmem:[%s5191_s1 + $0xe0] sm:$0xff]   ;;  %v2984_v53 = vcombine.low %v58_v44, %v59_v47  ;;  %v3000_v55 = vcombine.low %v26_v48, %v27_v51  ;;  %v3905_v39 = vld [vmem:[%s5191_s1 + $0x88] sm:$0xff]   ;;  %v3028_v51 = vld [vmem:[%s5192_s0 + $0x10] sm:$0xf] }
  0x13   :  { %3582 = vmatpush3.bf16.msra.mxu0 %v3885_v8  ;;  %v60_v52 = vld [vmem:[%s5192_s0 + $0x164] sm:$0xf]  ;;  %v4115_v56 = vld [vmem:[%s5192_s0 + $0x160] sm:$0xf] }
  0x14   :  { %3614 = vmatpush3.bf16.msra.mxu1 %v3886_v9  ;;  %3583 = vmatprep.subr.bf16.mxu0 %v3887_v10  ;;  %v61_v54 = vld [vmem:[%s5192_s0 + $0x184] sm:$0xf]  ;;  %v29_v57 = vld [vmem:[%s5192_s0 + $0x180] sm:$0xf] }
  0x15   :  { %3615 = vmatprep.subr.bf16.mxu1 %v3888_v14  ;;  %v4126_v59 = vld [vmem:[%s5192_s0 + $0x1a4] sm:$0xf]  ;;  %v468_v60 = vld [vmem:[%s5192_s0] sm:$0xf]  ;;  %v2985_v6 = vcombine.low %v60_v52, %v61_v54  ;;  %v3001_v17 = vcombine.low %v4115_v56, %v29_v57  ;;  %v3029_v52 = vld [vmem:[%s5192_s0 + $0x30] sm:$0xf] }
  0x16   :  { %v470_v63 = vld [vmem:[%s5192_s0 + $0x20] sm:$0xf]  ;;  %v63_v1 = vld [vmem:[%s5192_s0 + $0x1c4] sm:$0xf]  ;;  %v504_v2 = vshrl.u32 %v468_v60, 16  ;;  %v507_v3 = vshll.u32 %v468_v60, 16 }
  0x17   :  { %3584 = vmatpush3.bf16.msra.mxu0 %v3887_v10  ;;  %v518_v5 = vshrl.u32 %v470_v63, 16  ;;  %v30_v7 = vld [vmem:[%s5192_s0 + $0x1a0] sm:$0xf]  ;;  %v521_v9 = vshll.u32 %v470_v63, 16  ;;  %v527_v10 = vshll.u32 %v471_v0, 16 }
  0x18   :  { %3616 = vmatpush3.bf16.msra.mxu1 %v3888_v14  ;;  %3585 = vmatprep.subr.bf16.mxu0 %v3889_v18  ;;  %v31_v8 = vld [vmem:[%s5192_s0 + $0x1c0] sm:$0xf]  ;;  %v506_v12 = vrot.slane %v504_v2, 4  ;;  %v509_v13 = vrot.slane %v507_v3, 5  ;;  %v515_v14 = vrot.slane %v513_v4, 5 }
  0x19   :  { %3617 = vmatprep.subr.bf16.mxu1 %v3890_v19  ;;  %v472_v11 = vld [vmem:[%s5192_s0 + $0x40] sm:$0xf]  ;;  %v520_v15 = vrot.slane %v518_v5, 4  ;;  %v64_v29 = vld [vmem:[%s5192_s0 + $0x1e4] sm:$0xf] }
  0x1a   :  { %v510_v24 = vor.u32 %v509_v13, %v506_v12  ;;  %v532_v25 = vshrl.u32 %v472_v11, 16  ;;  %v65_v30 = vld [vmem:[%s5192_s0 + $0x204] sm:$0xf]  ;;  %v33_v38 = vld [vmem:[%s5192_s0 + $0x200] sm:$0xf] }
  0x1b   :  { %3586 = vmatpush3.bf16.msra.mxu0 %v3889_v18  ;;  %v2986_v18 = vcombine.low %v4126_v59, %v63_v1  ;;  %v476_v57 = vld [vmem:[%s5192_s0 + $0x80] sm:$0xf]  ;;  %v479_v2 = vld [vmem:[%s5192_s0 + $0xa8] sm:$0x1]  ;;  %v3030_v12 = vld [vmem:[%s5192_s0 + $0x50] sm:$0xf] }
  0x1c   :  { %3618 = vmatpush3.bf16.msra.mxu1 %v3890_v19  ;;  %3587 = vmatprep.subr.bf16.mxu0 %v3891_v20  ;;  %v523_v19 = vrot.slane %v521_v9, 5  ;;  %v511_v40 = vrot.slane %v510_v24, 4  ;;  %v534_v41 = vrot.slane %v532_v25, 4  ;;  %v478_v62 = vld [vmem:[%s5192_s0 + $0xa0] sm:$0xf]  ;;  %v560_v63 = vshrl.u32 %v476_v57, 16 }
  0x1d   :  { %3619 = vmatprep.subr.bf16.mxu1 %v3892_v21  ;;  %v3907_v0 = vld [vmem:[%s5191_s1 + $0x80] sm:$0xff]   ;;  %v563_v3 = vshll.u32 %v476_v57, 16  ;;  %v574_v5 = vshrl.u32 %v478_v62, 16  ;;  %v577_v9 = vshll.u32 %v478_v62, 16  ;;  %v3031_v13 = vld [vmem:[%s5192_s0 + $0x70] sm:$0xf] }
  0x1e   :  { %v524_v32 = vor.u32 %v523_v19, %v520_v15  ;;  %v516_v47 = vsel %vm4180_vm2, %v511_v40, %v515_v14  ;;  %v3909_v14 = vld [vmem:[%s5191_s1 + $0x138] sm:$0xff]   ;;  %v482_v24 = vld [vmem:[%s5192_s0 + $0xe0] sm:$0xf]  ;;  %v483_v25 = vld [vmem:[%s5192_s0 + $0xe8] sm:$0x1] }
  0x1f   :  { %3588 = vmatpush3.bf16.msra.mxu0 %v3891_v20  ;;  %v529_v20 = vrot.slane %v527_v10, 5  ;;  %v583_v10 = vshll.u32 %v479_v2, 16  ;;  %v565_v15 = vrot.slane %v563_v3, 5  ;;  %v611_v40 = vshll.u32 %v483_v25, 16  ;;  %v486_v62 = vld [vmem:[%s5192_s0 + $0x140] sm:$0xf] }
  0x20   :  { %3620 = vmatpush3.bf16.msra.mxu1 %v3892_v21  ;;  %3637 = vmatprep.subr.bf16.mxu0 %v3893_v26  ;;  %v474_v21 = vld [vmem:[%s5192_s0 + $0x60] sm:$0xf]  ;;  %v3914_v3 = vld [vmem:[%s5191_s1 + $0x168] sm:$0xff]  }
  0x21   :  { %3669 = vmatprep.subr.bf16.mxu1 %v3894_v27  ;;  %v546_v33 = vshrl.u32 %v474_v21, 16  ;;  %v585_v19 = vrot.slane %v583_v10, 5  ;;  %v3916_v25 = vld [vmem:[%s5191_s1 + $0x160] sm:$0xff]  }
  0x22   :  { %3590 = vmatmul.mubr.bf16.vlgmr.msra.gmra.mxu0 %v2981_v28  ;;  %v3904_v28 = vld [vmem:[%s5191_s1 + $0xd0] sm:$0xff]  }
  0x23   :  { %3622 = vmatmul.mubr.bf16.vlgmr.msra.gmra.mxu1 %v2997_v31  ;;  %3638 = vmatpush3.bf16.msra.mxu0 %v3893_v26  ;;  %v535_v26 = vshll.u32 %v472_v11, 16  ;;  %v3060_v11 = vcombine.low %v3028_v51, %v3029_v52 }
  0x24   :  { %3670 = vmatpush3.bf16.msra.mxu1 %v3894_v27  ;;  %3639 = vmatprep.subr.bf16.mxu0 %v3895_v34  ;;  %v541_v27 = vshll.u32 %v473_v16, 16 }
  0x25   :  { %3671 = vmatprep.subr.bf16.mxu1 %v3896_v35  ;;  %3593 = vmatprep.mubr.bf16.mxu0 %v2982_v36  ;;  %v3002_v36 = vcombine.low %v30_v7, %v31_v8  ;;  %v562_v8 = vrot.slane %v560_v63, 4  ;;  %v487_v63 = vld [vmem:[%s5192_s0 + $0x148] sm:$0x1] }
  0x26   :  { %3625 = vmatprep.mubr.bf16.mxu1 %v2998_v37  ;;  %v32_v37 = vld [vmem:[%s5192_s0 + $0x1e0] sm:$0xf]  ;;  %v543_v44 = vrot.slane %v541_v27, 5 }
  0x27   :  { %3640 = vmatpush3.bf16.msra.mxu0 %v3895_v34  ;;  %v549_v34 = vshll.u32 %v474_v21, 16  ;;  %v481_v21 = vld [vmem:[%s5192_s0 + $0xc8] sm:$0x1] }
  0x28   :  { %3672 = vmatpush3.bf16.msra.mxu1 %v3896_v35  ;;  %3641 = vmatprep.subr.bf16.mxu0 %v3897_v42  ;;  %v555_v35 = vshll.u32 %v475_v22, 16 }
  0x29   :  { %3673 = vmatprep.subr.bf16.mxu1 %v3898_v43 }
  0x2a   :  { %3594 = vmatmul.mubr.bf16.gmra.mxu0 %v2983_v45  ;;  %v548_v45 = vrot.slane %v546_v33, 4  ;;  %v557_v54 = vrot.slane %v555_v35, 5  ;;  %v602_v33 = vshrl.u32 %v482_v24, 16  ;;  %v3911_v35 = vld [vmem:[%s5191_s1 + $0x130] sm:$0xff]  }
  0x2b   :  { %3626 = vmatmul.mubr.bf16.gmra.mxu1 %v2999_v49  ;;  %3642 = vmatpush3.bf16.msra.mxu0 %v3897_v42  ;;  %v537_v42 = vrot.slane %v535_v26, 5  ;;  %v3906_v49 = vld [vmem:[%s5191_s1 + $0xc8] sm:$0xff]  }
  0x2c   :  { %3674 = vmatpush3.bf16.msra.mxu1 %v3898_v43  ;;  %3643 = vmatprep.subr.bf16.mxu0 %v3899_v46  ;;  %v525_v43 = vrot.slane %v524_v32, 4  ;;  %v597_v32 = vshll.u32 %v481_v21, 16 }
  0x2d   :  { %3675 = vmatprep.subr.bf16.mxu1 %v3900_v50  ;;  %3597 = vmatprep.mubr.bf16.mxu0 %v2984_v53  ;;  %v538_v48 = vor.u32 %v537_v42, %v534_v41  ;;  %v3061_v41 = vcombine.low %v3030_v12, %v3031_v13  ;;  %v3912_v42 = vld [vmem:[%s5191_s1 + $0x170] sm:$0xff]  }
  0x2e   :  { %3629 = vmatprep.mubr.bf16.mxu1 %v3000_v55  ;;  %v2987_v55 = vcombine.low %v64_v29, %v65_v30  ;;  %v3032_v30 = vld [vmem:[%s5192_s0 + $0x90] sm:$0xf] }
  0x2f   :  { %3644 = vmatpush3.bf16.msra.mxu0 %v3899_v46  ;;  %v551_v46 = vrot.slane %v549_v34, 5  ;;  %v539_v56 = vrot.slane %v538_v48, 4  ;;  %v605_v34 = vshll.u32 %v482_v24, 16  ;;  %v599_v48 = vrot.slane %v597_v32, 5  ;;  %v3037_v12 = vld [vmem:[%s5192_s0 + $0x150] sm:$0xf] }
  0x30   :  { %3676 = vmatpush3.bf16.msra.mxu1 %v3900_v50  ;;  %3645 = vmatprep.subr.bf16.mxu0 %v3901_v58  ;;  %v530_v50 = vsel %vm4180_vm2, %v525_v43, %v529_v20  ;;  %v480_v20 = vld [vmem:[%s5192_s0 + $0xc0] sm:$0xf] }
  0x31   :  { %3677 = vmatprep.subr.bf16.mxu1 %v3902_v61  ;;  %v552_v53 = vor.u32 %v551_v46, %v548_v45  ;;  %v3012_v59 = vcombine.low %v516_v47, %v530_v50  ;;  %v544_v1 = vsel %vm4180_vm2, %v539_v56, %v543_v44  ;;  %v588_v26 = vshrl.u32 %v480_v20, 16  ;;  %v3035_v56 = vld [vmem:[%s5192_s0 + $0xf0] sm:$0xf] }
  0x32   :  { %3598 = vmatmul.mubr.bf16.gmra.mxu0 %v2985_v6  ;;  %v3908_v6 = vld [vmem:[%s5191_s1 + $0xc0] sm:$0xff]   ;;  %v591_v27 = vshll.u32 %v480_v20, 16  ;;  %v604_v44 = vrot.slane %v602_v33, 4  ;;  %v607_v45 = vrot.slane %v605_v34, 5 }
  0x33   :  { %3630 = vmatmul.mubr.bf16.gmra.mxu1 %v3001_v17  ;;  %3646 = vmatpush3.bf16.msra.mxu0 %v3901_v58  ;;  %v3003_v58 = vcombine.low %v32_v37, %v33_v38  ;;  %v553_v60 = vrot.slane %v552_v53, 4  ;;  %v576_v17 = vrot.slane %v574_v5, 4  ;;  %v3033_v37 = vld [vmem:[%s5192_s0 + $0xb0] sm:$0xf]  ;;  %v590_v38 = vrot.slane %v588_v26, 4 }
  0x34   :  { %3678 = vmatpush3.bf16.msra.mxu1 %v3902_v61  ;;  %3647 = vmatprep.subr.bf16.mxu0 %v3903_v23  ;;  %v477_v61 = vld [vmem:[%s5192_s0 + $0x88] sm:$0x1]  ;;  %v608_v51 = vor.u32 %v607_v45, %v604_v44  ;;  %v3062_v53 = vcombine.low %v3032_v30, %v3033_v37  ;;  %v630_v5 = vshrl.u32 %v486_v62, 16 }
  0x35   :  { %3679 = vmatprep.subr.bf16.mxu1 %v3904_v28  ;;  %3601 = vmatprep.mubr.bf16.mxu0 %v2986_v18  ;;  %v569_v4 = vshll.u32 %v477_v61, 16  ;;  %v558_v7 = vsel %vm4180_vm2, %v553_v60, %v557_v54  ;;  %v579_v18 = vrot.slane %v577_v9, 5  ;;  %v485_v60 = vld [vmem:[%s5192_s0 + $0x128] sm:$0x1] }
  0x36   :  { %3633 = vmatprep.mubr.bf16.mxu1 %v3002_v36  ;;  %v3013_v22 = vcombine.low %v544_v1, %v558_v7  ;;  %v609_v57 = vrot.slane %v608_v51, 4  ;;  %v3036_v7 = vld [vmem:[%s5192_s0 + $0x130] sm:$0xf] }
  0x37   :  { %3648 = vmatpush3.bf16.msra.mxu0 %v3903_v23  ;;  %v571_v16 = vrot.slane %v569_v4, 5  ;;  %v566_v23 = vor.u32 %v565_v15, %v562_v8  ;;  %v580_v29 = vor.u32 %v579_v18, %v576_v17  ;;  %v625_v4 = vshll.u32 %v485_v60, 16  ;;  %v488_v18 = vld [vmem:[%s5192_s0 + $0x160] sm:$0xf] }
  0x38   :  { %3680 = vmatpush3.bf16.msra.mxu1 %v3904_v28  ;;  %3649 = vmatprep.subr.bf16.mxu0 %v3905_v39  ;;  %v3910_v28 = vld [vmem:[%s5191_s1 + $0x178] sm:$0xff]   ;;  %v3064_v21 = vcombine.low %v3036_v7, %v3037_v12  ;;  %v644_v24 = vshrl.u32 %v488_v18, 16  ;;  %v3921_v12 = vld [vmem:[%s5191_s1 + $0x108] sm:$0xff]  }
  0x39   :  { %3681 = vmatprep.subr.bf16.mxu1 %v3906_v49  ;;  %v567_v36 = vrot.slane %v566_v23, 4  ;;  %v581_v43 = vrot.slane %v580_v29, 4  ;;  %v627_v15 = vrot.slane %v625_v4, 5  ;;  %v490_v23 = vld [vmem:[%s5192_s0 + $0x180] sm:$0xf] }
  0x3a   :  { %3602 = vmatmul.mubr.bf16.gmra.mxu0 %v2987_v55  ;;  %v3034_v55 = vld [vmem:[%s5192_s0 + $0xd0] sm:$0xf]  ;;  %v658_v30 = vshrl.u32 %v490_v23, 16  ;;  %v646_v33 = vrot.slane %v644_v24, 4  ;;  %v661_v34 = vshll.u32 %v490_v23, 16  ;;  %v3922_v23 = vld [vmem:[%s5191_s1 + $0x148] sm:$0xff]  }
  0x3b   :  { %3634 = vmatmul.mubr.bf16.gmra.mxu1 %v3003_v58  ;;  %3650 = vmatpush3.bf16.msra.mxu0 %v3905_v39  ;;  %v593_v39 = vrot.slane %v591_v27, 5  ;;  %v572_v46 = vsel %vm4180_vm2, %v567_v36, %v571_v16  ;;  %v586_v50 = vsel %vm4180_vm2, %v581_v43, %v585_v19  ;;  %v3913_v58 = vld [vmem:[%s5191_s1 + $0x128] sm:$0xff]   ;;  %v3063_v13 = vcombine.low %v3034_v55, %v3035_v56  ;;  %v3038_v36 = vld [vmem:[%s5192_s0 + $0x170] sm:$0xf]  ;;  %v3918_v43 = vld [vmem:[%s5191_s1 + $0x158] sm:$0xff]  }
  0x3c   :  { %3682 = vmatpush3.bf16.msra.mxu1 %v3906_v49  ;;  %3651 = vmatprep.subr.bf16.mxu0 %v3907_v0  ;;  %v613_v49 = vrot.slane %v611_v40, 5  ;;  %v3014_v52 = vcombine.low %v572_v46, %v586_v50  ;;  %v632_v16 = vrot.slane %v630_v5, 4  ;;  %v491_v27 = vld [vmem:[%s5192_s0 + $0x188] sm:$0x1]  ;;  %v660_v40 = vrot.slane %v658_v30, 4 }
  0x3d   :  { %3683 = vmatprep.subr.bf16.mxu1 %v3908_v6  ;;  %3653 = vmatprep.mubr.bf16.mxu0 %v3012_v59  ;;  %v594_v47 = vor.u32 %v593_v39, %v590_v38  ;;  %v484_v59 = vld [vmem:[%s5192_s0 + $0x120] sm:$0xf]  ;;  %v663_v45 = vrot.slane %v661_v34, 5  ;;  %v493_v55 = vld [vmem:[%s5192_s0 + $0x1a8] sm:$0x1] }
  0x3e   :  { %3685 = vmatprep.mubr.bf16.mxu1 %v3060_v11  ;;  %v619_v1 = vshll.u32 %v484_v59, 16  ;;  %v614_v2 = vsel %vm4180_vm2, %v609_v57, %v613_v49  ;;  %v639_v11 = vshll.u32 %v487_v63, 16  ;;  %v494_v57 = vld [vmem:[%s5192_s0 + $0x1c0] sm:$0xf]  ;;  %v681_v63 = vshll.u32 %v493_v55, 16 }
  0x3f   :  { %3652 = vmatpush3.bf16.msra.mxu0 %v3907_v0  ;;  %v595_v54 = vrot.slane %v594_v47, 4  ;;  %v616_v0 = vshrl.u32 %v484_v59, 16  ;;  %v664_v50 = vor.u32 %v663_v45, %v660_v40  ;;  %v689_v4 = vshll.u32 %v494_v57, 16 }
  0x40   :  { %3684 = vmatpush3.bf16.msra.mxu1 %v3908_v6  ;;  %3701 = vmatprep.subr.bf16.mxu0 %v3909_v14  ;;  %v633_v6 = vshll.u32 %v486_v62, 16  ;;  %v621_v10 = vrot.slane %v619_v1, 5  ;;  %v641_v20 = vrot.slane %v639_v11, 5  ;;  %v3040_v1 = vld [vmem:[%s5192_s0 + $0x1b0] sm:$0xf] }
  0x41   :  { %3733 = vmatprep.subr.bf16.mxu1 %v3910_v28  ;;  %v600_v61 = vsel %vm4180_vm2, %v595_v54, %v599_v48  ;;  %v618_v9 = vrot.slane %v616_v0, 4  ;;  %v492_v54 = vld [vmem:[%s5192_s0 + $0x1a0] sm:$0xf]  ;;  %v665_v56 = vrot.slane %v664_v50, 4  ;;  %v686_v0 = vshrl.u32 %v494_v57, 16 }
  0x42   :  { %3654 = vmatmul.mubr.bf16.vlgmr.msra.gmra.mxu0 %v3013_v22  ;;  %v3015_v8 = vcombine.low %v600_v61, %v614_v2  ;;  %v635_v17 = vrot.slane %v633_v6, 5  ;;  %v489_v22 = vld [vmem:[%s5192_s0 + $0x168] sm:$0x1]  ;;  %v672_v59 = vshrl.u32 %v492_v54, 16  ;;  %v3920_v61 = vld [vmem:[%s5191_s1 + $0x150] sm:$0xff]   ;;  %v675_v62 = vshll.u32 %v492_v54, 16 }
  0x43   :  { %3686 = vmatmul.mubr.bf16.vlgmr.msra.gmra.mxu1 %v3061_v41  ;;  %3702 = vmatpush3.bf16.msra.mxu0 %v3909_v14  ;;  %v3915_v14 = vld [vmem:[%s5191_s1 + $0x120] sm:$0xff]   ;;  %v622_v19 = vor.u32 %v621_v10, %v618_v9  ;;  %v653_v29 = vshll.u32 %v489_v22, 16  ;;  %v3039_v41 = vld [vmem:[%s5192_s0 + $0x190] sm:$0xf]  ;;  %v683_v9 = vrot.slane %v681_v63, 5  ;;  %v688_v10 = vrot.slane %v686_v0, 4 }
  0x44   :  { %3734 = vmatpush3.bf16.msra.mxu1 %v3910_v28  ;;  %3703 = vmatprep.subr.bf16.mxu0 %v3911_v35  ;;  %v636_v26 = vor.u32 %v635_v17, %v632_v16  ;;  %v647_v28 = vshll.u32 %v488_v18, 16  ;;  %v3041_v6 = vld [vmem:[%s5192_s0 + $0x1d0] sm:$0xf]  ;;  %v496_v11 = vld [vmem:[%s5192_s0 + $0x1e0] sm:$0xf] }
  0x45   :  { %3735 = vmatprep.subr.bf16.mxu1 %v3912_v42  ;;  %3657 = vmatprep.mubr.bf16.mxu0 %v3014_v52  ;;  %v623_v32 = vrot.slane %v622_v19, 4  ;;  %v655_v39 = vrot.slane %v653_v29, 5  ;;  %v3065_v52 = vcombine.low %v3038_v36, %v3039_v41  ;;  %v497_v16 = vld [vmem:[%s5192_s0 + $0x1e8] sm:$0x1]  ;;  %v498_v17 = vld [vmem:[%s5192_s0 + $0x200] sm:$0xf] }
  0x46   :  { %3689 = vmatprep.mubr.bf16.mxu1 %v3062_v53  ;;  %v637_v37 = vrot.slane %v636_v26, 4  ;;  %v649_v38 = vrot.slane %v647_v28, 5  ;;  %v3919_v53 = vld [vmem:[%s5191_s1 + $0x110] sm:$0xff]   ;;  %v499_v19 = vld [vmem:[%s5192_s0 + $0x208] sm:$0x1]  ;;  %v709_v22 = vshll.u32 %v497_v16, 16 }
  0x47   :  { %3704 = vmatpush3.bf16.msra.mxu0 %v3911_v35  ;;  %v667_v35 = vshll.u32 %v491_v27, 16  ;;  %v628_v44 = vsel %vm4180_vm2, %v623_v32, %v627_v15  ;;  %v3066_v15 = vcombine.low %v3040_v1, %v3041_v6  ;;  %v717_v26 = vshll.u32 %v498_v17, 16  ;;  %v3042_v28 = vld [vmem:[%s5192_s0 + $0x1f0] sm:$0xf]  ;;  %v3923_v29 = vld [vmem:[%s5191_s1 + $0x100] sm:$0xff]  }
  0x48   :  { %3736 = vmatpush3.bf16.msra.mxu1 %v3912_v42  ;;  %3705 = vmatprep.subr.bf16.mxu0 %v3913_v58  ;;  %v3917_v42 = vld [vmem:[%s5191_s1 + $0x118] sm:$0xff]   ;;  %v642_v47 = vsel %vm4180_vm2, %v637_v37, %v641_v20  ;;  %v650_v48 = vor.u32 %v649_v38, %v646_v33  ;;  %v700_v20 = vshrl.u32 %v496_v11, 16  ;;  %v723_v27 = vshll.u32 %v499_v19, 16  ;;  %v3924_v36 = vld [vmem:[%s5191_s1 + $0x140] sm:$0xff]   ;;  %v3126_v57 = vld [vmem:[%s5192_s0 + $0x30] sm:$0xf] }
  0x49   :  { %3737 = vmatprep.subr.bf16.mxu1 %v3914_v3  ;;  %v669_v46 = vrot.slane %v667_v35, 5  ;;  %v3016_v49 = vcombine.low %v628_v44, %v642_v47  ;;  %v711_v34 = vrot.slane %v709_v22, 5  ;;  %v3043_v35 = vld [vmem:[%s5192_s0 + $0x210] sm:$0xf]  ;;  %v1467_v0 = vshrl.u32 %v3126_v57, 16 }
  0x4a   :  { %3658 = vmatmul.mubr.bf16.gmra.mxu0 %v3015_v8  ;;  %v651_v51 = vrot.slane %v650_v48, 4  ;;  %v677_v8 = vrot.slane %v675_v62, 5  ;;  %v702_v32 = vrot.slane %v700_v20, 4  ;;  %v725_v40 = vrot.slane %v723_v27, 5  ;;  %v3076_v48 = vld [vmem:[%s5192_s0 + $0x14] sm:$0xf] }
  0x4b   :  { %3690 = vmatmul.mubr.bf16.gmra.mxu1 %v3063_v13  ;;  %3706 = vmatpush3.bf16.msra.mxu0 %v3913_v58  ;;  %v495_v58 = vld [vmem:[%s5192_s0 + $0x1c8] sm:$0x1]  ;;  %v670_v2 = vsel %vm4180_vm2, %v665_v56, %v669_v46  ;;  %v691_v13 = vrot.slane %v689_v4, 5  ;;  %v3125_v56 = vld [vmem:[%s5192_s0 + $0x18] sm:$0x1]  ;;  %v1470_v1 = vshll.u32 %v3126_v57, 16 }
  0x4c   :  { %3738 = vmatpush3.bf16.msra.mxu1 %v3914_v3  ;;  %3707 = vmatprep.subr.bf16.mxu0 %v3915_v14  ;;  %v656_v60 = vsel %vm4180_vm2, %v651_v51, %v655_v39  ;;  %v674_v3 = vrot.slane %v672_v59, 4  ;;  %v695_v5 = vshll.u32 %v495_v58, 16  ;;  %v719_v39 = vrot.slane %v717_v26, 5  ;;  %v3077_v51 = vld [vmem:[%s5192_s0 + $0x34] sm:$0xf]  ;;  %v3929_v57 = vld [vmem:[%s5191_s1 + $0x1a8] sm:$0xff]  }
  0x4d   :  { %3739 = vmatprep.subr.bf16.mxu1 %v3916_v25  ;;  %3693 = vmatprep.mubr.bf16.mxu1 %v3064_v21  ;;  %v3017_v7 = vcombine.low %v656_v60, %v670_v2  ;;  %v703_v21 = vshll.u32 %v496_v11, 16  ;;  %v692_v24 = vor.u32 %v691_v13, %v688_v10  ;;  %v3108_v55 = vcombine.low %v3076_v48, %v3077_v51  ;;  %v3127_v58 = vld [vmem:[%s5192_s0 + $0x38] sm:$0x1]  ;;  %v3078_v6 = vld [vmem:[%s5192_s0 + $0x54] sm:$0xf] }
  0x4e   :  { %3661 = vmatprep.mubr.bf16.mxu0 %v3016_v49  ;;  %v678_v18 = vor.u32 %v677_v8, %v674_v3  ;;  %v4404_v49 = vld [vmem:[%s5191_s1 + $0x1b8] sm:$0xff]   ;;  %v1462_v62 = vshll.u32 %v3125_v56, 16  ;;  %v1476_v2 = vshll.u32 %v3127_v58, 16  ;;  %v3128_v8 = vld [vmem:[%s5192_s0 + $0x50] sm:$0xf]  ;;  %v1472_v10 = vrot.slane %v1470_v1, 5 }
  0x4f   :  { %3708 = vmatpush3.bf16.msra.mxu0 %v3915_v14  ;;  %v697_v14 = vrot.slane %v695_v5, 5  ;;  %v705_v33 = vrot.slane %v703_v21, 5  ;;  %v693_v37 = vrot.slane %v692_v24, 4  ;;  %v1481_v13 = vshrl.u32 %v3128_v8, 16  ;;  %v3131_v16 = vld [vmem:[%s5192_s0 + $0x78] sm:$0x1] }
  0x50   :  { %3740 = vmatpush3.bf16.msra.mxu1 %v3916_v25  ;;  %3709 = vmatprep.subr.bf16.mxu0 %v3917_v42  ;;  %v714_v25 = vshrl.u32 %v498_v17, 16  ;;  %v679_v30 = vrot.slane %v678_v18, 4  ;;  %v1464_v5 = vrot.slane %v1462_v62, 5  ;;  %v1478_v11 = vrot.slane %v1476_v2, 5  ;;  %v3135_v48 = vld [vmem:[%s5192_s0 + $0xb8] sm:$0x1] }
  0x51   :  { %3741 = vmatprep.subr.bf16.mxu1 %v3918_v43  ;;  %v698_v44 = vsel %vm4180_vm2, %v693_v37, %v697_v14  ;;  %v1484_v17 = vshll.u32 %v3128_v8, 16  ;;  %v1483_v20 = vrot.slane %v1481_v13, 4  ;;  %v1532_v62 = vshll.u32 %v3135_v48, 16  ;;  %v3138_v8 = vld [vmem:[%s5192_s0 + $0xf0] sm:$0xf] }
  0x52   :  { %3662 = vmatmul.mubr.bf16.gmra.mxu0 %v3017_v7  ;;  %v716_v38 = vrot.slane %v714_v25, 4  ;;  %v684_v41 = vsel %vm4180_vm2, %v679_v30, %v683_v9  ;;  %v3079_v7 = vld [vmem:[%s5192_s0 + $0x74] sm:$0xf]  ;;  %v1469_v9 = vrot.slane %v1467_v0, 4  ;;  %v1504_v25 = vshll.u32 %v3131_v16, 16  ;;  %v3931_v16 = vld [vmem:[%s5191_s1 + $0x1a0] sm:$0xff]  }
  0x53   :  { %3694 = vmatmul.mubr.bf16.gmra.mxu1 %v3065_v52  ;;  %3710 = vmatpush3.bf16.msra.mxu0 %v3917_v42  ;;  %v706_v42 = vor.u32 %v705_v33, %v702_v32  ;;  %v3018_v46 = vcombine.low %v684_v41, %v698_v44  ;;  %v3124_v52 = vld [vmem:[%s5192_s0 + $0x10] sm:$0xf]  ;;  %v1486_v24 = vrot.slane %v1484_v17, 5  ;;  %v3109_v27 = vcombine.low %v3078_v6, %v3079_v7  ;;  %v3081_v41 = vld [vmem:[%s5192_s0 + $0xb4] sm:$0xf] }
  0x54   :  { %3742 = vmatpush3.bf16.msra.mxu1 %v3918_v43  ;;  %3711 = vmatprep.subr.bf16.mxu0 %v3919_v53  ;;  %v3067_v43 = vcombine.low %v3042_v28, %v3043_v35  ;;  %v720_v45 = vor.u32 %v719_v39, %v716_v38  ;;  %v1453_v60 = vshrl.u32 %v3124_v52, 16  ;;  %v1473_v19 = vor.u32 %v1472_v10, %v1469_v9  ;;  %v3927_v30 = vld [vmem:[%s5191_s1 + $0x1b0] sm:$0xff]   ;;  %v3137_v7 = vld [vmem:[%s5192_s0 + $0xd8] sm:$0x1]  ;;  %v3930_v10 = vld [vmem:[%s5191_s1 + $0x1e8] sm:$0xff]  }
  0x55   :  { %3743 = vmatprep.subr.bf16.mxu1 %v3920_v61  ;;  %3697 = vmatprep.mubr.bf16.mxu1 %v3066_v15  ;;  %v707_v47 = vrot.slane %v706_v42, 4  ;;  %v3130_v15 = vld [vmem:[%s5192_s0 + $0x70] sm:$0xf]  ;;  %v1487_v33 = vor.u32 %v1486_v24, %v1483_v20  ;;  %v1506_v35 = vrot.slane %v1504_v25, 5  ;;  %v1534_v6 = vrot.slane %v1532_v62, 5 }
  0x56   :  { %v721_v50 = vrot.slane %v720_v45, 4  ;;  %3665 = vmatprep.mubr.bf16.mxu0 %v3018_v46  ;;  %v1455_v3 = vrot.slane %v1453_v60, 4  ;;  %v1495_v21 = vshrl.u32 %v3130_v15, 16  ;;  %v1498_v22 = vshll.u32 %v3130_v15, 16  ;;  %v3132_v44 = vld [vmem:[%s5192_s0 + $0x90] sm:$0xf] }
  0x57   :  { %3712 = vmatpush3.bf16.msra.mxu0 %v3919_v53  ;;  %v4415_v53 = vld [vmem:[%s5191_s1 + $0x1f8] sm:$0xff]   ;;  %v712_v54 = vsel %vm4180_vm2, %v707_v47, %v711_v34  ;;  %v1474_v26 = vrot.slane %v1473_v19, 4  ;;  %v1488_v39 = vrot.slane %v1487_v33, 4  ;;  %v3134_v47 = vld [vmem:[%s5192_s0 + $0xb0] sm:$0xf]  ;;  %v1512_v51 = vshll.u32 %v3132_v44, 16 }
  0x58   :  { %3744 = vmatpush3.bf16.msra.mxu1 %v3920_v61  ;;  %3713 = vmatprep.subr.bf16.mxu0 %v3921_v12  ;;  %v726_v59 = vsel %vm4180_vm2, %v721_v50, %v725_v40  ;;  %v1456_v61 = vshll.u32 %v3124_v52, 16  ;;  %v1497_v28 = vrot.slane %v1495_v21, 4  ;;  %v3080_v40 = vld [vmem:[%s5192_s0 + $0x94] sm:$0xf]  ;;  %v3133_v45 = vld [vmem:[%s5192_s0 + $0x98] sm:$0x1] }
  0x59   :  { %3745 = vmatprep.subr.bf16.mxu1 %v3922_v23  ;;  %v3019_v63 = vcombine.low %v712_v54, %v726_v59  ;;  %v1509_v50 = vshrl.u32 %v3132_v44, 16  ;;  %v1518_v54 = vshll.u32 %v3133_v45, 16  ;;  %v1526_v56 = vshll.u32 %v3134_v47, 16  ;;  %v3928_v59 = vld [vmem:[%s5191_s1 + $0x1f0] sm:$0xff]  }
  0x5a   :  { %v1458_v4 = vrot.slane %v1456_v61, 5  ;;  %v1514_v61 = vrot.slane %v1512_v51, 5  ;;  %v1551_v15 = vshrl.u32 %v3138_v8, 16  ;;  %v1554_v19 = vshll.u32 %v3138_v8, 16  ;;  %v3086_v48 = vld [vmem:[%s5192_s0 + $0x174] sm:$0xf] }
  0x5b   :  { %3698 = vmatmul.mubr.bf16.gmra.mxu1 %v3067_v43  ;;  %3714 = vmatpush3.bf16.msra.mxu0 %v3921_v12  ;;  %v3129_v12 = vld [vmem:[%s5192_s0 + $0x58] sm:$0x1]  ;;  %v3110_v43 = vcombine.low %v3080_v40, %v3081_v41  ;;  %v1511_v60 = vrot.slane %v1509_v50, 4  ;;  %v1520_v0 = vrot.slane %v1518_v54, 5  ;;  %v1528_v2 = vrot.slane %v1526_v56, 5  ;;  %v3935_v50 = vld [vmem:[%s5191_s1 + $0x190] sm:$0xff]  }
  0x5c   :  { %3746 = vmatpush3.bf16.msra.mxu1 %v3922_v23  ;;  %3715 = vmatprep.subr.bf16.mxu0 %v3923_v29  ;;  %v1459_v14 = vor.u32 %v1458_v4, %v1455_v3  ;;  %v1490_v18 = vshll.u32 %v3129_v12, 16  ;;  %v3136_v4 = vld [vmem:[%s5192_s0 + $0xd0] sm:$0xf]  ;;  %v3139_v12 = vld [vmem:[%s5192_s0 + $0xf8] sm:$0x1]  ;;  %v1556_v25 = vrot.slane %v1554_v19, 5 }
  0x5d   :  { %3747 = vmatprep.subr.bf16.mxu1 %v3924_v36  ;;  %3666 = vmatmul.mubr.bf16.gmra.mxu0 %v3019_v63  ;;  %v3083_v63 = vld [vmem:[%s5192_s0 + $0xf4] sm:$0xf]  ;;  %v1537_v9 = vshrl.u32 %v3136_v4, 16  ;;  %v1540_v13 = vshll.u32 %v3136_v4, 16  ;;  %v1560_v20 = vshll.u32 %v3139_v12, 16  ;;  %v3937_v8 = vld [vmem:[%s5191_s1 + $0x188] sm:$0xff]  }
  0x5e   :  { %3717 = vmatprep.mubr.bf16.mxu0 %v3108_v55  ;;  %v1460_v23 = vrot.slane %v1459_v14, 4  ;;  %v1492_v34 = vrot.slane %v1490_v18, 5  ;;  %v1523_v55 = vshrl.u32 %v3134_v47, 16  ;;  %v1546_v14 = vshll.u32 %v3137_v7, 16  ;;  %v3142_v41 = vld [vmem:[%s5192_s0 + $0x150] sm:$0xf] }
  0x5f   :  { %3716 = vmatpush3.bf16.msra.mxu0 %v3923_v29  ;;  %v1500_v29 = vrot.slane %v1498_v22, 5  ;;  %v1539_v18 = vrot.slane %v1537_v9, 4  ;;  %v1579_v47 = vshrl.u32 %v3142_v41, 16  ;;  %v1582_v54 = vshll.u32 %v3142_v41, 16  ;;  %v3087_v56 = vld [vmem:[%s5192_s0 + $0x194] sm:$0xf] }
  0x60   :  { %3748 = vmatpush3.bf16.msra.mxu1 %v3924_v36  ;;  %3765 = vmatprep.subr.bf16.mxu0 %v4404_v49  ;;  %v1465_v32 = vsel %vm4180_vm2, %v1460_v23, %v1464_v5  ;;  %v1479_v36 = vsel %vm4180_vm2, %v1474_v26, %v1478_v11  ;;  %v1493_v46 = vsel %vm4180_vm2, %v1488_v39, %v1492_v34  ;;  %v1525_v1 = vrot.slane %v1523_v55, 4  ;;  %v3084_v34 = vld [vmem:[%s5192_s0 + $0x134] sm:$0xf]  ;;  %v3141_v39 = vld [vmem:[%s5192_s0 + $0x138] sm:$0x1] }
  0x61   :  { %3797 = vmatprep.subr.bf16.mxu1 %v4415_v53  ;;  %v1501_v37 = vor.u32 %v1500_v29, %v1497_v28  ;;  %v3172_v38 = vcombine.low %v1465_v32, %v1479_v36  ;;  %v1515_v5 = vor.u32 %v1514_v61, %v1511_v60  ;;  %v1548_v22 = vrot.slane %v1546_v14, 5  ;;  %v3933_v28 = vld [vmem:[%s5191_s1 + $0x198] sm:$0xff]   ;;  %v3144_v60 = vld [vmem:[%s5192_s0 + $0x170] sm:$0xf] }
  0x62   :  { %v1529_v11 = vor.u32 %v1528_v2, %v1525_v1  ;;  %v1553_v23 = vrot.slane %v1551_v15, 4  ;;  %v1562_v26 = vrot.slane %v1560_v20, 5  ;;  %v3934_v61 = vld [vmem:[%s5191_s1 + $0x1d8] sm:$0xff]   ;;  %v1584_v62 = vrot.slane %v1582_v54, 5  ;;  %v3146_v2 = vld [vmem:[%s5192_s0 + $0x190] sm:$0xf] }
  0x63   :  { %v1502_v42 = vrot.slane %v1501_v37, 4  ;;  %3749 = vmatprep.mubr.bf16.mxu1 %v3172_v38  ;;  %v1516_v17 = vrot.slane %v1515_v5, 4  ;;  %v3140_v38 = vld [vmem:[%s5192_s0 + $0x130] sm:$0xf]  ;;  %v3145_v1 = vld [vmem:[%s5192_s0 + $0x178] sm:$0x1] }
  0x64   :  { %v1530_v21 = vrot.slane %v1529_v11, 4  ;;  %v1557_v33 = vor.u32 %v1556_v25, %v1553_v23  ;;  %v1568_v45 = vshll.u32 %v3140_v38, 16  ;;  %v3147_v4 = vld [vmem:[%s5192_s0 + $0x198] sm:$0x1]  ;;  %v1593_v5 = vshrl.u32 %v3144_v60, 16 }
  0x65   :  { %3718 = vmatmul.mubr.bf16.vlgmr.msra.gmra.mxu0 %v3109_v27  ;;  %v1507_v52 = vsel %vm4180_vm2, %v1502_v42, %v1506_v35  ;;  %v1521_v24 = vsel %vm4180_vm2, %v1516_v17, %v1520_v0  ;;  %v3932_v27 = vld [vmem:[%s5191_s1 + $0x1e0] sm:$0xff]   ;;  %v3085_v35 = vld [vmem:[%s5192_s0 + $0x154] sm:$0xf]  ;;  %v3143_v42 = vld [vmem:[%s5192_s0 + $0x158] sm:$0x1]  ;;  %v3113_v0 = vcombine.low %v3086_v48, %v3087_v56  ;;  %v1602_v7 = vshll.u32 %v3145_v1, 16 }
  0x66   :  { %3766 = vmatpush3.bf16.msra.mxu0 %v4404_v49  ;;  %3721 = vmatprep.mubr.bf16.mxu0 %v3110_v43  ;;  %v3082_v49 = vld [vmem:[%s5192_s0 + $0xd4] sm:$0xf]  ;;  %v3173_v58 = vcombine.low %v1493_v46, %v1507_v52  ;;  %v1535_v29 = vsel %vm4180_vm2, %v1530_v21, %v1534_v6  ;;  %v3112_v37 = vcombine.low %v3084_v34, %v3085_v35  ;;  %v1558_v40 = vrot.slane %v1557_v33, 4  ;;  %v3149_v35 = vld [vmem:[%s5192_s0 + $0x1b8] sm:$0x1]  ;;  %v3940_v56 = vld [vmem:[%s5191_s1 + $0x1c0] sm:$0xff]  }
  0x67   :  { %3767 = vmatprep.subr.bf16.mxu0 %v3927_v30  ;;  %v3111_v3 = vcombine.low %v3082_v49, %v3083_v63  ;;  %v3174_v32 = vcombine.low %v1521_v24, %v1535_v29  ;;  %v1565_v43 = vshrl.u32 %v3140_v38, 16  ;;  %v1574_v46 = vshll.u32 %v3141_v39, 16  ;;  %v3089_v29 = vld [vmem:[%s5192_s0 + $0x1d4] sm:$0xf]  ;;  %v3151_v39 = vld [vmem:[%s5192_s0 + $0x1d8] sm:$0x1] }
  0x68   :  { %3750 = vmatmul.mubr.bf16.vlgmr.msra.gmra.mxu1 %v3173_v58  ;;  %v1563_v51 = vsel %vm4180_vm2, %v1558_v40, %v1562_v26  ;;  %v1588_v55 = vshll.u32 %v3143_v42, 16  ;;  %v1596_v6 = vshll.u32 %v3144_v60, 16  ;;  %v1610_v11 = vshll.u32 %v3146_v2, 16  ;;  %v3088_v26 = vld [vmem:[%s5192_s0 + $0x1b4] sm:$0xf] }
  0x69   :  { %3798 = vmatpush3.bf16.msra.mxu1 %v4415_v53  ;;  %v1542_v53 = vrot.slane %v1540_v13, 5  ;;  %3753 = vmatprep.mubr.bf16.mxu1 %v3174_v32  ;;  %v1567_v52 = vrot.slane %v1565_v43, 4  ;;  %v1576_v58 = vrot.slane %v1574_v46, 5  ;;  %v1616_v12 = vshll.u32 %v3147_v4, 16  ;;  %v3936_v13 = vld [vmem:[%s5191_s1 + $0x1d0] sm:$0xff]   ;;  %v3938_v32 = vld [vmem:[%s5191_s1 + $0x1c8] sm:$0xff]  }
  0x6a   :  { %3768 = vmatpush3.bf16.msra.mxu0 %v3927_v30  ;;  %3799 = vmatprep.subr.bf16.mxu1 %v3928_v59  ;;  %v1590_v63 = vrot.slane %v1588_v55, 5  ;;  %v1595_v15 = vrot.slane %v1593_v5, 4  ;;  %v1604_v17 = vrot.slane %v1602_v7, 5  ;;  %v1612_v21 = vrot.slane %v1610_v11, 5  ;;  %v4606_v43 = vld [vmem:[%s5191_s1 + $0x238] sm:$0xff]  }
  0x6b   :  { %3769 = vmatprep.subr.bf16.mxu0 %v3929_v57  ;;  %v1543_v30 = vor.u32 %v1542_v53, %v1539_v18  ;;  %v3939_v18 = vld [vmem:[%s5191_s1 + $0x180] sm:$0xff]   ;;  %v1618_v53 = vrot.slane %v1616_v12, 5  ;;  %v3114_v34 = vcombine.low %v3088_v26, %v3089_v29  ;;  %v1630_v41 = vshll.u32 %v3149_v35, 16  ;;  %v3090_v48 = vld [vmem:[%s5192_s0 + $0x1f4] sm:$0xf] }
  0x6c   :  { %v3091_v55 = vld [vmem:[%s5192_s0 + $0x214] sm:$0xf]  ;;  %v3153_v60 = vld [vmem:[%s5192_s0 + $0x1f8] sm:$0x1]  ;;  %v3192_v35 = vld [vmem:[%s5192_s0 + $0xa0] sm:$0xf] }
  0x6d   :  { %3722 = vmatmul.mubr.bf16.gmra.mxu0 %v3111_v3  ;;  %3800 = vmatpush3.bf16.msra.mxu1 %v3928_v59  ;;  %v1544_v36 = vrot.slane %v1543_v30, 4  ;;  %v1581_v59 = vrot.slane %v1579_v47, 4  ;;  %v3148_v30 = vld [vmem:[%s5192_s0 + $0x1b0] sm:$0xf]  ;;  %v1644_v47 = vshll.u32 %v3151_v39, 16 }
  0x6e   :  { %3770 = vmatpush3.bf16.msra.mxu0 %v3929_v57  ;;  %3801 = vmatprep.subr.bf16.mxu1 %v3930_v10  ;;  %v1570_v57 = vrot.slane %v1568_v45, 5  ;;  %v1624_v40 = vshll.u32 %v3148_v30, 16  ;;  %v3239_v39 = vld [vmem:[%s5192_s0 + $0x84] sm:$0xf] }
  0x6f   :  { %3771 = vmatprep.subr.bf16.mxu0 %v3931_v16  ;;  %v1549_v44 = vsel %vm4180_vm2, %v1544_v36, %v1548_v22  ;;  %3725 = vmatprep.mubr.bf16.mxu0 %v3112_v37  ;;  %v1585_v9 = vor.u32 %v1584_v62, %v1581_v59  ;;  %v3150_v36 = vld [vmem:[%s5192_s0 + $0x1d0] sm:$0xf]  ;;  %v1621_v37 = vshrl.u32 %v3148_v30, 16 }
  0x70   :  { %v3175_v49 = vcombine.low %v1549_v44, %v1563_v51  ;;  %v1571_v3 = vor.u32 %v1570_v57, %v1567_v52  ;;  %v1635_v42 = vshrl.u32 %v3150_v36, 16  ;;  %v1638_v46 = vshll.u32 %v3150_v36, 16  ;;  %v3152_v59 = vld [vmem:[%s5192_s0 + $0x1f0] sm:$0xf]  ;;  %v3238_v36 = vld [vmem:[%s5192_s0 + $0x64] sm:$0xf] }
  0x71   :  { %3802 = vmatpush3.bf16.msra.mxu1 %v3930_v10  ;;  %v1607_v10 = vshrl.u32 %v3146_v2, 16  ;;  %v1586_v19 = vrot.slane %v1585_v9, 4  ;;  %v1623_v45 = vrot.slane %v1621_v37, 4  ;;  %v1626_v51 = vrot.slane %v1624_v40, 5  ;;  %v3154_v62 = vld [vmem:[%s5192_s0 + $0x210] sm:$0xf] }
  0x72   :  { %3772 = vmatpush3.bf16.msra.mxu0 %v3931_v16  ;;  %3803 = vmatprep.subr.bf16.mxu1 %v3932_v27  ;;  %v1572_v14 = vrot.slane %v1571_v3, 4  ;;  %v1598_v16 = vrot.slane %v1596_v6, 5  ;;  %v1632_v52 = vrot.slane %v1630_v41, 5  ;;  %v1637_v54 = vrot.slane %v1635_v42, 4  ;;  %v3193_v37 = vld [vmem:[%s5192_s0 + $0xc0] sm:$0xf] }
  0x73   :  { %3773 = vmatprep.subr.bf16.mxu0 %v3933_v28  ;;  %3754 = vmatmul.mubr.bf16.gmra.mxu1 %v3175_v49  ;;  %v1609_v20 = vrot.slane %v1607_v10, 4  ;;  %v1591_v24 = vsel %vm4180_vm2, %v1586_v19, %v1590_v63  ;;  %v1640_v49 = vrot.slane %v1638_v46, 5  ;;  %v1646_v57 = vrot.slane %v1644_v47, 5  ;;  %v3155_v63 = vld [vmem:[%s5192_s0 + $0x218] sm:$0x1] }
  0x74   :  { %v1577_v22 = vsel %vm4180_vm2, %v1572_v14, %v1576_v58  ;;  %v1599_v23 = vor.u32 %v1598_v16, %v1595_v15  ;;  %v3115_v58 = vcombine.low %v3090_v48, %v3091_v55  ;;  %v1652_v1 = vshll.u32 %v3152_v59, 16  ;;  %v3194_v41 = vld [vmem:[%s5192_s0 + $0xe0] sm:$0xf]  ;;  %v3243_v55 = vld [vmem:[%s5192_s0 + $0x104] sm:$0xf] }
  0x75   :  { %3804 = vmatpush3.bf16.msra.mxu1 %v3932_v27  ;;  %3726 = vmatmul.mubr.bf16.gmra.mxu0 %v3113_v0  ;;  %v1613_v25 = vor.u32 %v1612_v21, %v1609_v20  ;;  %v3176_v27 = vcombine.low %v1577_v22, %v1591_v24  ;;  %v1649_v0 = vshrl.u32 %v3152_v59, 16  ;;  %v1641_v2 = vor.u32 %v1640_v49, %v1637_v54  ;;  %v3188_v21 = vld [vmem:[%s5192_s0 + $0x20] sm:$0xf]  ;;  %v3236_v24 = vld [vmem:[%s5192_s0 + $0x24] sm:$0xf] }
  0x76   :  { %3774 = vmatpush3.bf16.msra.mxu0 %v3933_v28  ;;  %3805 = vmatprep.subr.bf16.mxu1 %v3934_v61  ;;  %v1600_v28 = vrot.slane %v1599_v23, 4  ;;  %v1658_v3 = vshll.u32 %v3153_v60, 16  ;;  %v1663_v4 = vshrl.u32 %v3154_v62, 16  ;;  %v1666_v5 = vshll.u32 %v3154_v62, 16  ;;  %v3195_v42 = vld [vmem:[%s5192_s0 + $0x100] sm:$0xf] }
  0x77   :  { %3775 = vmatprep.subr.bf16.mxu0 %v3935_v50  ;;  %v1614_v33 = vrot.slane %v1613_v25, 4  ;;  %3757 = vmatprep.mubr.bf16.mxu1 %v3176_v27  ;;  %v1651_v7 = vrot.slane %v1649_v0, 4  ;;  %v1672_v9 = vshll.u32 %v3155_v63, 16  ;;  %v1642_v10 = vrot.slane %v1641_v2, 4  ;;  %v3237_v25 = vld [vmem:[%s5192_s0 + $0x44] sm:$0xf] }
  0x78   :  { %v1605_v38 = vsel %vm4180_vm2, %v1600_v28, %v1604_v17  ;;  %3729 = vmatprep.mubr.bf16.mxu0 %v3114_v34  ;;  %v1665_v11 = vrot.slane %v1663_v4, 4  ;;  %v1668_v12 = vrot.slane %v1666_v5, 5  ;;  %v1660_v15 = vrot.slane %v1658_v3, 5  ;;  %v3190_v27 = vld [vmem:[%s5192_s0 + $0x60] sm:$0xf]  ;;  %v4750_v63 = vld [vmem:[%s5191_s1 + $0x218] sm:$0xff]  }
  0x79   :  { %3806 = vmatpush3.bf16.msra.mxu1 %v3934_v61  ;;  %v1619_v44 = vsel %vm4180_vm2, %v1614_v33, %v1618_v53  ;;  %v1627_v61 = vor.u32 %v1626_v51, %v1623_v45  ;;  %v1674_v16 = vrot.slane %v1672_v9, 5  ;;  %v1647_v17 = vsel %vm4180_vm2, %v1642_v10, %v1646_v57  ;;  %v3189_v53 = vld [vmem:[%s5192_s0 + $0x40] sm:$0xf]  ;;  %v4662_v33 = vld [vmem:[%s5191_s1 + $0x230] sm:$0xff]   ;;  %v3241_v45 = vld [vmem:[%s5192_s0 + $0xc4] sm:$0xf] }
  0x7a   :  { %3776 = vmatpush3.bf16.msra.mxu0 %v3935_v50  ;;  %3807 = vmatprep.subr.bf16.mxu1 %v3936_v13  ;;  %v3177_v50 = vcombine.low %v1605_v38, %v1619_v44  ;;  %v3220_v23 = vcombine.low %v3188_v21, %v3189_v53  ;;  %v3191_v28 = vld [vmem:[%s5192_s0 + $0x80] sm:$0xf]  ;;  %v3268_v30 = vcombine.low %v3236_v24, %v3237_v25  ;;  %v4676_v38 = vld [vmem:[%s5191_s1 + $0x228] sm:$0xff]   ;;  %v3240_v44 = vld [vmem:[%s5192_s0 + $0xa4] sm:$0xf] }
  0x7b   :  { %3777 = vmatprep.subr.bf16.mxu0 %v3937_v8  ;;  %v1628_v6 = vrot.slane %v1627_v61, 4  ;;  %v3222_v40 = vcombine.low %v3192_v35, %v3193_v37  ;;  %v3223_v46 = vcombine.low %v3194_v41, %v3195_v42  ;;  %v3269_v47 = vcombine.low %v3238_v36, %v3239_v39  ;;  %v4699_v48 = vld [vmem:[%s5191_s1 + $0x220] sm:$0xff]   ;;  %v3301_v25 = vld [vmem:[%s5192_s0 + $0x148] sm:$0x1] }
  0x7c   :  { %3758 = vmatmul.mubr.bf16.gmra.mxu1 %v3177_v50  ;;  %v3196_v50 = vld [vmem:[%s5192_s0 + $0x140] sm:$0xf]  ;;  %v4710_v54 = vld [vmem:[%s5192_s0 + $0xe4] sm:$0xf]  ;;  %v2523_v39 = vshll.u32 %v3301_v25, 16 }
  0x7d   :  { %3808 = vmatpush3.bf16.msra.mxu1 %v3936_v13  ;;  %3730 = vmatmul.mubr.bf16.gmra.mxu0 %v3115_v58  ;;  %v1633_v13 = vsel %vm4180_vm2, %v1628_v6, %v1632_v52  ;;  %v3197_v51 = vld [vmem:[%s5192_s0 + $0x160] sm:$0xf]  ;;  %v3270_v52 = vcombine.low %v3240_v44, %v3241_v45  ;;  %v4724_v49 = vld [vmem:[%s5192_s0 + $0x164] sm:$0xf]  ;;  %v4845_v44 = vld [vmem:[%s5191_s1 + $0x208] sm:$0xff]  }
  0x7e   :  { %3778 = vmatpush3.bf16.msra.mxu0 %v3937_v8  ;;  %3809 = vmatprep.subr.bf16.mxu1 %v3938_v32  ;;  %v1654_v8 = vrot.slane %v1652_v1, 5  ;;  %v3178_v19 = vcombine.low %v1633_v13, %v1647_v17  ;;  %v3198_v57 = vld [vmem:[%s5192_s0 + $0x180] sm:$0xf]  ;;  %v4735_v59 = vld [vmem:[%s5192_s0 + $0x184] sm:$0xf]  ;;  %v3224_v62 = vcombine.low %v3196_v50, %v3197_v51 }
  0x7f   :  { %3779 = vmatprep.subr.bf16.mxu0 %v3939_v18  ;;  %3781 = vmatprep.mubr.bf16.mxu0 %v3220_v23  ;;  %v3199_v58 = vld [vmem:[%s5192_s0 + $0x1a0] sm:$0xf]  ;;  %v4740_v60 = vld [vmem:[%s5192_s0 + $0x1a4] sm:$0xf]  ;;  %v3285_v13 = vld [vmem:[%s5192_s0 + $0x28] sm:$0x1] }
  0x80   :  { %v1655_v14 = vor.u32 %v1654_v8, %v1651_v7  ;;  %3761 = vmatprep.mubr.bf16.mxu1 %v3178_v19  ;;  %v4745_v61 = vld [vmem:[%s5192_s0 + $0x1c0] sm:$0xf]  ;;  %v4760_v1 = vld [vmem:[%s5192_s0 + $0x1c4] sm:$0xf]  ;;  %v3271_v7 = vcombine.low %v4710_v54, %v3243_v55  ;;  %v3273_v10 = vcombine.low %v4735_v59, %v4740_v60  ;;  %v2411_v19 = vshll.u32 %v3285_v13, 16 }
  0x81   :  { %3810 = vmatpush3.bf16.msra.mxu1 %v3938_v32  ;;  %v3221_v32 = vcombine.low %v3190_v27, %v3191_v28  ;;  %v4755_v0 = vld [vmem:[%s5192_s0 + $0x1e0] sm:$0xf]  ;;  %v4765_v2 = vld [vmem:[%s5192_s0 + $0x1e4] sm:$0xf]  ;;  %v3289_v51 = vld [vmem:[%s5192_s0 + $0x68] sm:$0x1] }
  0x82   :  { %3780 = vmatpush3.bf16.msra.mxu0 %v3939_v18  ;;  %3811 = vmatprep.subr.bf16.mxu1 %v3940_v56  ;;  %v1669_v18 = vor.u32 %v1668_v12, %v1665_v11  ;;  %v1656_v20 = vrot.slane %v1655_v14, 4  ;;  %v4771_v3 = vld [vmem:[%s5192_s0 + $0x200] sm:$0xf]  ;;  %v4781_v5 = vld [vmem:[%s5192_s0 + $0x204] sm:$0xf]  ;;  %v3226_v11 = vcombine.low %v4745_v61, %v4755_v0  ;;  %v3274_v12 = vcombine.low %v4760_v1, %v4765_v2 }
  0x83   :  { %3829 = vmatprep.subr.bf16.mxu0 %v4606_v43  ;;  %v4776_v4 = vld [vmem:[%s5192_s0 + $0x220] sm:$0xf]  ;;  %v4787_v6 = vld [vmem:[%s5192_s0 + $0x224] sm:$0xf]  ;;  %v3293_v1 = vld [vmem:[%s5192_s0 + $0xa8] sm:$0x1] }
  0x84   :  { %v1670_v22 = vrot.slane %v1669_v18, 4  ;;  %v1661_v26 = vsel %vm4180_vm2, %v1656_v20, %v1660_v15  ;;  %v3284_v9 = vld [vmem:[%s5192_s0 + $0x20] sm:$0xf]  ;;  %v3287_v15 = vld [vmem:[%s5192_s0 + $0x48] sm:$0x1]  ;;  %v3227_v53 = vcombine.low %v4771_v3, %v4776_v4 }
  0x85   :  { %3812 = vmatpush3.bf16.msra.mxu1 %v3940_v56  ;;  %3782 = vmatmul.mubr.bf16.vlgmr.msra.gmra.mxu0 %v3221_v32  ;;  %v4719_v56 = vld [vmem:[%s5192_s0 + $0x144] sm:$0xf]  ;;  %v3286_v14 = vld [vmem:[%s5192_s0 + $0x40] sm:$0xf]  ;;  %v2402_v17 = vshrl.u32 %v3284_v9, 16  ;;  %v2405_v18 = vshll.u32 %v3284_v9, 16 }
  0x86   :  { %3861 = vmatprep.subr.bf16.mxu1 %v4606_v43  ;;  %v1675_v29 = vsel %vm4180_vm2, %v1670_v22, %v1674_v16  ;;  %3830 = vmatpush3.bf16.msra.mxu0 %v4606_v43  ;;  %v3272_v8 = vcombine.low %v4719_v56, %v4724_v49  ;;  %v4816_v16 = vld [vmem:[%s5191_s1 + $0x210] sm:$0xff]   ;;  %v2416_v20 = vshrl.u32 %v3286_v14, 16  ;;  %v3300_v21 = vld [vmem:[%s5192_s0 + $0x140] sm:$0xf]  ;;  %v3275_v22 = vcombine.low %v4781_v5, %v4787_v6  ;;  %v3303_v32 = vld [vmem:[%s5192_s0 + $0x168] sm:$0x1] }
  0x87   :  { %v3179_v34 = vcombine.low %v1661_v26, %v1675_v29  ;;  %3831 = vmatprep.subr.bf16.mxu0 %v4662_v33  ;;  %3785 = vmatprep.mubr.bf16.mxu0 %v3222_v40  ;;  %v2419_v23 = vshll.u32 %v3286_v14, 16  ;;  %v2425_v24 = vshll.u32 %v3287_v15, 16  ;;  %v3302_v26 = vld [vmem:[%s5192_s0 + $0x160] sm:$0xf]  ;;  %v2404_v27 = vrot.slane %v2402_v17, 4 }
  0x88   :  { %v2407_v28 = vrot.slane %v2405_v18, 5  ;;  %v2413_v29 = vrot.slane %v2411_v19, 5  ;;  %v2514_v35 = vshrl.u32 %v3300_v21, 16  ;;  %v2517_v36 = vshll.u32 %v3300_v21, 16  ;;  %v3288_v42 = vld [vmem:[%s5192_s0 + $0x60] sm:$0xf] }
  0x89   :  { %3762 = vmatmul.mubr.bf16.gmra.mxu1 %v3179_v34  ;;  %v2427_v34 = vrot.slane %v2425_v24, 5  ;;  %v2528_v40 = vshrl.u32 %v3302_v26, 16  ;;  %v2531_v41 = vshll.u32 %v3302_v26, 16  ;;  %v2537_v50 = vshll.u32 %v3303_v32, 16  ;;  %v3290_v56 = vld [vmem:[%s5192_s0 + $0x80] sm:$0xf] }
  0x8a   :  { %3813 = vmatprep.mubr.bf16.mxu1 %v3268_v30  ;;  %3832 = vmatpush3.bf16.msra.mxu0 %v4662_v33  ;;  %v2418_v30 = vrot.slane %v2416_v20, 4  ;;  %v2408_v37 = vor.u32 %v2407_v28, %v2404_v27  ;;  %v2430_v61 = vshrl.u32 %v3288_v42, 16  ;;  %v2439_v9 = vshll.u32 %v3289_v51, 16  ;;  %v3304_v15 = vld [vmem:[%s5192_s0 + $0x180] sm:$0xf] }
  0x8b   :  { %3833 = vmatprep.subr.bf16.mxu0 %v4676_v38  ;;  %v2530_v54 = vrot.slane %v2528_v40, 4  ;;  %v2533_v55 = vrot.slane %v2531_v41, 5  ;;  %v2444_v14 = vshrl.u32 %v3290_v56, 16  ;;  %v4872_v17 = vld [vmem:[%s5191_s1 + $0x200] sm:$0xff]   ;;  %v3305_v21 = vld [vmem:[%s5192_s0 + $0x188] sm:$0x1] }
  0x8c   :  { %v2432_v13 = vrot.slane %v2430_v61, 4  ;;  %v2441_v20 = vrot.slane %v2439_v9, 5  ;;  %v2447_v25 = vshll.u32 %v3290_v56, 16  ;;  %v3306_v27 = vld [vmem:[%s5192_s0 + $0x1a0] sm:$0xf]  ;;  %v2542_v28 = vshrl.u32 %v3304_v15, 16 }
  0x8d   :  { %3786 = vmatmul.mubr.bf16.gmra.mxu0 %v3223_v46  ;;  %v2516_v46 = vrot.slane %v2514_v35, 4  ;;  %v2534_v0 = vor.u32 %v2533_v55, %v2530_v54  ;;  %v2446_v24 = vrot.slane %v2444_v14, 4  ;;  %v3292_v32 = vld [vmem:[%s5192_s0 + $0xa0] sm:$0xf]  ;;  %v3295_v51 = vld [vmem:[%s5192_s0 + $0xc8] sm:$0x1] }
  0x8e   :  { %3834 = vmatpush3.bf16.msra.mxu0 %v4676_v38  ;;  %3789 = vmatprep.mubr.bf16.mxu0 %v3224_v62  ;;  %v2449_v60 = vrot.slane %v2447_v25, 5  ;;  %v2467_v55 = vshll.u32 %v3293_v1, 16  ;;  %v3311_v5 = vld [vmem:[%s5192_s0 + $0x1e8] sm:$0x1]  ;;  %v3312_v1 = vld [vmem:[%s5192_s0 + $0x200] sm:$0xf] }
  0x8f   :  { %3835 = vmatprep.subr.bf16.mxu0 %v4699_v48  ;;  %v2535_v18 = vrot.slane %v2534_v0, 4  ;;  %v3310_v0 = vld [vmem:[%s5192_s0 + $0x1e0] sm:$0xf] }
  0x90   :  { %v2450_v2 = vor.u32 %v2449_v60, %v2446_v24  ;;  %v2469_v9 = vrot.slane %v2467_v55, 5  ;;  %v3297_v24 = vld [vmem:[%s5192_s0 + $0xe8] sm:$0x1]  ;;  %v2601_v55 = vshll.u32 %v3312_v1, 16 }
  0x91   :  { %3814 = vmatmul.mubr.bf16.vlgmr.msra.gmra.mxu1 %v3269_v47  ;;  %v2519_v47 = vrot.slane %v2517_v36, 5  ;;  %v2559_v36 = vshll.u32 %v3306_v27, 16 }
  0x92   :  { %3869 = vmatpush3.bf16.msra.mxu1 %v4606_v43  ;;  %3817 = vmatprep.mubr.bf16.mxu1 %v3270_v52  ;;  %v3225_v43 = vcombine.low %v3198_v57, %v3199_v58  ;;  %v2409_v52 = vrot.slane %v2408_v37, 4  ;;  %v2539_v58 = vrot.slane %v2537_v50, 5 }
  0x93   :  { %3862 = vmatprep.subr.bf16.mxu1 %v4662_v33  ;;  %3836 = vmatpush3.bf16.msra.mxu0 %v4699_v48  ;;  %v2520_v57 = vor.u32 %v2519_v47, %v2516_v46  ;;  %v2451_v46 = vrot.slane %v2450_v2, 4  ;;  %v2561_v47 = vrot.slane %v2559_v36, 5 }
  0x94   :  { %3837 = vmatprep.subr.bf16.mxu0 %v4750_v63  ;;  %v2414_v62 = vsel %vm4180_vm2, %v2409_v52, %v2413_v29  ;;  %v2540_v3 = vsel %vm4180_vm2, %v2535_v18, %v2539_v58  ;;  %v2545_v29 = vshll.u32 %v3304_v15, 16  ;;  %v2461_v52 = vshll.u32 %v3292_v32, 16 }
  0x95   :  { %3790 = vmatmul.mubr.bf16.gmra.mxu0 %v3225_v43  ;;  %v2481_v15 = vshll.u32 %v3295_v51, 16  ;;  %v2584_v18 = vshrl.u32 %v3310_v0, 16  ;;  %v2598_v51 = vshrl.u32 %v3312_v1, 16 }
  0x96   :  { %3870 = vmatpush3.bf16.msra.mxu1 %v4662_v33  ;;  %v2421_v33 = vrot.slane %v2419_v23, 5  ;;  %3793 = vmatprep.mubr.bf16.mxu0 %v3226_v11  ;;  %v2521_v11 = vrot.slane %v2520_v57, 4  ;;  %v2547_v35 = vrot.slane %v2545_v29, 5  ;;  %v2463_v58 = vrot.slane %v2461_v52, 5 }
  0x97   :  { %3863 = vmatprep.subr.bf16.mxu1 %v4676_v38  ;;  %3838 = vmatpush3.bf16.msra.mxu0 %v4750_v63  ;;  %v2586_v29 = vrot.slane %v2584_v18, 4 }
  0x98   :  { %v2422_v45 = vor.u32 %v2421_v33, %v2418_v30  ;;  %3839 = vmatprep.subr.bf16.mxu0 %v4816_v16  ;;  %v2551_v30 = vshll.u32 %v3305_v21, 16  ;;  %v2483_v21 = vrot.slane %v2481_v15, 5 }
  0x99   :  { %3818 = vmatmul.mubr.bf16.gmra.mxu1 %v3271_v7  ;;  %v3291_v7 = vld [vmem:[%s5192_s0 + $0x88] sm:$0x1] }
  0x9a   :  { %3871 = vmatpush3.bf16.msra.mxu1 %v4676_v38  ;;  %3821 = vmatprep.mubr.bf16.mxu1 %v3272_v8  ;;  %v2525_v38 = vrot.slane %v2523_v39, 5  ;;  %v2423_v49 = vrot.slane %v2422_v45, 4  ;;  %v2433_v8 = vshll.u32 %v3288_v42, 16  ;;  %v2453_v26 = vshll.u32 %v3291_v7, 16  ;;  %v3294_v39 = vld [vmem:[%s5192_s0 + $0xc0] sm:$0xf] }
  0x9b   :  { %3864 = vmatprep.subr.bf16.mxu1 %v4699_v48  ;;  %3840 = vmatpush3.bf16.msra.mxu0 %v4816_v16  ;;  %v2458_v45 = vshrl.u32 %v3292_v32, 16  ;;  %v2472_v56 = vshrl.u32 %v3294_v39, 16  ;;  %v2475_v61 = vshll.u32 %v3294_v39, 16 }
  0x9c   :  { %3841 = vmatprep.subr.bf16.mxu0 %v4845_v44  ;;  %v2428_v43 = vsel %vm4180_vm2, %v2423_v49, %v2427_v34  ;;  %v2435_v19 = vrot.slane %v2433_v8, 5  ;;  %v2526_v23 = vsel %vm4180_vm2, %v2521_v11, %v2525_v38  ;;  %v2544_v34 = vrot.slane %v2542_v28, 4  ;;  %v3308_v49 = vld [vmem:[%s5192_s0 + $0x1c0] sm:$0xf] }
  0x9d   :  { %3794 = vmatmul.mubr.bf16.gmra.mxu0 %v3227_v53  ;;  %v3307_v53 = vld [vmem:[%s5192_s0 + $0x1a8] sm:$0x1]  ;;  %v3336_v59 = vcombine.low %v2526_v23, %v2540_v3  ;;  %v2460_v54 = vrot.slane %v2458_v45, 4  ;;  %v2477_v14 = vrot.slane %v2475_v61, 5  ;;  %v2570_v6 = vshrl.u32 %v3308_v49, 16 }
  0x9e   :  { %3872 = vmatpush3.bf16.msra.mxu1 %v4699_v48  ;;  %v3332_v48 = vcombine.low %v2414_v62, %v2428_v43  ;;  %v2436_v4 = vor.u32 %v2435_v19, %v2432_v13  ;;  %v2565_v37 = vshll.u32 %v3307_v53, 16  ;;  %v2548_v41 = vor.u32 %v2547_v35, %v2544_v34  ;;  %v3309_v62 = vld [vmem:[%s5192_s0 + $0x1c8] sm:$0x1]  ;;  %v3296_v23 = vld [vmem:[%s5192_s0 + $0xe0] sm:$0xf] }
  0x9f   :  { %3865 = vmatprep.subr.bf16.mxu1 %v4750_v63  ;;  %3842 = vmatpush3.bf16.msra.mxu0 %v4845_v44  ;;  %v2474_v43 = vrot.slane %v2472_v56, 4  ;;  %v2464_v13 = vor.u32 %v2463_v58, %v2460_v54  ;;  %v2486_v32 = vshrl.u32 %v3296_v23, 16  ;;  %v3314_v45 = vld [vmem:[%s5192_s0 + $0x220] sm:$0xf] }
  0xa0   :  { %3843 = vmatprep.subr.bf16.mxu0 %v4872_v17  ;;  %v2437_v33 = vrot.slane %v2436_v4, 4  ;;  %3845 = vmatprep.mubr.bf16.mxu0 %v3332_v48  ;;  %v2567_v50 = vrot.slane %v2565_v37, 5  ;;  %v2549_v38 = vrot.slane %v2548_v41, 4  ;;  %v2579_v48 = vshll.u32 %v3309_v62, 16  ;;  %v3298_v4 = vld [vmem:[%s5192_s0 + $0x100] sm:$0xf] }
  0xa1   :  { %3822 = vmatmul.mubr.bf16.gmra.mxu1 %v3273_v10  ;;  %v2455_v10 = vrot.slane %v2453_v26, 5  ;;  %v2572_v26 = vrot.slane %v2570_v6, 4  ;;  %v2488_v36 = vrot.slane %v2486_v32, 4  ;;  %v3313_v37 = vld [vmem:[%s5192_s0 + $0x208] sm:$0x1]  ;;  %v2612_v58 = vshrl.u32 %v3314_v45, 16 }
  0xa2   :  { %3873 = vmatpush3.bf16.msra.mxu1 %v4750_v63  ;;  %3825 = vmatprep.mubr.bf16.mxu1 %v3274_v12  ;;  %v2556_v63 = vshrl.u32 %v3306_v27, 16  ;;  %v2553_v12 = vrot.slane %v2551_v30, 5  ;;  %v2442_v40 = vsel %vm4180_vm2, %v2437_v33, %v2441_v20  ;;  %v2478_v20 = vor.u32 %v2477_v14, %v2474_v43  ;;  %v3299_v30 = vld [vmem:[%s5192_s0 + $0x108] sm:$0x1] }
  0xa3   :  { %3866 = vmatprep.subr.bf16.mxu1 %v4816_v16  ;;  %3844 = vmatpush3.bf16.msra.mxu0 %v4872_v17  ;;  %v2581_v3 = vrot.slane %v2579_v48, 5  ;;  %v2489_v33 = vshll.u32 %v3296_v23, 16  ;;  %v2614_v43 = vrot.slane %v2612_v58, 4 }
  0xa4   :  { %v2558_v42 = vrot.slane %v2556_v63, 4  ;;  %v2554_v8 = vsel %vm4180_vm2, %v2549_v38, %v2553_v12  ;;  %v2479_v28 = vrot.slane %v2478_v20, 4  ;;  %v2495_v63 = vshll.u32 %v3297_v24, 16 }
  0xa5   :  { %v2491_v41 = vrot.slane %v2489_v33, 5 }
  0xa6   :  { %3874 = vmatpush3.bf16.msra.mxu1 %v4816_v16  ;;  %v2456_v16 = vsel %vm4180_vm2, %v2451_v46, %v2455_v10  ;;  %v2562_v57 = vor.u32 %v2561_v47, %v2558_v42  ;;  %v2593_v10 = vshll.u32 %v3311_v5, 16  ;;  %v2484_v34 = vsel %vm4180_vm2, %v2479_v28, %v2483_v21 }
  0xa7   :  { %3867 = vmatprep.subr.bf16.mxu1 %v4845_v44  ;;  %v3333_v7 = vcombine.low %v2442_v40, %v2456_v16  ;;  %v2497_v42 = vrot.slane %v2495_v63, 5  ;;  %v2503_v47 = vshll.u32 %v3298_v4, 16  ;;  %v2492_v54 = vor.u32 %v2491_v41, %v2488_v36 }
  0xa8   :  { %v2563_v11 = vrot.slane %v2562_v57, 4  ;;  %v2595_v40 = vrot.slane %v2593_v10, 5  ;;  %v2600_v16 = vrot.slane %v2598_v51, 4  ;;  %v2607_v57 = vshll.u32 %v3313_v37, 16 }
  0xa9   :  { %3826 = vmatmul.mubr.bf16.gmra.mxu1 %v3275_v22  ;;  %3846 = vmatmul.mubr.bf16.vlgmr.msra.gmra.mxu0 %v3333_v7  ;;  %v2573_v22 = vshll.u32 %v3308_v49, 16  ;;  %v2505_v56 = vrot.slane %v2503_v47, 5  ;;  %v3315_v49 = vld [vmem:[%s5192_s0 + $0x228] sm:$0x1]  ;;  %v2493_v62 = vrot.slane %v2492_v54, 4  ;;  %v2603_v7 = vrot.slane %v2601_v55, 5 }
  0xaa   :  { %3875 = vmatpush3.bf16.msra.mxu1 %v4845_v44  ;;  %3853 = vmatprep.mubr.bf16.mxu1 %v3336_v59  ;;  %v2568_v19 = vsel %vm4180_vm2, %v2563_v11, %v2567_v50  ;;  %v2465_v44 = vrot.slane %v2464_v13, 4  ;;  %v2587_v59 = vshll.u32 %v3310_v0, 16  ;;  %v2509_v50 = vshll.u32 %v3299_v30, 16 }
  0xab   :  { %3868 = vmatprep.subr.bf16.mxu1 %v4872_v17  ;;  %v3337_v25 = vcombine.low %v2554_v8, %v2568_v19  ;;  %v2575_v27 = vrot.slane %v2573_v22, 5  ;;  %v2615_v11 = vshll.u32 %v3314_v45, 16  ;;  %v2604_v13 = vor.u32 %v2603_v7, %v2600_v16 }
  0xac   :  { %v2470_v53 = vsel %vm4180_vm2, %v2465_v44, %v2469_v9  ;;  %v2589_v35 = vrot.slane %v2587_v59, 5  ;;  %v2511_v0 = vrot.slane %v2509_v50, 5  ;;  %v2621_v14 = vshll.u32 %v3315_v49, 16 }
  0xad   :  { %v2576_v60 = vor.u32 %v2575_v27, %v2572_v26  ;;  %v3334_v2 = vcombine.low %v2470_v53, %v2484_v34  ;;  %v2498_v15 = vsel %vm4180_vm2, %v2493_v62, %v2497_v42  ;;  %v2609_v6 = vrot.slane %v2607_v57, 5 }
  0xae   :  { %3876 = vmatpush3.bf16.msra.mxu1 %v4872_v17  ;;  %v2500_v17 = vshrl.u32 %v3298_v4, 16  ;;  %v2590_v39 = vor.u32 %v2589_v35, %v2586_v29  ;;  %v2617_v22 = vrot.slane %v2615_v11, 5  ;;  %v2605_v48 = vrot.slane %v2604_v13, 4 }
  0xaf   :  { %v2577_v12 = vrot.slane %v2576_v60, 4  ;;  %3849 = vmatprep.mubr.bf16.mxu0 %v3334_v2  ;;  %v2623_v44 = vrot.slane %v2621_v14, 5 }
  0xb0   :  { %v2502_v46 = vrot.slane %v2500_v17, 4  ;;  %v2591_v38 = vrot.slane %v2590_v39, 4  ;;  %v2618_v19 = vor.u32 %v2617_v22, %v2614_v43  ;;  %v2610_v21 = vsel %vm4180_vm2, %v2605_v48, %v2609_v6 }
  0xb1   :  { %3854 = vmatmul.mubr.bf16.vlgmr.msra.gmra.mxu1 %v3337_v25  ;;  %v2582_v52 = vsel %vm4180_vm2, %v2577_v12, %v2581_v3 }
  0xb2   :  { %v2596_v61 = vsel %vm4180_vm2, %v2591_v38, %v2595_v40  ;;  %v2506_v9 = vor.u32 %v2505_v56, %v2502_v46  ;;  %v2619_v23 = vrot.slane %v2618_v19, 4 }
  0xb3   :  { %v3338_v8 = vcombine.low %v2582_v52, %v2596_v61 }
  0xb4   :  { %v2507_v5 = vrot.slane %v2506_v9, 4  ;;  %v2624_v24 = vsel %vm4180_vm2, %v2619_v23, %v2623_v44 }
  0xb5   :  { %3857 = vmatprep.mubr.bf16.mxu1 %v3338_v8  ;;  %v3339_v25 = vcombine.low %v2610_v21, %v2624_v24 }
  0xb6   :  { %v2512_v18 = vsel %vm4180_vm2, %v2507_v5, %v2511_v0 }
  0xb7   :  { %v3335_v20 = vcombine.low %v2498_v15, %v2512_v18 }
  0xb9   :  { %3850 = vmatmul.mubr.bf16.gmra.mxu0 %v3335_v20  ;;  %3858 = vmatmul.mubr.bf16.gmra.mxu1 %v3339_v25 }
  0xe2   :  { %v3591_v26 = vpop.f32.mrf.mxu0 }
  0xe3   :  { %v3623_v27 = vpop.f32.mrf.mxu1 }
  0xe4   :  { %v414_v3 = vadd.f32 %v3623_v27, %v3591_v26  ;;  %v212_v4 = vpop.f32.mrf.mxu0 }
  0xe5   :  { %v405_v53 = vpop.f32.mrf.mxu1 }
  0xe6   :  { %v406_v28 = vadd.f32 %v405_v53, %v212_v4  ;;  %v3592_v29 = vpop.f32.mrf.mxu0 }
  0xe7   :  { %v3624_v59 = vpop.f32.mrf.mxu1 }
  0xe8   :  { %v417_v60 = vadd.f32 %v3624_v59, %v3592_v29  ;;  %v215_v10 = vpop.f32.mrf.mxu0 }
  0xe9   :  { %v408_v30 = vpop.f32.mrf.mxu1 }
  0xea   :  { %v409_v32 = vadd.f32 %v408_v30, %v215_v10  ;;  %v3595_v33 = vpop.f32.mrf.mxu0 }
  0xeb   :  { %v3627_v34 = vpop.f32.mrf.mxu1 }
  0xec   :  { %v430_v35 = vadd.f32 %v3627_v34, %v3595_v33  ;;  %v228_v63 = vpop.f32.mrf.mxu0 }
  0xed   :  { %v421_v31 = vpop.f32.mrf.mxu1 }
  0xee   :  { %v422_v17 = vadd.f32 %v421_v31, %v228_v63  ;;  %v3596_v1 = vpop.f32.mrf.mxu0 }
  0xef   :  { %v3628_v2 = vpop.f32.mrf.mxu1 }
  0xf0   :  { %v433_v12 = vadd.f32 %v3628_v2, %v3596_v1  ;;  %v231_v36 = vpop.f32.mrf.mxu0 }
  0xf1   :  { %v424_v37 = vpop.f32.mrf.mxu1 }
  0xf2   :  { %v425_v39 = vadd.f32 %v424_v37, %v231_v36  ;;  %v3599_v40 = vpop.f32.mrf.mxu0 }
  0xf3   :  { %v3631_v41 = vpop.f32.mrf.mxu1 }
  0xf4   :  { %v446_v42 = vadd.f32 %v3631_v41, %v3599_v40  ;;  %v244_v45 = vpop.f32.mrf.mxu0 }
  0xf5   :  { %v437_v46 = vpop.f32.mrf.mxu1 }
  0xf6   :  { %v438_v47 = vadd.f32 %v437_v46, %v244_v45  ;;  %v3600_v50 = vpop.f32.mrf.mxu0 }
  0xf7   :  { %v3632_v51 = vpop.f32.mrf.mxu1 }
  0xf8   :  { %v449_v52 = vadd.f32 %v3632_v51, %v3600_v50  ;;  %v247_v38 = vpop.f32.mrf.mxu0 }
  0xf9   :  { %v440_v54 = vpop.f32.mrf.mxu1 }
  0xfa   :  { %v441_v55 = vadd.f32 %v440_v54, %v247_v38  ;;  %v3603_v56 = vpop.f32.mrf.mxu0 }
  0xfb   :  { %v3635_v49 = vpop.f32.mrf.mxu1 }
  0xfc   :  { %v462_v16 = vadd.f32 %v3635_v49, %v3603_v56  ;;  %v260_v57 = vpop.f32.mrf.mxu0 }
  0xfd   :  { %v453_v58 = vpop.f32.mrf.mxu1 }
  0xfe   :  { %v454_v61 = vadd.f32 %v453_v58, %v260_v57  ;;  %v3604_v62 = vpop.f32.mrf.mxu0 }
  0xff   :  { %v3636_v0 = vpop.f32.mrf.mxu1 }
 0x100   :  { %v465_v7 = vadd.f32 %v3636_v0, %v3604_v62  ;;  %v263_v8 = vpop.f32.mrf.mxu0 }
 0x101   :  { %v456_v9 = vpop.f32.mrf.mxu1 }
 0x102   :  { %v457_v43 = vadd.f32 %v456_v9, %v263_v8  ;;  %v3655_v11 = vpop.f32.mrf.mxu0 }
 0x103   :  { %v922_v13 = vadd.f32 %v3655_v11, %v414_v3  ;;  %v3687_v14 = vpop.f32.mrf.mxu1 }
 0x104   :  { %v857_v15 = vpop.f32.mrf.mxu0 }
 0x105   :  { %v4981_v5 = vadd.f32 %v3687_v14, %v922_v13  ;;  %v920_v6 = vadd.f32 %v857_v15, %v406_v28  ;;  %v1100_v22 = vpop.f32.mrf.mxu1 }
 0x106   :  { %v3656_v48 = vpop.f32.mrf.mxu0 }
 0x107   :  { %v4983_v18 = vadd.f32 %v1100_v22, %v920_v6  ;;  %v923_v19 = vadd.f32 %v3656_v48, %v417_v60  ;;  %v3688_v44 = vpop.f32.mrf.mxu1 }
 0x108   :  { %v860_v20 = vpop.f32.mrf.mxu0 }
 0x109   :  { %v4985_v21 = vadd.f32 %v3688_v44, %v923_v19  ;;  %v921_v23 = vadd.f32 %v860_v20, %v409_v32  ;;  %v1103_v24 = vpop.f32.mrf.mxu1 }
 0x10a   :  { %v3659_v25 = vpop.f32.mrf.mxu0 }
 0x10b   :  { %v4987_v26 = vadd.f32 %v1103_v24, %v921_v23  ;;  %v926_v27 = vadd.f32 %v3659_v25, %v430_v35  ;;  %v3691_v3 = vpop.f32.mrf.mxu1 }
 0x10c   :  { %v873_v4 = vpop.f32.mrf.mxu0 }
 0x10d   :  { %v1169_v53 = vadd.f32 %v3691_v3, %v926_v27  ;;  %v924_v29 = vadd.f32 %v873_v4, %v422_v17  ;;  %v1116_v28 = vpop.f32.mrf.mxu1 }
 0x10e   :  { %v3660_v59 = vpop.f32.mrf.mxu0 }
 0x10f   :  { %v1167_v10 = vadd.f32 %v1116_v28, %v924_v29  ;;  %v927_v30 = vadd.f32 %v3660_v59, %v433_v12  ;;  %v3692_v33 = vpop.f32.mrf.mxu1 }
 0x110   :  { %v876_v60 = vpop.f32.mrf.mxu0 }
 0x111   :  { %v1170_v34 = vadd.f32 %v3692_v33, %v927_v30  ;;  %v925_v63 = vadd.f32 %v876_v60, %v425_v39  ;;  %v1119_v31 = vpop.f32.mrf.mxu1 }
 0x112   :  { %v3663_v2 = vpop.f32.mrf.mxu0 }
 0x113   :  { %v1168_v1 = vadd.f32 %v1119_v31, %v925_v63  ;;  %v3695_v32 = vpop.f32.mrf.mxu1  ;;  %v930_v37 = vadd.f32 %v3663_v2, %v446_v42 }
 0x114   :  { %v889_v40 = vpop.f32.mrf.mxu0 }
 0x115   :  { %v1132_v36 = vpop.f32.mrf.mxu1  ;;  %v4989_v41 = vadd.f32 %v3695_v32, %v930_v37  ;;  %v928_v45 = vadd.f32 %v889_v40, %v438_v47 }
 0x116   :  { %v3664_v17 = vpop.f32.mrf.mxu0 }
 0x117   :  { %v3696_v35 = vpop.f32.mrf.mxu1  ;;  %v4991_v50 = vadd.f32 %v1132_v36, %v928_v45  ;;  %v931_v12 = vadd.f32 %v3664_v17, %v449_v52 }
 0x118   :  { %v892_v51 = vpop.f32.mrf.mxu0 }
 0x119   :  { %v1135_v46 = vpop.f32.mrf.mxu1  ;;  %v4993_v38 = vadd.f32 %v3696_v35, %v931_v12  ;;  %v929_v39 = vadd.f32 %v892_v51, %v441_v55 }
 0x11b   :  { %v3699_v54 = vpop.f32.mrf.mxu1  ;;  %v4995_v56 = vadd.f32 %v1135_v46, %v929_v39 }
 0x11d   :  { %v3667_v49 = vpop.f32.mrf.mxu0  ;;  %v1148_v57 = vpop.f32.mrf.mxu1 }
 0x11e   :  { %v934_v42 = vadd.f32 %v3667_v49, %v462_v16 }
 0x11f   :  { %v905_v58 = vpop.f32.mrf.mxu0  ;;  %v3700_v8 = vpop.f32.mrf.mxu1 }
 0x120   :  { %v4997_v62 = vadd.f32 %v3699_v54, %v934_v42  ;;  %v932_v0 = vadd.f32 %v905_v58, %v454_v61 }
 0x121   :  { %v3668_v47 = vpop.f32.mrf.mxu0  ;;  %v1151_v55 = vpop.f32.mrf.mxu1 }
 0x122   :  { %v4999_v9 = vadd.f32 %v1148_v57, %v932_v0  ;;  %v935_v11 = vadd.f32 %v3668_v47, %v465_v7 }
 0x123   :  { %v908_v52 = vpop.f32.mrf.mxu0 }
 0x124   :  { %v5001_v13 = vadd.f32 %v3700_v8, %v935_v11  ;;  %v933_v14 = vadd.f32 %v908_v52, %v457_v43 }
 0x125   :  { %v3719_v15 = vpop.f32.mrf.mxu0 }
 0x126   :  { %v5003_v6 = vadd.f32 %v1151_v55, %v933_v14 }
 0x127   :  { %v1341_v22 = vpop.f32.mrf.mxu0 }
 0x128   :  { %v5007_v16 = vpop.f32.mrf.mxu1 }
 0x129   :  { %v5005_v48 = vpop.f32.mrf.mxu0 }
 0x12a   :  { %v5011_v61 = vpop.f32.mrf.mxu1 }
 0x12b   :  { %v5009_v19 = vpop.f32.mrf.mxu0 }
 0x12c   :  { %v5013_v7 = vpop.f32.mrf.mxu1 }
 0x12d   :  { %v3723_v44 = vpop.f32.mrf.mxu0 }
 0x12e   :  { %v1410_v20 = vadd.f32 %v3723_v44, %v1169_v53  ;;  %v5015_v27 = vpop.f32.mrf.mxu1 }
 0x12f   :  { %v1357_v23 = vpop.f32.mrf.mxu0 }
 0x130   :  { %v1408_v24 = vadd.f32 %v1357_v23, %v1167_v10 }
 0x131   :  { %v3724_v43 = vpop.f32.mrf.mxu0 }
 0x132   :  { %v1411_v25 = vadd.f32 %v3724_v43, %v1170_v34 }
 0x133   :  { %v1360_v3 = vpop.f32.mrf.mxu0  ;;  %v3755_v29 = vpop.f32.mrf.mxu1 }
 0x134   :  { %v1409_v4 = vadd.f32 %v1360_v3, %v1168_v1  ;;  %v5017_v28 = vadd.f32 %v3755_v29, %v1410_v20  ;;  %v1406_v29 = vadd.f32 %v3719_v15, %v4981_v5 }
 0x135   :  { %v3727_v59 = vpop.f32.mrf.mxu0  ;;  %v1822_v30 = vpop.f32.mrf.mxu1 }
 0x136   :  { %v5019_v33 = vadd.f32 %v1822_v30, %v1408_v24  ;;  %v1414_v5 = vadd.f32 %v3727_v59, %v4989_v41 }
 0x137   :  { %v1373_v60 = vpop.f32.mrf.mxu0  ;;  %v3756_v63 = vpop.f32.mrf.mxu1 }
 0x138   :  { %v5021_v53 = vadd.f32 %v3756_v63, %v1411_v25 }
 0x139   :  { %v3728_v31 = vpop.f32.mrf.mxu0  ;;  %v1825_v32 = vpop.f32.mrf.mxu1 }
 0x13a   :  { %v5023_v10 = vadd.f32 %v1825_v32, %v1409_v4  ;;  %v1404_v32 = vadd.f32 %v1341_v22, %v4983_v18 }
 0x13b   :  { %v5025_v34 = vpop.f32.mrf.mxu0 }
 0x13c   :  { %5198 = vst [vmem:[#allocation2_spill] sm:$0xff] %v5023_v10  ;;  %v3759_v2 = vpop.f32.mrf.mxu1 }
 0x13d   :  { %v5027_v36 = vpop.f32.mrf.mxu0 }
 0x13e   :  { %v1838_v1 = vpop.f32.mrf.mxu1 }
 0x13f   :  { %v5029_v37 = vpop.f32.mrf.mxu0 }
 0x140   :  { %v3760_v40 = vpop.f32.mrf.mxu1 }
 0x141   :  { %v5031_v35 = vpop.f32.mrf.mxu0 }
 0x142   :  { %v5035_v17 = vpop.f32.mrf.mxu1 }
 0x143   :  { %v5033_v45 = vpop.f32.mrf.mxu0 }
 0x145   :  { %v3783_v46 = vpop.f32.mrf.mxu0 }
 0x147   :  { %v2049_v51 = vpop.f32.mrf.mxu0 }
 0x149   :  { %v5037_v12 = vpop.f32.mrf.mxu1  ;;  %v3784_v54 = vpop.f32.mrf.mxu0 }
 0x14b   :  { %v5039_v39 = vpop.f32.mrf.mxu1  ;;  %v2052_v57 = vpop.f32.mrf.mxu0 }
 0x14d   :  { %v5041_v49 = vpop.f32.mrf.mxu1  ;;  %v5045_v58 = vpop.f32.mrf.mxu0 }
 0x14e   :  { %5199 = vst [vmem:[#allocation3_spill] sm:$0xff] %v5041_v49 }
 0x14f   :  { %v5043_v42 = vpop.f32.mrf.mxu1  ;;  %v5047_v47 = vpop.f32.mrf.mxu0 }
 0x150   :  { %5200 = vst [vmem:[#allocation4_spill] sm:$0xff] %v5043_v42  ;;  %v1871_v42 = vadd.f32 %v5007_v16, %v1406_v29  ;;  %v1412_v16 = vadd.f32 %v1373_v60, %v4991_v50 }
 0x151   :  { %v3815_v0 = vpop.f32.mrf.mxu1  ;;  %v5049_v11 = vpop.f32.mrf.mxu0 }
 0x152   :  { %v2114_v15 = vadd.f32 %v3783_v46, %v1871_v42 }
 0x153   :  { %v2290_v8 = vpop.f32.mrf.mxu1  ;;  %v5051_v14 = vpop.f32.mrf.mxu0 }
 0x154   :  { %5201 = vst [vmem:[#allocation5_spill] sm:$0xff] %v5051_v14 }
 0x155   :  { %v3816_v52 = vpop.f32.mrf.mxu1  ;;  %v3791_v44 = vpop.f32.mrf.mxu0 }
 0x157   :  { %v2293_v55 = vpop.f32.mrf.mxu1  ;;  %v2081_v23 = vpop.f32.mrf.mxu0 }
 0x159   :  { %v5053_v20 = vpop.f32.mrf.mxu1  ;;  %v3792_v43 = vpop.f32.mrf.mxu0 }
 0x15b   :  { %v5055_v24 = vpop.f32.mrf.mxu1  ;;  %v2084_v3 = vpop.f32.mrf.mxu0 }
 0x15c   :  { %5202 = vst [vmem:[#allocation6_spill] sm:$0xff] %v5055_v24  ;;  %v1407_v24 = vadd.f32 %v5005_v48, %v4985_v21  ;;  %v1415_v21 = vadd.f32 %v3728_v31, %v4993_v38  ;;  %v1413_v31 = vadd.f32 %v5025_v34, %v4995_v56 }
 0x15d   :  { %v5057_v25 = vpop.f32.mrf.mxu1  ;;  %v5062_v30 = vpop.f32.mrf.mxu0 }
 0x15e   :  { %5203 = vst [vmem:[#allocation7_spill] sm:$0xff] %v5057_v25  ;;  %5205 = vst [vmem:[#allocation9_spill] sm:$0xff] %v5062_v30  ;;  %v1405_v30 = vadd.f32 %v5009_v19, %v4987_v26  ;;  %v5089_v19 = vld [vmem:[%s5193_s2] ss:$0 sm:$0xff]  ;;  %v1880_v38 = vadd.f32 %v3760_v40, %v1415_v21  ;;  %v1878_v34 = vadd.f32 %v5035_v17, %v1413_v31 }
 0x15f   :  { %v5059_v4 = vpop.f32.mrf.mxu1  ;;  %v5065_v14 = vpop.f32.mrf.mxu0 }
 0x160   :  { %5204 = vst [vmem:[#allocation8_spill] sm:$0xff] %v5059_v4  ;;  %5206 = vst [vmem:[#allocation10_spill] sm:$0xff] %v5065_v14  ;;  %v1869_v4 = vadd.f32 %v5011_v61, %v1404_v32  ;;  %v1872_v14 = vadd.f32 %v5013_v7, %v1407_v24  ;;  %v2355_v61 = vadd.f32 %v3815_v0, %v2114_v15 }
 0x161   :  { %v3823_v63 = vpop.f32.mrf.mxu1  ;;  %v5070_v49 = vpop.f32.mrf.mxu0  ;;  %v1870_v41 = vadd.f32 %v5015_v27, %v1405_v30  ;;  %v1877_v7 = vadd.f32 %v1838_v1, %v1412_v16  ;;  %v5101_v1 = vld [vmem:[%s5194_s3] ss:$0 sm:$0xff]  ;;  %v2121_v16 = vadd.f32 %v2084_v3, %v1878_v34  ;;  %v5209_v34 = vld [vmem:[#allocation3_spill] sm:$0xff] }
 0x162   :  { %5207 = vst [vmem:[#allocation11_spill] sm:$0xff] %v5070_v49  ;;  %v2112_v29 = vadd.f32 %v2049_v51, %v1869_v4  ;;  %v1879_v49 = vadd.f32 %v3759_v2, %v1414_v5  ;;  %v2115_v32 = vadd.f32 %v3784_v54, %v1872_v14 }
 0x163   :  { %v2322_v10 = vpop.f32.mrf.mxu1  ;;  %v5076_v22 = vpop.f32.mrf.mxu0  ;;  %v2113_v2 = vadd.f32 %v2052_v57, %v1870_v41  ;;  %v2120_v42 = vadd.f32 %v2081_v23, %v1877_v7 }
 0x164   :  { %v2353_v50 = vadd.f32 %v2290_v8, %v2112_v29  ;;  %v2122_v60 = vadd.f32 %v3791_v44, %v1879_v49  ;;  %v2356_v54 = vadd.f32 %v3816_v52, %v2115_v32  ;;  %v2123_v8 = vadd.f32 %v3792_v43, %v1880_v38 }
 0x165   :  { %v3824_v25 = vpop.f32.mrf.mxu1  ;;  %v2354_v57 = vadd.f32 %v2293_v55, %v2113_v2  ;;  %v2361_v4 = vadd.f32 %v2322_v10, %v2120_v42  ;;  %v1416_v38 = vadd.f32 %v5029_v37, %v4999_v9 }
 0x166   :  { %v2363_v49 = vadd.f32 %v3823_v63, %v2122_v60 }
 0x167   :  { %v2325_v18 = vpop.f32.mrf.mxu1 }
 0x168   :  { %v2362_v3 = vadd.f32 %v2325_v18, %v2121_v16  ;;  %v2116_v18 = vadd.f32 %v5047_v47, %v5019_v33  ;;  %v1881_v47 = vadd.f32 %v5039_v39, %v1416_v38  ;;  %v5214_v16 = vld [vmem:[#allocation2_spill] sm:$0xff] }
 0x169   :  { %v5081_v48 = vpop.f32.mrf.mxu1  ;;  %v3847_v26 = vpop.f32.mrf.mxu0 }
 0x16a   :  { %v2820_v46 = vadd.f32 %v3847_v26, %v2355_v61  ;;  %v2364_v61 = vadd.f32 %v3824_v25, %v2123_v8  ;;  %v5208_v8 = vld [vmem:[#allocation9_spill] sm:$0xff] }
 0x16b   :  { %v5084_v59 = vpop.f32.mrf.mxu1  ;;  %v2755_v27 = vpop.f32.mrf.mxu0 }
 0x16c   :  { %v2843_v0 = vmul.f32 %v5089_v19, %v2820_v46  ;;  %v2818_v14 = vadd.f32 %v2755_v27, %v2353_v50  ;;  %v1418_v50 = vadd.f32 %v5027_v36, %v4997_v62  ;;  %v1419_v36 = vadd.f32 %v5031_v35, %v5001_v13 }
 0x16d   :  { %v5093_v51 = vpop.f32.mrf.mxu1  ;;  %v3848_v40 = vpop.f32.mrf.mxu0  ;;  %v2119_v13 = vadd.f32 %v5049_v11, %v5021_v53  ;;  %v5211_v11 = vld [vmem:[#allocation10_spill] sm:$0xff] }
 0x16e   :  { %v2821_v56 = vadd.f32 %v3848_v40, %v2356_v54  ;;  %v2841_v52 = vmul.f32 %v5089_v19, %v2818_v14  ;;  %v2866_v30 = vadd.f32 %v5101_v1, %v2843_v0  ;;  %v2118_v54 = vadd.f32 %v5045_v58, %v5017_v28 }
 0x16f   :  { %v5096_v24 = vpop.f32.mrf.mxu1  ;;  %v2758_v23 = vpop.f32.mrf.mxu0  ;;  %v1883_v37 = vadd.f32 %v5037_v12, %v1418_v50  ;;  %v1417_v40 = vadd.f32 %v5033_v45, %v5003_v6  ;;  %v5210_v6 = vld [vmem:[#allocation6_spill] sm:$0xff] }
 0x170   :  { %v2844_v15 = vmul.f32 %v5089_v19, %v2821_v56  ;;  %v2819_v21 = vadd.f32 %v2758_v23, %v2354_v57  ;;  %v2864_v55 = vadd.f32 %v5101_v1, %v2841_v52  ;;  %v2882_v10 = vmax.f32 %v2866_v30, 0.0 }
 0x171   :  { %v3855_v44 = vpop.f32.mrf.mxu1  ;;  %v2126_v56 = vadd.f32 %v5208_v8, %v1883_v37  ;;  %v1884_v57 = vadd.f32 %v5209_v34, %v1419_v36  ;;  %v2357_v45 = vadd.f32 %v5210_v6, %v2116_v18  ;;  %v2124_v52 = vadd.f32 %v5211_v11, %v1881_v47 }
 0x172   :  { %v2828_v5 = vadd.f32 %v3855_v44, %v2363_v49  ;;  %v2867_v17 = vadd.f32 %v5101_v1, %v2844_v15  ;;  %v2842_v41 = vmul.f32 %v5089_v19, %v2819_v21  ;;  %v2880_v42 = vmax.f32 %v2864_v55, 0.0 }
 0x173   :  { %v2787_v29 = vpop.f32.mrf.mxu1  ;;  %v2359_v49 = vadd.f32 %v5053_v20, %v2118_v54  ;;  %v5212_v20 = vld [vmem:[#allocation4_spill] sm:$0xff] }
 0x174   :  { %v2851_v43 = vmul.f32 %v5089_v19, %v2828_v5  ;;  %v2826_v63 = vadd.f32 %v2787_v29, %v2361_v4  ;;  %v2883_v26 = vmax.f32 %v2867_v17, 0.0  ;;  %v2865_v25 = vadd.f32 %v5101_v1, %v2842_v41  ;;  %v5213_v5 = vld [vmem:[#allocation7_spill] sm:$0xff]  ;;  %v5215_v29 = vld [vmem:[#allocation5_spill] sm:$0xff] }
 0x175   :  { %v3856_v32 = vpop.f32.mrf.mxu1  ;;  %v1882_v30 = vadd.f32 %v5212_v20, %v1417_v40  ;;  %v2360_v15 = vadd.f32 %v5213_v5, %v2119_v13  ;;  %v2117_v21 = vadd.f32 %v5215_v29, %v5214_v16 }
 0x176   :  { %v2829_v7 = vadd.f32 %v3856_v32, %v2364_v61  ;;  %v2849_v60 = vmul.f32 %v5089_v19, %v2826_v63  ;;  %v2874_v31 = vadd.f32 %v5101_v1, %v2851_v43  ;;  %v3390_v2 = vpack.c.bf16 %v2883_v26, %v2882_v10  ;;  %v5216_v63 = vld [vmem:[#allocation11_spill] sm:$0xff] }
 0x177   :  { %v2790_v46 = vpop.f32.mrf.mxu1  ;;  %v2881_v0 = vmax.f32 %v2865_v25, 0.0  ;;  %v2367_v43 = vadd.f32 %v5081_v48, %v2126_v56  ;;  %v2127_v17 = vadd.f32 %v5216_v63, %v1884_v57  ;;  %v2125_v50 = vadd.f32 %v5076_v22, %v1882_v30  ;;  %v5217_v25 = vld [vmem:[#allocation8_spill] sm:$0xff] }
 0x178   :  { %v2852_v27 = vmul.f32 %v5089_v19, %v2829_v7  ;;  %v2827_v62 = vadd.f32 %v2790_v46, %v2362_v3  ;;  %3422 = vst [vmem:[%s5195_s4 + $0x8] sm:$0xff] %v3390_v2   ;;  %v2872_v14 = vadd.f32 %v5101_v1, %v2849_v60  ;;  %v2890_v33 = vmax.f32 %v2874_v31, 0.0 }
 0x179   :  { %v3385_v28 = vpack.c.bf16 %v2881_v0, %v2880_v42  ;;  %v3851_v53 = vpop.f32.mrf.mxu0  ;;  %v3859_v10 = vpop.f32.mrf.mxu1  ;;  %v2365_v7 = vadd.f32 %v5084_v59, %v2124_v52  ;;  %v2358_v48 = vadd.f32 %v5217_v25, %v2117_v21  ;;  %v2368_v2 = vadd.f32 %v5093_v51, %v2127_v17 }
 0x17a   :  { %v2875_v9 = vadd.f32 %v5101_v1, %v2852_v27  ;;  %v2850_v58 = vmul.f32 %v5089_v19, %v2827_v62  ;;  %v2888_v23 = vmax.f32 %v2872_v14, 0.0  ;;  %v2824_v4 = vadd.f32 %v3851_v53, %v2359_v49 }
 0x17b   :  { %3386 = vst [vmem:[%s5195_s4] sm:$0xff] %v3385_v28   ;;  %v2771_v61 = vpop.f32.mrf.mxu0  ;;  %v2832_v3 = vadd.f32 %v3859_v10, %v2367_v43  ;;  %v2803_v38 = vpop.f32.mrf.mxu1  ;;  %v2366_v62 = vadd.f32 %v5096_v24, %v2125_v50 }
 0x17c   :  { %v2891_v35 = vmax.f32 %v2875_v9, 0.0  ;;  %v2873_v12 = vadd.f32 %v5101_v1, %v2850_v58  ;;  %v2822_v32 = vadd.f32 %v2771_v61, %v2357_v45  ;;  %v2847_v41 = vmul.f32 %v5089_v19, %v2824_v4 }
 0x17d   :  { %v3852_v26 = vpop.f32.mrf.mxu0  ;;  %v2855_v27 = vmul.f32 %v5089_v19, %v2832_v3  ;;  %v2830_v54 = vadd.f32 %v2803_v38, %v2365_v7  ;;  %v3860_v42 = vpop.f32.mrf.mxu1 }
 0x17e   :  { %v3410_v44 = vpack.c.bf16 %v2891_v35, %v2890_v33  ;;  %v2889_v39 = vmax.f32 %v2873_v12, 0.0  ;;  %v2825_v60 = vadd.f32 %v3852_v26, %v2360_v15  ;;  %v2845_v46 = vmul.f32 %v5089_v19, %v2822_v32 }
 0x17f   :  { %v2774_v31 = vpop.f32.mrf.mxu0  ;;  %v2870_v59 = vadd.f32 %v5101_v1, %v2847_v41  ;;  %v2853_v36 = vmul.f32 %v5089_v19, %v2830_v54  ;;  %v2833_v18 = vadd.f32 %v3860_v42, %v2368_v2  ;;  %v2806_v14 = vpop.f32.mrf.mxu1  ;;  %v2878_v28 = vadd.f32 %v5101_v1, %v2855_v27 }
 0x180   :  { %3426 = vst [vmem:[%s5195_s4 + $0x28] sm:$0xff] %v3410_v44   ;;  %v3405_v55 = vpack.c.bf16 %v2889_v39, %v2888_v23  ;;  %v2848_v22 = vmul.f32 %v5089_v19, %v2825_v60  ;;  %v2823_v0 = vadd.f32 %v2774_v31, %v2358_v48  ;;  %v2868_v9 = vadd.f32 %v5101_v1, %v2845_v46 }
 0x181   :  { %v2856_v58 = vmul.f32 %v5089_v19, %v2833_v18  ;;  %v2831_v40 = vadd.f32 %v2806_v14, %v2366_v62  ;;  %v2886_v13 = vmax.f32 %v2870_v59, 0.0  ;;  %v2876_v24 = vadd.f32 %v5101_v1, %v2853_v36 }
 0x182   :  { %3425 = vst [vmem:[%s5195_s4 + $0x20] sm:$0xff] %v3405_v55   ;;  %v2871_v37 = vadd.f32 %v5101_v1, %v2848_v22  ;;  %v2846_v51 = vmul.f32 %v5089_v19, %v2823_v0  ;;  %v2884_v8 = vmax.f32 %v2868_v9, 0.0  ;;  %v2894_v34 = vmax.f32 %v2878_v28, 0.0 }
 0x183   :  { %v2879_v47 = vadd.f32 %v5101_v1, %v2856_v58  ;;  %v2854_v49 = vmul.f32 %v5089_v19, %v2831_v40  ;;  %v2892_v44 = vmax.f32 %v2876_v24, 0.0 }
 0x184   :  { %v2887_v33 = vmax.f32 %v2871_v37, 0.0  ;;  %v2869_v35 = vadd.f32 %v5101_v1, %v2846_v51 }
 0x185   :  { %v2895_v57 = vmax.f32 %v2879_v47, 0.0  ;;  %v2877_v6 = vadd.f32 %v5101_v1, %v2854_v49 }
 0x186   :  { %v3400_v56 = vpack.c.bf16 %v2887_v33, %v2886_v13  ;;  %v2885_v12 = vmax.f32 %v2869_v35, 0.0 }
 0x187   :  { %v3420_v53 = vpack.c.bf16 %v2895_v57, %v2894_v34  ;;  %v2893_v11 = vmax.f32 %v2877_v6, 0.0 }
 0x188   :  { %3424 = vst [vmem:[%s5195_s4 + $0x18] sm:$0xff] %v3400_v56   ;;  %v3395_v45 = vpack.c.bf16 %v2885_v12, %v2884_v8 }
 0x189   :  { %3428 = vst [vmem:[%s5195_s4 + $0x38] sm:$0xff] %v3420_v53   ;;  %v3415_v19 = vpack.c.bf16 %v2893_v11, %v2892_v44 }
 0x18a   :  { %3423 = vst [vmem:[%s5195_s4 + $0x10] sm:$0xff] %v3395_v45  }
 0x18b   :  { %3427 = vst [vmem:[%s5195_s4 + $0x30] sm:$0xff] %v3415_v19  }

</bundles_post_ra>
